<compile_context>
chip_gen: v5e
topology: v5e:2x2
jax: 0.10.0
libtpu: 0.0.40
codegen_flags: <defaults>
</compile_context>

<pallas_src>
import functools

import numpy as np

import jax
import jax.numpy as jnp
from jax.experimental import pallas as pl
from jax.experimental.pallas import tpu as pltpu


# 3x3 taps in row-major order; tap k multiplies the input pixel at (h+oh, w+ow).
_TAPS = tuple((oh, ow) for oh in (-1, 0, 1) for ow in (-1, 0, 1))
_CENTER = _TAPS.index((0, 0))


def _ceil_to(x, m):
    return -(-x // m) * m


# ------------------------------ Pallas kernel -------------------------------

def _encoder_kernel(strides, layer_ci, h, w, x_ref, *refs):
    """Full encoder (conv blocks + global average pool) for one tile of images.

    x_ref : (1, Ci0, L) f32      L = nimg * RP ; channels on sublanes, pixels of the
                                 nimg images concatenated on the lane axis.
    per layer l, refs[3l:3l+3] =
        w_ref (Co, 9*Ci) bf16    -- 9 taps stacked along K (tap-major, channel-minor)
        b_ref (Co, 1)    f32
        m_ref (9, 1, L)  f32     -- 1 where tap stays inside the image (per image slab)
    refs[3*nl]   : avg_ref (L, nimg) bf16 -- 0/1 selector of valid final-grid lanes
    refs[3*nl+1] : out_ref (1, Co_last, nimg) f32
    refs[3*nl+2] : xk_ref  (9*Ci_max, L) bf16 VMEM scratch (stacked-tap operand)
    """
    n_layers = len(strides)
    avg_ref = refs[3 * n_layers]
    out_ref = refs[3 * n_layers + 1]
    xk_ref = refs[3 * n_layers + 2]

    x = x_ref[0]                                           # (Ci0, L) f32
    lanes = x.shape[1]

    for li in range(n_layers):
        w_ref, b_ref, m_ref = refs[3 * li:3 * li + 3]
        s = strides[li]                                    # 2**li (in-place pooling)
        ci = layer_ci[li]

        # ---- conv3x3 (padding=1): build the stacked (9*Ci, L) bf16 operand from
        #      lane-rolled + border-masked views, then ONE MXU dot (K = 9*Ci).
        for k, (oh, ow) in enumerate(_TAPS):
            d = s * (oh * w + ow)
            xs = x if d == 0 else pltpu.roll(x, (-d) % lanes, 1)
            if k != _CENTER:                               # center mask is provably redundant
                xs = xs * m_ref[k]                         # zero out-of-image / cross-image taps
            xk_ref[k * ci:(k + 1) * ci, :] = xs.astype(jnp.bfloat16)

        y = jnp.dot(w_ref[...], xk_ref[:9 * ci, :],
                    preferred_element_type=jnp.float32)    # (Co, L) f32
        y = jnp.maximum(y + b_ref[...], 0.0)               # bias + ReLU (f32 VPU)

        # ---- 2x2 / stride-2 max pool, separable and in place: pooled values land on
        #      the stride-2s origin lanes of the original H*W layout.
        m1 = jnp.maximum(y, pltpu.roll(y, (-s) % lanes, 1))
        x = jnp.maximum(m1, pltpu.roll(m1, (-(s * w)) % lanes, 1))

    # ---- AdaptiveAvgPool2d((1, 1)) per image: the 0/1 selector picks exactly the valid
    #      final-grid origin lanes of each image slab (junk/padded lanes never leak in).
    hf = h // (2 * strides[-1])
    wf = w // (2 * strides[-1])
    emb = jnp.dot(x.astype(jnp.bfloat16), avg_ref[...],
                  preferred_element_type=jnp.float32)       # (Co, nimg) f32
    out_ref[0] = (emb * (1.0 / (hf * wf))).astype(out_ref.dtype)


# ------------------------------ host-side constants -------------------------

def _tap_masks(h, w, rp, stride, nimg):
    """(9, 1, nimg*rp) f32: 1 at layer-l origin lanes whose tap-k neighbour is in-image."""
    hl, wl = h // stride, w // stride
    m = np.zeros((9, 1, rp), np.float32)
    for k, (oh, ow) in enumerate(_TAPS):
        for i in range(hl):
            if not 0 <= i + oh < hl:
                continue
            for j in range(wl):
                if 0 <= j + ow < wl:
                    m[k, 0, (i * stride) * w + j * stride] = 1.0
    return jnp.asarray(np.tile(m, (1, 1, nimg)))


def _avg_selector(h, w, rp, stride_out, nimg):
    """(nimg*rp, nimg) bf16 0/1: column m selects image m's valid final-grid lanes."""
    hf, wf = h // stride_out, w // stride_out
    sel = np.zeros((nimg * rp, nimg), np.float32)
    for img in range(nimg):
        base = img * rp
        for i in range(hf):
            for j in range(wf):
                sel[base + (i * stride_out) * w + j * stride_out, img] = 1.0
    return jnp.asarray(sel, dtype=jnp.bfloat16)


def _prep_weight(w_oihw, ci_pad, co_pad):
    """PyTorch (Co, Ci, 3, 3) OIHW -> (Co_pad, 9*Ci_pad) bf16, taps ordered like _TAPS."""
    co, ci, kh, kw = w_oihw.shape
    wt = jnp.transpose(w_oihw, (0, 2, 3, 1)).reshape(co, kh * kw, ci)   # (Co, 9, Ci)
    wt = jnp.pad(wt, ((0, co_pad - co), (0, 0), (0, ci_pad - ci)))
    return wt.reshape(co_pad, kh * kw * ci_pad).astype(jnp.bfloat16)


def _prep_bias(b, co_pad):
    return jnp.pad(b, (0, co_pad - b.shape[0])).reshape(co_pad, 1).astype(jnp.float32)


def _images_per_tile(n, max_tile=8):
    """Images lane-batched per grid step; keeps >= 2 grid steps (megacore) when possible.
    Non-divisible n is handled by padding the batch, never by dropping to 1 image/step."""
    if n <= 1:
        return 1
    # TODO(synk): gate max_tile / vmem_limit_bytes per generation (v7x: 64 MiB VMEM)
    #             for ProtoNet-realistic 84x84 / hidden=64 problem sizes.
    return max(1, min(max_tile, -(-n // 2)))


# ------------------------------ model wrapper --------------------------------

def init_params(key, c_in, hidden, n_blocks):
    """Conv weights in PyTorch OIHW layout, biases as (Cout,)."""
    params = []
    c = c_in
    for _ in range(n_blocks):
        key, k1 = jax.random.split(key)
        fan_in = 9 * c
        wt = jax.random.normal(k1, (hidden, c, 3, 3), jnp.float32) * jnp.sqrt(2.0 / fan_in)
        params.append((wt, jnp.zeros((hidden,), jnp.float32)))
        c = hidden
    return params


@jax.jit
def prototypical_network_forward(inputs, params):
    """inputs: (n_way, n_samples, C, H, W) f32; returns (n_way, n_samples, hidden)."""
    n_way, n_samples, c, h, w = inputs.shape
    n = n_way * n_samples
    n_blocks = len(params)
    assert h % (2 ** n_blocks) == 0 and w % (2 ** n_blocks) == 0

    rp = _ceil_to(h * w, 128)          # per-image lane slab (lane-dense, 128-multiple)
    ci0 = _ceil_to(c, 16)              # bf16 sublane quantum

    nimg = _images_per_tile(n)
    n_pad = _ceil_to(n, nimg)
    n_tiles = n_pad // nimg
    lanes = nimg * rp

    # NCHW -> (tiles, Ci0, nimg*RP): channels on sublanes, the nimg images of a tile
    # concatenated on the lane axis (host-side layout plumbing, not compute).
    x = inputs.reshape(n, c, h * w)
    x = jnp.pad(x, ((0, n_pad - n), (0, ci0 - c), (0, rp - h * w)))
    x = x.reshape(n_tiles, nimg, ci0, rp).transpose(0, 2, 1, 3).reshape(n_tiles, ci0, lanes)

    operands = [x]
    in_specs = [pl.BlockSpec((1, ci0, lanes), lambda i: (i, 0, 0))]

    strides, layer_ci = [], []
    ci = ci0
    for li, (wt, b) in enumerate(params):
        co = wt.shape[0]
        co_p = _ceil_to(co, 16)
        s = 2 ** li
        strides.append(s)
        layer_ci.append(ci)
        operands += [
            _prep_weight(wt, ci, co_p),         # (Co, 9*Ci)  bf16
            _prep_bias(b, co_p),                # (Co, 1)     f32
            _tap_masks(h, w, rp, s, nimg),      # (9, 1, L)   f32
        ]
        # Constant index_maps: constants are DMA'd once and stay VMEM-resident.
        in_specs += [
            pl.BlockSpec((co_p, 9 * ci), lambda i: (0, 0)),
            pl.BlockSpec((co_p, 1), lambda i: (0, 0)),
            pl.BlockSpec((9, 1, lanes), lambda i: (0, 0, 0)),
        ]
        ci = co_p
    co_last = ci
    hidden = params[-1][0].shape[0]

    operands.append(_avg_selector(h, w, rp, 2 ** n_blocks, nimg))   # (L, nimg) bf16
    in_specs.append(pl.BlockSpec((lanes, nimg), lambda i: (0, 0)))

    out = pl.pallas_call(
        functools.partial(_encoder_kernel, tuple(strides), tuple(layer_ci), h, w),
        out_shape=jax.ShapeDtypeStruct((n_tiles, co_last, nimg), jnp.float32),
        grid_spec=pltpu.PrefetchScalarGridSpec(
            num_scalar_prefetch=0,
            grid=(n_tiles,),
            in_specs=in_specs,
            out_specs=pl.BlockSpec((1, co_last, nimg), lambda i: (i, 0, 0)),
            scratch_shapes=[pltpu.VMEM((9 * max(layer_ci), lanes), jnp.bfloat16)],
        ),
        compiler_params=pltpu.CompilerParams(
            dimension_semantics=("parallel",)),
    )(*operands)

    emb = out.transpose(0, 2, 1).reshape(n_pad, co_last)[:n, :hidden]
    return emb.reshape(n_way, n_samples, hidden)


# ------------------------------ reference (plain XLA) ------------------------

def _reference_forward(inputs, params):
    n_way, n_samples, c, h, w = inputs.shape
    x = inputs.reshape(n_way * n_samples, c, h, w)
    for wt, b in params:
        x = jax.lax.conv_general_dilated(
            x, wt, window_strides=(1, 1), padding="SAME",
            dimension_numbers=("NCHW", "OIHW", "NCHW"))
        x = jnp.maximum(x + b.reshape(1, -1, 1, 1), 0.0)
        x = jax.lax.reduce_window(x, -jnp.inf, jax.lax.max,
                                  (1, 1, 2, 2), (1, 1, 2, 2), "VALID")
    x = jnp.mean(x, axis=(2, 3))
    return x.reshape(n_way, n_samples, -1)


if __name__ == "__main__":
    key = jax.random.PRNGKey(0)
    kx, kp = jax.random.split(key)

    n_way, n_samples, c, h, w = 2, 3, 3, 16, 16
    hidden, n_blocks = 16, 3

    inputs = jax.random.normal(kx, (n_way, n_samples, c, h, w), jnp.float32)
    params = init_params(kp, c, hidden, n_blocks)

    out = prototypical_network_forward(inputs, params)
    out = jax.block_until_ready(out)

    assert out.shape == (n_way, n_samples, hidden), out.shape
    assert bool(jnp.all(jnp.isfinite(out)))

    # Tighter check vs. plain-XLA reference (kernel uses bf16 MXU operands, f32 accum).
    ref = _reference_forward(inputs, params)
    err = float(jnp.max(jnp.abs(out - ref)))
    tol = 0.05 + 0.05 * float(jnp.max(jnp.abs(ref)))
    assert err < tol, (err, tol)

    print("KERNEL_OK")
</pallas_src>

<mosaic_0001>
module attributes {stable_mosaic.version = 11 : i64} {
  func.func @_encoder_kernel(%arg0: i32, %arg1: memref<1x16x768xf32, #tpu.memory_space<vmem>>, %arg2: memref<16x144xbf16, #tpu.memory_space<vmem>>, %arg3: memref<16x1xf32, #tpu.memory_space<vmem>>, %arg4: memref<9x1x768xf32, #tpu.memory_space<vmem>>, %arg5: memref<16x144xbf16, #tpu.memory_space<vmem>>, %arg6: memref<16x1xf32, #tpu.memory_space<vmem>>, %arg7: memref<9x1x768xf32, #tpu.memory_space<vmem>>, %arg8: memref<16x144xbf16, #tpu.memory_space<vmem>>, %arg9: memref<16x1xf32, #tpu.memory_space<vmem>>, %arg10: memref<9x1x768xf32, #tpu.memory_space<vmem>>, %arg11: memref<768x3xbf16, #tpu.memory_space<vmem>>, %arg12: memref<1x16x3xf32, #tpu.memory_space<vmem>>, %arg13: memref<144x768xbf16, #tpu.memory_space<vmem>>) attributes {dimension_semantics = [#tpu.dimension_semantics<parallel>], iteration_bounds = array<i64: 2>, scalar_prefetch = 0 : i64, scratch_operands = 1 : i64, tpu.core_type = #tpu.core_type<tc>, window_params = [{transform_indices = @transform_0, window_bounds = array<i64: 1, 16, 768>}, {pipeline_mode = #tpu.pipeline_mode<synchronous>, transform_indices = @transform_1, window_bounds = array<i64: 16, 144>}, {pipeline_mode = #tpu.pipeline_mode<synchronous>, transform_indices = @transform_2, window_bounds = array<i64: 16, 1>}, {pipeline_mode = #tpu.pipeline_mode<synchronous>, transform_indices = @transform_3, window_bounds = array<i64: 9, 1, 768>}, {pipeline_mode = #tpu.pipeline_mode<synchronous>, transform_indices = @transform_4, window_bounds = array<i64: 16, 144>}, {pipeline_mode = #tpu.pipeline_mode<synchronous>, transform_indices = @transform_5, window_bounds = array<i64: 16, 1>}, {pipeline_mode = #tpu.pipeline_mode<synchronous>, transform_indices = @transform_6, window_bounds = array<i64: 9, 1, 768>}, {pipeline_mode = #tpu.pipeline_mode<synchronous>, transform_indices = @transform_7, window_bounds = array<i64: 16, 144>}, {pipeline_mode = #tpu.pipeline_mode<synchronous>, transform_indices = @transform_8, window_bounds = array<i64: 16, 1>}, {pipeline_mode = #tpu.pipeline_mode<synchronous>, transform_indices = @transform_9, window_bounds = array<i64: 9, 1, 768>}, {pipeline_mode = #tpu.pipeline_mode<synchronous>, transform_indices = @transform_10, window_bounds = array<i64: 768, 3>}, {transform_indices = @transform_11, window_bounds = array<i64: 1, 16, 3>}]} {
    %c0 = arith.constant 0 : index
    %c0_0 = arith.constant 0 : index
    %c0_1 = arith.constant 0 : index
    %0 = vector.load %arg1[%c0, %c0_0, %c0_1] : memref<1x16x768xf32, #tpu.memory_space<vmem>>, vector<1x16x768xf32>
    %1 = vector.shape_cast %0 : vector<1x16x768xf32> to vector<16x768xf32>
    %c17_i32 = arith.constant 17 : i32
    %2 = tpu.dynamic_rotate %1 by %c17_i32 dim 1 : vector<16x768xf32>, i32 -> vector<16x768xf32>
    %c0_2 = arith.constant 0 : index
    %c0_3 = arith.constant 0 : index
    %c0_4 = arith.constant 0 : index
    %3 = vector.load %arg4[%c0_2, %c0_3, %c0_4] : memref<9x1x768xf32, #tpu.memory_space<vmem>>, vector<1x1x768xf32>
    %4 = vector.shape_cast %3 : vector<1x1x768xf32> to vector<1x768xf32>
    %5 = vector.broadcast %4 : vector<1x768xf32> to vector<16x768xf32>
    %6 = arith.mulf %2, %5 : vector<16x768xf32>
    %7 = arith.truncf %6 : vector<16x768xf32> to vector<16x768xbf16>
    %c0_5 = arith.constant 0 : index
    %c0_6 = arith.constant 0 : index
    %8 = vector.load %arg13[%c0_5, %c0_6] : memref<144x768xbf16, #tpu.memory_space<vmem>>, vector<16x768xbf16>
    tpu.vector_store %arg13[%c0_5, %c0_6], %7 {strides = array<i32>} : memref<144x768xbf16, #tpu.memory_space<vmem>>, vector<16x768xbf16>,
    %c16_i32 = arith.constant 16 : i32
    %9 = tpu.dynamic_rotate %1 by %c16_i32 dim 1 : vector<16x768xf32>, i32 -> vector<16x768xf32>
    %c1 = arith.constant 1 : index
    %c0_7 = arith.constant 0 : index
    %c0_8 = arith.constant 0 : index
    %10 = vector.load %arg4[%c1, %c0_7, %c0_8] : memref<9x1x768xf32, #tpu.memory_space<vmem>>, vector<1x1x768xf32>
    %11 = vector.shape_cast %10 : vector<1x1x768xf32> to vector<1x768xf32>
    %12 = vector.broadcast %11 : vector<1x768xf32> to vector<16x768xf32>
    %13 = arith.mulf %9, %12 : vector<16x768xf32>
    %14 = arith.truncf %13 : vector<16x768xf32> to vector<16x768xbf16>
    %c16 = arith.constant 16 : index
    %c0_9 = arith.constant 0 : index
    %15 = vector.load %arg13[%c16, %c0_9] : memref<144x768xbf16, #tpu.memory_space<vmem>>, vector<16x768xbf16>
    tpu.vector_store %arg13[%c16, %c0_9], %14 {strides = array<i32>} : memref<144x768xbf16, #tpu.memory_space<vmem>>, vector<16x768xbf16>,
    %c15_i32 = arith.constant 15 : i32
    %16 = tpu.dynamic_rotate %1 by %c15_i32 dim 1 : vector<16x768xf32>, i32 -> vector<16x768xf32>
    %c2 = arith.constant 2 : index
    %c0_10 = arith.constant 0 : index
    %c0_11 = arith.constant 0 : index
    %17 = vector.load %arg4[%c2, %c0_10, %c0_11] : memref<9x1x768xf32, #tpu.memory_space<vmem>>, vector<1x1x768xf32>
    %18 = vector.shape_cast %17 : vector<1x1x768xf32> to vector<1x768xf32>
    %19 = vector.broadcast %18 : vector<1x768xf32> to vector<16x768xf32>
    %20 = arith.mulf %16, %19 : vector<16x768xf32>
    %21 = arith.truncf %20 : vector<16x768xf32> to vector<16x768xbf16>
    %c32 = arith.constant 32 : index
    %c0_12 = arith.constant 0 : index
    %22 = vector.load %arg13[%c32, %c0_12] : memref<144x768xbf16, #tpu.memory_space<vmem>>, vector<16x768xbf16>
    tpu.vector_store %arg13[%c32, %c0_12], %21 {strides = array<i32>} : memref<144x768xbf16, #tpu.memory_space<vmem>>, vector<16x768xbf16>,
    %c1_i32 = arith.constant 1 : i32
    %23 = tpu.dynamic_rotate %1 by %c1_i32 dim 1 : vector<16x768xf32>, i32 -> vector<16x768xf32>
    %c3 = arith.constant 3 : index
    %c0_13 = arith.constant 0 : index
    %c0_14 = arith.constant 0 : index
    %24 = vector.load %arg4[%c3, %c0_13, %c0_14] : memref<9x1x768xf32, #tpu.memory_space<vmem>>, vector<1x1x768xf32>
    %25 = vector.shape_cast %24 : vector<1x1x768xf32> to vector<1x768xf32>
    %26 = vector.broadcast %25 : vector<1x768xf32> to vector<16x768xf32>
    %27 = arith.mulf %23, %26 : vector<16x768xf32>
    %28 = arith.truncf %27 : vector<16x768xf32> to vector<16x768xbf16>
    %c48 = arith.constant 48 : index
    %c0_15 = arith.constant 0 : index
    %29 = vector.load %arg13[%c48, %c0_15] : memref<144x768xbf16, #tpu.memory_space<vmem>>, vector<16x768xbf16>
    tpu.vector_store %arg13[%c48, %c0_15], %28 {strides = array<i32>} : memref<144x768xbf16, #tpu.memory_space<vmem>>, vector<16x768xbf16>,
    %30 = arith.truncf %1 : vector<16x768xf32> to vector<16x768xbf16>
    %c64 = arith.constant 64 : index
    %c0_16 = arith.constant 0 : index
    %31 = vector.load %arg13[%c64, %c0_16] : memref<144x768xbf16, #tpu.memory_space<vmem>>, vector<16x768xbf16>
    tpu.vector_store %arg13[%c64, %c0_16], %30 {strides = array<i32>} : memref<144x768xbf16, #tpu.memory_space<vmem>>, vector<16x768xbf16>,
    %c767_i32 = arith.constant 767 : i32
    %32 = tpu.dynamic_rotate %1 by %c767_i32 dim 1 : vector<16x768xf32>, i32 -> vector<16x768xf32>
    %c5 = arith.constant 5 : index
    %c0_17 = arith.constant 0 : index
    %c0_18 = arith.constant 0 : index
    %33 = vector.load %arg4[%c5, %c0_17, %c0_18] : memref<9x1x768xf32, #tpu.memory_space<vmem>>, vector<1x1x768xf32>
    %34 = vector.shape_cast %33 : vector<1x1x768xf32> to vector<1x768xf32>
    %35 = vector.broadcast %34 : vector<1x768xf32> to vector<16x768xf32>
    %36 = arith.mulf %32, %35 : vector<16x768xf32>
    %37 = arith.truncf %36 : vector<16x768xf32> to vector<16x768xbf16>
    %c80 = arith.constant 80 : index
    %c0_19 = arith.constant 0 : index
    %38 = vector.load %arg13[%c80, %c0_19] : memref<144x768xbf16, #tpu.memory_space<vmem>>, vector<16x768xbf16>
    tpu.vector_store %arg13[%c80, %c0_19], %37 {strides = array<i32>} : memref<144x768xbf16, #tpu.memory_space<vmem>>, vector<16x768xbf16>,
    %c753_i32 = arith.constant 753 : i32
    %39 = tpu.dynamic_rotate %1 by %c753_i32 dim 1 : vector<16x768xf32>, i32 -> vector<16x768xf32>
    %c6 = arith.constant 6 : index
    %c0_20 = arith.constant 0 : index
    %c0_21 = arith.constant 0 : index
    %40 = vector.load %arg4[%c6, %c0_20, %c0_21] : memref<9x1x768xf32, #tpu.memory_space<vmem>>, vector<1x1x768xf32>
    %41 = vector.shape_cast %40 : vector<1x1x768xf32> to vector<1x768xf32>
    %42 = vector.broadcast %41 : vector<1x768xf32> to vector<16x768xf32>
    %43 = arith.mulf %39, %42 : vector<16x768xf32>
    %44 = arith.truncf %43 : vector<16x768xf32> to vector<16x768xbf16>
    %c96 = arith.constant 96 : index
    %c0_22 = arith.constant 0 : index
    %45 = vector.load %arg13[%c96, %c0_22] : memref<144x768xbf16, #tpu.memory_space<vmem>>, vector<16x768xbf16>
    tpu.vector_store %arg13[%c96, %c0_22], %44 {strides = array<i32>} : memref<144x768xbf16, #tpu.memory_space<vmem>>, vector<16x768xbf16>,
    %c752_i32 = arith.constant 752 : i32
    %46 = tpu.dynamic_rotate %1 by %c752_i32 dim 1 : vector<16x768xf32>, i32 -> vector<16x768xf32>
    %c7 = arith.constant 7 : index
    %c0_23 = arith.constant 0 : index
    %c0_24 = arith.constant 0 : index
    %47 = vector.load %arg4[%c7, %c0_23, %c0_24] : memref<9x1x768xf32, #tpu.memory_space<vmem>>, vector<1x1x768xf32>
    %48 = vector.shape_cast %47 : vector<1x1x768xf32> to vector<1x768xf32>
    %49 = vector.broadcast %48 : vector<1x768xf32> to vector<16x768xf32>
    %50 = arith.mulf %46, %49 : vector<16x768xf32>
    %51 = arith.truncf %50 : vector<16x768xf32> to vector<16x768xbf16>
    %c112 = arith.constant 112 : index
    %c0_25 = arith.constant 0 : index
    %52 = vector.load %arg13[%c112, %c0_25] : memref<144x768xbf16, #tpu.memory_space<vmem>>, vector<16x768xbf16>
    tpu.vector_store %arg13[%c112, %c0_25], %51 {strides = array<i32>} : memref<144x768xbf16, #tpu.memory_space<vmem>>, vector<16x768xbf16>,
    %c751_i32 = arith.constant 751 : i32
    %53 = tpu.dynamic_rotate %1 by %c751_i32 dim 1 : vector<16x768xf32>, i32 -> vector<16x768xf32>
    %c8 = arith.constant 8 : index
    %c0_26 = arith.constant 0 : index
    %c0_27 = arith.constant 0 : index
    %54 = vector.load %arg4[%c8, %c0_26, %c0_27] : memref<9x1x768xf32, #tpu.memory_space<vmem>>, vector<1x1x768xf32>
    %55 = vector.shape_cast %54 : vector<1x1x768xf32> to vector<1x768xf32>
    %56 = vector.broadcast %55 : vector<1x768xf32> to vector<16x768xf32>
    %57 = arith.mulf %53, %56 : vector<16x768xf32>
    %58 = arith.truncf %57 : vector<16x768xf32> to vector<16x768xbf16>
    %c128 = arith.constant 128 : index
    %c0_28 = arith.constant 0 : index
    %59 = vector.load %arg13[%c128, %c0_28] : memref<144x768xbf16, #tpu.memory_space<vmem>>, vector<16x768xbf16>
    tpu.vector_store %arg13[%c128, %c0_28], %58 {strides = array<i32>} : memref<144x768xbf16, #tpu.memory_space<vmem>>, vector<16x768xbf16>,
    %c0_29 = arith.constant 0 : index
    %c0_30 = arith.constant 0 : index
    %60 = vector.load %arg2[%c0_29, %c0_30] : memref<16x144xbf16, #tpu.memory_space<vmem>>, vector<16x144xbf16>
    %c0_31 = arith.constant 0 : index
    %c0_32 = arith.constant 0 : index
    %61 = vector.load %arg13[%c0_31, %c0_32] : memref<144x768xbf16, #tpu.memory_space<vmem>>, vector<144x768xbf16>
    %cst = arith.constant dense<0.000000e+00> : vector<16x768xf32>
    %62 = tpu.matmul %60, %61, %cst {dimension_numbers = #tpu.dot_dimension_numbers<[1], [0], [0], [1], [0, 0, 1, 1], [], []>} : vector<16x144xbf16>, vector<144x768xbf16>, vector<16x768xf32> -> vector<16x768xf32>
    %c0_33 = arith.constant 0 : index
    %c0_34 = arith.constant 0 : index
    %63 = vector.load %arg3[%c0_33, %c0_34] : memref<16x1xf32, #tpu.memory_space<vmem>>, vector<16x1xf32>
    %64 = vector.broadcast %63 : vector<16x1xf32> to vector<16x768xf32>
    %65 = arith.addf %62, %64 : vector<16x768xf32>
    %cst_35 = arith.constant 0.000000e+00 : f32
    %66 = vector.broadcast %cst_35 : f32 to vector<16x768xf32>
    %67 = arith.maximumf %65, %66 : vector<16x768xf32>
    %c767_i32_36 = arith.constant 767 : i32
    %68 = tpu.dynamic_rotate %67 by %c767_i32_36 dim 1 : vector<16x768xf32>, i32 -> vector<16x768xf32>
    %69 = arith.maximumf %67, %68 : vector<16x768xf32>
    %c752_i32_37 = arith.constant 752 : i32
    %70 = tpu.dynamic_rotate %69 by %c752_i32_37 dim 1 : vector<16x768xf32>, i32 -> vector<16x768xf32>
    %71 = arith.maximumf %69, %70 : vector<16x768xf32>
    %c34_i32 = arith.constant 34 : i32
    %72 = tpu.dynamic_rotate %71 by %c34_i32 dim 1 : vector<16x768xf32>, i32 -> vector<16x768xf32>
    %c0_38 = arith.constant 0 : index
    %c0_39 = arith.constant 0 : index
    %c0_40 = arith.constant 0 : index
    %73 = vector.load %arg7[%c0_38, %c0_39, %c0_40] : memref<9x1x768xf32, #tpu.memory_space<vmem>>, vector<1x1x768xf32>
    %74 = vector.shape_cast %73 : vector<1x1x768xf32> to vector<1x768xf32>
    %75 = vector.broadcast %74 : vector<1x768xf32> to vector<16x768xf32>
    %76 = arith.mulf %72, %75 : vector<16x768xf32>
    %77 = arith.truncf %76 : vector<16x768xf32> to vector<16x768xbf16>
    %c0_41 = arith.constant 0 : index
    %c0_42 = arith.constant 0 : index
    %78 = vector.load %arg13[%c0_41, %c0_42] : memref<144x768xbf16, #tpu.memory_space<vmem>>, vector<16x768xbf16>
    tpu.vector_store %arg13[%c0_41, %c0_42], %77 {strides = array<i32>} : memref<144x768xbf16, #tpu.memory_space<vmem>>, vector<16x768xbf16>,
    %c32_i32 = arith.constant 32 : i32
    %79 = tpu.dynamic_rotate %71 by %c32_i32 dim 1 : vector<16x768xf32>, i32 -> vector<16x768xf32>
    %c1_43 = arith.constant 1 : index
    %c0_44 = arith.constant 0 : index
    %c0_45 = arith.constant 0 : index
    %80 = vector.load %arg7[%c1_43, %c0_44, %c0_45] : memref<9x1x768xf32, #tpu.memory_space<vmem>>, vector<1x1x768xf32>
    %81 = vector.shape_cast %80 : vector<1x1x768xf32> to vector<1x768xf32>
    %82 = vector.broadcast %81 : vector<1x768xf32> to vector<16x768xf32>
    %83 = arith.mulf %79, %82 : vector<16x768xf32>
    %84 = arith.truncf %83 : vector<16x768xf32> to vector<16x768xbf16>
    %c16_46 = arith.constant 16 : index
    %c0_47 = arith.constant 0 : index
    %85 = vector.load %arg13[%c16_46, %c0_47] : memref<144x768xbf16, #tpu.memory_space<vmem>>, vector<16x768xbf16>
    tpu.vector_store %arg13[%c16_46, %c0_47], %84 {strides = array<i32>} : memref<144x768xbf16, #tpu.memory_space<vmem>>, vector<16x768xbf16>,
    %c30_i32 = arith.constant 30 : i32
    %86 = tpu.dynamic_rotate %71 by %c30_i32 dim 1 : vector<16x768xf32>, i32 -> vector<16x768xf32>
    %c2_48 = arith.constant 2 : index
    %c0_49 = arith.constant 0 : index
    %c0_50 = arith.constant 0 : index
    %87 = vector.load %arg7[%c2_48, %c0_49, %c0_50] : memref<9x1x768xf32, #tpu.memory_space<vmem>>, vector<1x1x768xf32>
    %88 = vector.shape_cast %87 : vector<1x1x768xf32> to vector<1x768xf32>
    %89 = vector.broadcast %88 : vector<1x768xf32> to vector<16x768xf32>
    %90 = arith.mulf %86, %89 : vector<16x768xf32>
    %91 = arith.truncf %90 : vector<16x768xf32> to vector<16x768xbf16>
    %c32_51 = arith.constant 32 : index
    %c0_52 = arith.constant 0 : index
    %92 = vector.load %arg13[%c32_51, %c0_52] : memref<144x768xbf16, #tpu.memory_space<vmem>>, vector<16x768xbf16>
    tpu.vector_store %arg13[%c32_51, %c0_52], %91 {strides = array<i32>} : memref<144x768xbf16, #tpu.memory_space<vmem>>, vector<16x768xbf16>,
    %c2_i32 = arith.constant 2 : i32
    %93 = tpu.dynamic_rotate %71 by %c2_i32 dim 1 : vector<16x768xf32>, i32 -> vector<16x768xf32>
    %c3_53 = arith.constant 3 : index
    %c0_54 = arith.constant 0 : index
    %c0_55 = arith.constant 0 : index
    %94 = vector.load %arg7[%c3_53, %c0_54, %c0_55] : memref<9x1x768xf32, #tpu.memory_space<vmem>>, vector<1x1x768xf32>
    %95 = vector.shape_cast %94 : vector<1x1x768xf32> to vector<1x768xf32>
    %96 = vector.broadcast %95 : vector<1x768xf32> to vector<16x768xf32>
    %97 = arith.mulf %93, %96 : vector<16x768xf32>
    %98 = arith.truncf %97 : vector<16x768xf32> to vector<16x768xbf16>
    %c48_56 = arith.constant 48 : index
    %c0_57 = arith.constant 0 : index
    %99 = vector.load %arg13[%c48_56, %c0_57] : memref<144x768xbf16, #tpu.memory_space<vmem>>, vector<16x768xbf16>
    tpu.vector_store %arg13[%c48_56, %c0_57], %98 {strides = array<i32>} : memref<144x768xbf16, #tpu.memory_space<vmem>>, vector<16x768xbf16>,
    %100 = arith.truncf %71 : vector<16x768xf32> to vector<16x768xbf16>
    %c64_58 = arith.constant 64 : index
    %c0_59 = arith.constant 0 : index
    %101 = vector.load %arg13[%c64_58, %c0_59] : memref<144x768xbf16, #tpu.memory_space<vmem>>, vector<16x768xbf16>
    tpu.vector_store %arg13[%c64_58, %c0_59], %100 {strides = array<i32>} : memref<144x768xbf16, #tpu.memory_space<vmem>>, vector<16x768xbf16>,
    %c766_i32 = arith.constant 766 : i32
    %102 = tpu.dynamic_rotate %71 by %c766_i32 dim 1 : vector<16x768xf32>, i32 -> vector<16x768xf32>
    %c5_60 = arith.constant 5 : index
    %c0_61 = arith.constant 0 : index
    %c0_62 = arith.constant 0 : index
    %103 = vector.load %arg7[%c5_60, %c0_61, %c0_62] : memref<9x1x768xf32, #tpu.memory_space<vmem>>, vector<1x1x768xf32>
    %104 = vector.shape_cast %103 : vector<1x1x768xf32> to vector<1x768xf32>
    %105 = vector.broadcast %104 : vector<1x768xf32> to vector<16x768xf32>
    %106 = arith.mulf %102, %105 : vector<16x768xf32>
    %107 = arith.truncf %106 : vector<16x768xf32> to vector<16x768xbf16>
    %c80_63 = arith.constant 80 : index
    %c0_64 = arith.constant 0 : index
    %108 = vector.load %arg13[%c80_63, %c0_64] : memref<144x768xbf16, #tpu.memory_space<vmem>>, vector<16x768xbf16>
    tpu.vector_store %arg13[%c80_63, %c0_64], %107 {strides = array<i32>} : memref<144x768xbf16, #tpu.memory_space<vmem>>, vector<16x768xbf16>,
    %c738_i32 = arith.constant 738 : i32
    %109 = tpu.dynamic_rotate %71 by %c738_i32 dim 1 : vector<16x768xf32>, i32 -> vector<16x768xf32>
    %c6_65 = arith.constant 6 : index
    %c0_66 = arith.constant 0 : index
    %c0_67 = arith.constant 0 : index
    %110 = vector.load %arg7[%c6_65, %c0_66, %c0_67] : memref<9x1x768xf32, #tpu.memory_space<vmem>>, vector<1x1x768xf32>
    %111 = vector.shape_cast %110 : vector<1x1x768xf32> to vector<1x768xf32>
    %112 = vector.broadcast %111 : vector<1x768xf32> to vector<16x768xf32>
    %113 = arith.mulf %109, %112 : vector<16x768xf32>
    %114 = arith.truncf %113 : vector<16x768xf32> to vector<16x768xbf16>
    %c96_68 = arith.constant 96 : index
    %c0_69 = arith.constant 0 : index
    %115 = vector.load %arg13[%c96_68, %c0_69] : memref<144x768xbf16, #tpu.memory_space<vmem>>, vector<16x768xbf16>
    tpu.vector_store %arg13[%c96_68, %c0_69], %114 {strides = array<i32>} : memref<144x768xbf16, #tpu.memory_space<vmem>>, vector<16x768xbf16>,
    %c736_i32 = arith.constant 736 : i32
    %116 = tpu.dynamic_rotate %71 by %c736_i32 dim 1 : vector<16x768xf32>, i32 -> vector<16x768xf32>
    %c7_70 = arith.constant 7 : index
    %c0_71 = arith.constant 0 : index
    %c0_72 = arith.constant 0 : index
    %117 = vector.load %arg7[%c7_70, %c0_71, %c0_72] : memref<9x1x768xf32, #tpu.memory_space<vmem>>, vector<1x1x768xf32>
    %118 = vector.shape_cast %117 : vector<1x1x768xf32> to vector<1x768xf32>
    %119 = vector.broadcast %118 : vector<1x768xf32> to vector<16x768xf32>
    %120 = arith.mulf %116, %119 : vector<16x768xf32>
    %121 = arith.truncf %120 : vector<16x768xf32> to vector<16x768xbf16>
    %c112_73 = arith.constant 112 : index
    %c0_74 = arith.constant 0 : index
    %122 = vector.load %arg13[%c112_73, %c0_74] : memref<144x768xbf16, #tpu.memory_space<vmem>>, vector<16x768xbf16>
    tpu.vector_store %arg13[%c112_73, %c0_74], %121 {strides = array<i32>} : memref<144x768xbf16, #tpu.memory_space<vmem>>, vector<16x768xbf16>,
    %c734_i32 = arith.constant 734 : i32
    %123 = tpu.dynamic_rotate %71 by %c734_i32 dim 1 : vector<16x768xf32>, i32 -> vector<16x768xf32>
    %c8_75 = arith.constant 8 : index
    %c0_76 = arith.constant 0 : index
    %c0_77 = arith.constant 0 : index
    %124 = vector.load %arg7[%c8_75, %c0_76, %c0_77] : memref<9x1x768xf32, #tpu.memory_space<vmem>>, vector<1x1x768xf32>
    %125 = vector.shape_cast %124 : vector<1x1x768xf32> to vector<1x768xf32>
    %126 = vector.broadcast %125 : vector<1x768xf32> to vector<16x768xf32>
    %127 = arith.mulf %123, %126 : vector<16x768xf32>
    %128 = arith.truncf %127 : vector<16x768xf32> to vector<16x768xbf16>
    %c128_78 = arith.constant 128 : index
    %c0_79 = arith.constant 0 : index
    %129 = vector.load %arg13[%c128_78, %c0_79] : memref<144x768xbf16, #tpu.memory_space<vmem>>, vector<16x768xbf16>
    tpu.vector_store %arg13[%c128_78, %c0_79], %128 {strides = array<i32>} : memref<144x768xbf16, #tpu.memory_space<vmem>>, vector<16x768xbf16>,
    %c0_80 = arith.constant 0 : index
    %c0_81 = arith.constant 0 : index
    %130 = vector.load %arg5[%c0_80, %c0_81] : memref<16x144xbf16, #tpu.memory_space<vmem>>, vector<16x144xbf16>
    %c0_82 = arith.constant 0 : index
    %c0_83 = arith.constant 0 : index
    %131 = vector.load %arg13[%c0_82, %c0_83] : memref<144x768xbf16, #tpu.memory_space<vmem>>, vector<144x768xbf16>
    %cst_84 = arith.constant dense<0.000000e+00> : vector<16x768xf32>
    %132 = tpu.matmul %130, %131, %cst_84 {dimension_numbers = #tpu.dot_dimension_numbers<[1], [0], [0], [1], [0, 0, 1, 1], [], []>} : vector<16x144xbf16>, vector<144x768xbf16>, vector<16x768xf32> -> vector<16x768xf32>
    %c0_85 = arith.constant 0 : index
    %c0_86 = arith.constant 0 : index
    %133 = vector.load %arg6[%c0_85, %c0_86] : memref<16x1xf32, #tpu.memory_space<vmem>>, vector<16x1xf32>
    %134 = vector.broadcast %133 : vector<16x1xf32> to vector<16x768xf32>
    %135 = arith.addf %132, %134 : vector<16x768xf32>
    %cst_87 = arith.constant 0.000000e+00 : f32
    %136 = vector.broadcast %cst_87 : f32 to vector<16x768xf32>
    %137 = arith.maximumf %135, %136 : vector<16x768xf32>
    %c766_i32_88 = arith.constant 766 : i32
    %138 = tpu.dynamic_rotate %137 by %c766_i32_88 dim 1 : vector<16x768xf32>, i32 -> vector<16x768xf32>
    %139 = arith.maximumf %137, %138 : vector<16x768xf32>
    %c736_i32_89 = arith.constant 736 : i32
    %140 = tpu.dynamic_rotate %139 by %c736_i32_89 dim 1 : vector<16x768xf32>, i32 -> vector<16x768xf32>
    %141 = arith.maximumf %139, %140 : vector<16x768xf32>
    %c68_i32 = arith.constant 68 : i32
    %142 = tpu.dynamic_rotate %141 by %c68_i32 dim 1 : vector<16x768xf32>, i32 -> vector<16x768xf32>
    %c0_90 = arith.constant 0 : index
    %c0_91 = arith.constant 0 : index
    %c0_92 = arith.constant 0 : index
    %143 = vector.load %arg10[%c0_90, %c0_91, %c0_92] : memref<9x1x768xf32, #tpu.memory_space<vmem>>, vector<1x1x768xf32>
    %144 = vector.shape_cast %143 : vector<1x1x768xf32> to vector<1x768xf32>
    %145 = vector.broadcast %144 : vector<1x768xf32> to vector<16x768xf32>
    %146 = arith.mulf %142, %145 : vector<16x768xf32>
    %147 = arith.truncf %146 : vector<16x768xf32> to vector<16x768xbf16>
    %c0_93 = arith.constant 0 : index
    %c0_94 = arith.constant 0 : index
    %148 = vector.load %arg13[%c0_93, %c0_94] : memref<144x768xbf16, #tpu.memory_space<vmem>>, vector<16x768xbf16>
    tpu.vector_store %arg13[%c0_93, %c0_94], %147 {strides = array<i32>} : memref<144x768xbf16, #tpu.memory_space<vmem>>, vector<16x768xbf16>,
    %c64_i32 = arith.constant 64 : i32
    %149 = tpu.dynamic_rotate %141 by %c64_i32 dim 1 : vector<16x768xf32>, i32 -> vector<16x768xf32>
    %c1_95 = arith.constant 1 : index
    %c0_96 = arith.constant 0 : index
    %c0_97 = arith.constant 0 : index
    %150 = vector.load %arg10[%c1_95, %c0_96, %c0_97] : memref<9x1x768xf32, #tpu.memory_space<vmem>>, vector<1x1x768xf32>
    %151 = vector.shape_cast %150 : vector<1x1x768xf32> to vector<1x768xf32>
    %152 = vector.broadcast %151 : vector<1x768xf32> to vector<16x768xf32>
    %153 = arith.mulf %149, %152 : vector<16x768xf32>
    %154 = arith.truncf %153 : vector<16x768xf32> to vector<16x768xbf16>
    %c16_98 = arith.constant 16 : index
    %c0_99 = arith.constant 0 : index
    %155 = vector.load %arg13[%c16_98, %c0_99] : memref<144x768xbf16, #tpu.memory_space<vmem>>, vector<16x768xbf16>
    tpu.vector_store %arg13[%c16_98, %c0_99], %154 {strides = array<i32>} : memref<144x768xbf16, #tpu.memory_space<vmem>>, vector<16x768xbf16>,
    %c60_i32 = arith.constant 60 : i32
    %156 = tpu.dynamic_rotate %141 by %c60_i32 dim 1 : vector<16x768xf32>, i32 -> vector<16x768xf32>
    %c2_100 = arith.constant 2 : index
    %c0_101 = arith.constant 0 : index
    %c0_102 = arith.constant 0 : index
    %157 = vector.load %arg10[%c2_100, %c0_101, %c0_102] : memref<9x1x768xf32, #tpu.memory_space<vmem>>, vector<1x1x768xf32>
    %158 = vector.shape_cast %157 : vector<1x1x768xf32> to vector<1x768xf32>
    %159 = vector.broadcast %158 : vector<1x768xf32> to vector<16x768xf32>
    %160 = arith.mulf %156, %159 : vector<16x768xf32>
    %161 = arith.truncf %160 : vector<16x768xf32> to vector<16x768xbf16>
    %c32_103 = arith.constant 32 : index
    %c0_104 = arith.constant 0 : index
    %162 = vector.load %arg13[%c32_103, %c0_104] : memref<144x768xbf16, #tpu.memory_space<vmem>>, vector<16x768xbf16>
    tpu.vector_store %arg13[%c32_103, %c0_104], %161 {strides = array<i32>} : memref<144x768xbf16, #tpu.memory_space<vmem>>, vector<16x768xbf16>,
    %c4_i32 = arith.constant 4 : i32
    %163 = tpu.dynamic_rotate %141 by %c4_i32 dim 1 : vector<16x768xf32>, i32 -> vector<16x768xf32>
    %c3_105 = arith.constant 3 : index
    %c0_106 = arith.constant 0 : index
    %c0_107 = arith.constant 0 : index
    %164 = vector.load %arg10[%c3_105, %c0_106, %c0_107] : memref<9x1x768xf32, #tpu.memory_space<vmem>>, vector<1x1x768xf32>
    %165 = vector.shape_cast %164 : vector<1x1x768xf32> to vector<1x768xf32>
    %166 = vector.broadcast %165 : vector<1x768xf32> to vector<16x768xf32>
    %167 = arith.mulf %163, %166 : vector<16x768xf32>
    %168 = arith.truncf %167 : vector<16x768xf32> to vector<16x768xbf16>
    %c48_108 = arith.constant 48 : index
    %c0_109 = arith.constant 0 : index
    %169 = vector.load %arg13[%c48_108, %c0_109] : memref<144x768xbf16, #tpu.memory_space<vmem>>, vector<16x768xbf16>
    tpu.vector_store %arg13[%c48_108, %c0_109], %168 {strides = array<i32>} : memref<144x768xbf16, #tpu.memory_space<vmem>>, vector<16x768xbf16>,
    %170 = arith.truncf %141 : vector<16x768xf32> to vector<16x768xbf16>
    %c64_110 = arith.constant 64 : index
    %c0_111 = arith.constant 0 : index
    %171 = vector.load %arg13[%c64_110, %c0_111] : memref<144x768xbf16, #tpu.memory_space<vmem>>, vector<16x768xbf16>
    tpu.vector_store %arg13[%c64_110, %c0_111], %170 {strides = array<i32>} : memref<144x768xbf16, #tpu.memory_space<vmem>>, vector<16x768xbf16>,
    %c764_i32 = arith.constant 764 : i32
    %172 = tpu.dynamic_rotate %141 by %c764_i32 dim 1 : vector<16x768xf32>, i32 -> vector<16x768xf32>
    %c5_112 = arith.constant 5 : index
    %c0_113 = arith.constant 0 : index
    %c0_114 = arith.constant 0 : index
    %173 = vector.load %arg10[%c5_112, %c0_113, %c0_114] : memref<9x1x768xf32, #tpu.memory_space<vmem>>, vector<1x1x768xf32>
    %174 = vector.shape_cast %173 : vector<1x1x768xf32> to vector<1x768xf32>
    %175 = vector.broadcast %174 : vector<1x768xf32> to vector<16x768xf32>
    %176 = arith.mulf %172, %175 : vector<16x768xf32>
    %177 = arith.truncf %176 : vector<16x768xf32> to vector<16x768xbf16>
    %c80_115 = arith.constant 80 : index
    %c0_116 = arith.constant 0 : index
    %178 = vector.load %arg13[%c80_115, %c0_116] : memref<144x768xbf16, #tpu.memory_space<vmem>>, vector<16x768xbf16>
    tpu.vector_store %arg13[%c80_115, %c0_116], %177 {strides = array<i32>} : memref<144x768xbf16, #tpu.memory_space<vmem>>, vector<16x768xbf16>,
    %c708_i32 = arith.constant 708 : i32
    %179 = tpu.dynamic_rotate %141 by %c708_i32 dim 1 : vector<16x768xf32>, i32 -> vector<16x768xf32>
    %c6_117 = arith.constant 6 : index
    %c0_118 = arith.constant 0 : index
    %c0_119 = arith.constant 0 : index
    %180 = vector.load %arg10[%c6_117, %c0_118, %c0_119] : memref<9x1x768xf32, #tpu.memory_space<vmem>>, vector<1x1x768xf32>
    %181 = vector.shape_cast %180 : vector<1x1x768xf32> to vector<1x768xf32>
    %182 = vector.broadcast %181 : vector<1x768xf32> to vector<16x768xf32>
    %183 = arith.mulf %179, %182 : vector<16x768xf32>
    %184 = arith.truncf %183 : vector<16x768xf32> to vector<16x768xbf16>
    %c96_120 = arith.constant 96 : index
    %c0_121 = arith.constant 0 : index
    %185 = vector.load %arg13[%c96_120, %c0_121] : memref<144x768xbf16, #tpu.memory_space<vmem>>, vector<16x768xbf16>
    tpu.vector_store %arg13[%c96_120, %c0_121], %184 {strides = array<i32>} : memref<144x768xbf16, #tpu.memory_space<vmem>>, vector<16x768xbf16>,
    %c704_i32 = arith.constant 704 : i32
    %186 = tpu.dynamic_rotate %141 by %c704_i32 dim 1 : vector<16x768xf32>, i32 -> vector<16x768xf32>
    %c7_122 = arith.constant 7 : index
    %c0_123 = arith.constant 0 : index
    %c0_124 = arith.constant 0 : index
    %187 = vector.load %arg10[%c7_122, %c0_123, %c0_124] : memref<9x1x768xf32, #tpu.memory_space<vmem>>, vector<1x1x768xf32>
    %188 = vector.shape_cast %187 : vector<1x1x768xf32> to vector<1x768xf32>
    %189 = vector.broadcast %188 : vector<1x768xf32> to vector<16x768xf32>
    %190 = arith.mulf %186, %189 : vector<16x768xf32>
    %191 = arith.truncf %190 : vector<16x768xf32> to vector<16x768xbf16>
    %c112_125 = arith.constant 112 : index
    %c0_126 = arith.constant 0 : index
    %192 = vector.load %arg13[%c112_125, %c0_126] : memref<144x768xbf16, #tpu.memory_space<vmem>>, vector<16x768xbf16>
    tpu.vector_store %arg13[%c112_125, %c0_126], %191 {strides = array<i32>} : memref<144x768xbf16, #tpu.memory_space<vmem>>, vector<16x768xbf16>,
    %c700_i32 = arith.constant 700 : i32
    %193 = tpu.dynamic_rotate %141 by %c700_i32 dim 1 : vector<16x768xf32>, i32 -> vector<16x768xf32>
    %c8_127 = arith.constant 8 : index
    %c0_128 = arith.constant 0 : index
    %c0_129 = arith.constant 0 : index
    %194 = vector.load %arg10[%c8_127, %c0_128, %c0_129] : memref<9x1x768xf32, #tpu.memory_space<vmem>>, vector<1x1x768xf32>
    %195 = vector.shape_cast %194 : vector<1x1x768xf32> to vector<1x768xf32>
    %196 = vector.broadcast %195 : vector<1x768xf32> to vector<16x768xf32>
    %197 = arith.mulf %193, %196 : vector<16x768xf32>
    %198 = arith.truncf %197 : vector<16x768xf32> to vector<16x768xbf16>
    %c128_130 = arith.constant 128 : index
    %c0_131 = arith.constant 0 : index
    %199 = vector.load %arg13[%c128_130, %c0_131] : memref<144x768xbf16, #tpu.memory_space<vmem>>, vector<16x768xbf16>
    tpu.vector_store %arg13[%c128_130, %c0_131], %198 {strides = array<i32>} : memref<144x768xbf16, #tpu.memory_space<vmem>>, vector<16x768xbf16>,
    %c0_132 = arith.constant 0 : index
    %c0_133 = arith.constant 0 : index
    %200 = vector.load %arg8[%c0_132, %c0_133] : memref<16x144xbf16, #tpu.memory_space<vmem>>, vector<16x144xbf16>
    %c0_134 = arith.constant 0 : index
    %c0_135 = arith.constant 0 : index
    %201 = vector.load %arg13[%c0_134, %c0_135] : memref<144x768xbf16, #tpu.memory_space<vmem>>, vector<144x768xbf16>
    %cst_136 = arith.constant dense<0.000000e+00> : vector<16x768xf32>
    %202 = tpu.matmul %200, %201, %cst_136 {dimension_numbers = #tpu.dot_dimension_numbers<[1], [0], [0], [1], [0, 0, 1, 1], [], []>} : vector<16x144xbf16>, vector<144x768xbf16>, vector<16x768xf32> -> vector<16x768xf32>
    %c0_137 = arith.constant 0 : index
    %c0_138 = arith.constant 0 : index
    %203 = vector.load %arg9[%c0_137, %c0_138] : memref<16x1xf32, #tpu.memory_space<vmem>>, vector<16x1xf32>
    %204 = vector.broadcast %203 : vector<16x1xf32> to vector<16x768xf32>
    %205 = arith.addf %202, %204 : vector<16x768xf32>
    %cst_139 = arith.constant 0.000000e+00 : f32
    %206 = vector.broadcast %cst_139 : f32 to vector<16x768xf32>
    %207 = arith.maximumf %205, %206 : vector<16x768xf32>
    %c764_i32_140 = arith.constant 764 : i32
    %208 = tpu.dynamic_rotate %207 by %c764_i32_140 dim 1 : vector<16x768xf32>, i32 -> vector<16x768xf32>
    %209 = arith.maximumf %207, %208 : vector<16x768xf32>
    %c704_i32_141 = arith.constant 704 : i32
    %210 = tpu.dynamic_rotate %209 by %c704_i32_141 dim 1 : vector<16x768xf32>, i32 -> vector<16x768xf32>
    %211 = arith.maximumf %209, %210 : vector<16x768xf32>
    %212 = arith.truncf %211 : vector<16x768xf32> to vector<16x768xbf16>
    %c0_142 = arith.constant 0 : index
    %c0_143 = arith.constant 0 : index
    %213 = vector.load %arg11[%c0_142, %c0_143] : memref<768x3xbf16, #tpu.memory_space<vmem>>, vector<768x3xbf16>
    %cst_144 = arith.constant dense<0.000000e+00> : vector<16x3xf32>
    %214 = tpu.matmul %212, %213, %cst_144 {dimension_numbers = #tpu.dot_dimension_numbers<[1], [0], [0], [1], [0, 0, 1, 1], [], []>} : vector<16x768xbf16>, vector<768x3xbf16>, vector<16x3xf32> -> vector<16x3xf32>
    %cst_145 = arith.constant 2.500000e-01 : f32
    %215 = vector.broadcast %cst_145 : f32 to vector<16x3xf32>
    %216 = arith.mulf %214, %215 : vector<16x3xf32>
    %c0_146 = arith.constant 0 : index
    %c0_147 = arith.constant 0 : index
    %c0_148 = arith.constant 0 : index
    %217 = vector.load %arg12[%c0_146, %c0_147, %c0_148] : memref<1x16x3xf32, #tpu.memory_space<vmem>>, vector<1x16x3xf32>
    %218 = vector.shape_cast %217 : vector<1x16x3xf32> to vector<16x3xf32>
    %219 = vector.shape_cast %216 : vector<16x3xf32> to vector<1x16x3xf32>
    tpu.vector_store %arg12[%c0_146, %c0_147, %c0_148], %219 {strides = array<i32>} : memref<1x16x3xf32, #tpu.memory_space<vmem>>, vector<1x16x3xf32>,
    return
  }
  func.func @transform_0(%arg0: i32) -> (i32, i32, i32) {
    %c0_i32 = arith.constant 0 : i32
    %c0_i32_0 = arith.constant 0 : i32
    %c0_i32_1 = arith.constant 0 : i32
    return %arg0, %c0_i32, %c0_i32_0 : i32, i32, i32
  }
  func.func @transform_1(%arg0: i32) -> (i32, i32) {
    %c0_i32 = arith.constant 0 : i32
    %c0_i32_0 = arith.constant 0 : i32
    %c0_i32_1 = arith.constant 0 : i32
    return %c0_i32, %c0_i32_0 : i32, i32
  }
  func.func @transform_2(%arg0: i32) -> (i32, i32) {
    %c0_i32 = arith.constant 0 : i32
    %c0_i32_0 = arith.constant 0 : i32
    %c0_i32_1 = arith.constant 0 : i32
    return %c0_i32, %c0_i32_0 : i32, i32
  }
  func.func @transform_3(%arg0: i32) -> (i32, i32, i32) {
    %c0_i32 = arith.constant 0 : i32
    %c0_i32_0 = arith.constant 0 : i32
    %c0_i32_1 = arith.constant 0 : i32
    %c0_i32_2 = arith.constant 0 : i32
    return %c0_i32, %c0_i32_0, %c0_i32_1 : i32, i32, i32
  }
  func.func @transform_4(%arg0: i32) -> (i32, i32) {
    %c0_i32 = arith.constant 0 : i32
    %c0_i32_0 = arith.constant 0 : i32
    %c0_i32_1 = arith.constant 0 : i32
    return %c0_i32, %c0_i32_0 : i32, i32
  }
  func.func @transform_5(%arg0: i32) -> (i32, i32) {
    %c0_i32 = arith.constant 0 : i32
    %c0_i32_0 = arith.constant 0 : i32
    %c0_i32_1 = arith.constant 0 : i32
    return %c0_i32, %c0_i32_0 : i32, i32
  }
  func.func @transform_6(%arg0: i32) -> (i32, i32, i32) {
    %c0_i32 = arith.constant 0 : i32
    %c0_i32_0 = arith.constant 0 : i32
    %c0_i32_1 = arith.constant 0 : i32
    %c0_i32_2 = arith.constant 0 : i32
    return %c0_i32, %c0_i32_0, %c0_i32_1 : i32, i32, i32
  }
  func.func @transform_7(%arg0: i32) -> (i32, i32) {
    %c0_i32 = arith.constant 0 : i32
    %c0_i32_0 = arith.constant 0 : i32
    %c0_i32_1 = arith.constant 0 : i32
    return %c0_i32, %c0_i32_0 : i32, i32
  }
  func.func @transform_8(%arg0: i32) -> (i32, i32) {
    %c0_i32 = arith.constant 0 : i32
    %c0_i32_0 = arith.constant 0 : i32
    %c0_i32_1 = arith.constant 0 : i32
    return %c0_i32, %c0_i32_0 : i32, i32
  }
  func.func @transform_9(%arg0: i32) -> (i32, i32, i32) {
    %c0_i32 = arith.constant 0 : i32
    %c0_i32_0 = arith.constant 0 : i32
    %c0_i32_1 = arith.constant 0 : i32
    %c0_i32_2 = arith.constant 0 : i32
    return %c0_i32, %c0_i32_0, %c0_i32_1 : i32, i32, i32
  }
  func.func @transform_10(%arg0: i32) -> (i32, i32) {
    %c0_i32 = arith.constant 0 : i32
    %c0_i32_0 = arith.constant 0 : i32
    %c0_i32_1 = arith.constant 0 : i32
    return %c0_i32, %c0_i32_0 : i32, i32
  }
  func.func @transform_11(%arg0: i32) -> (i32, i32, i32) {
    %c0_i32 = arith.constant 0 : i32
    %c0_i32_0 = arith.constant 0 : i32
    %c0_i32_1 = arith.constant 0 : i32
    return %arg0, %c0_i32, %c0_i32_0 : i32, i32, i32
  }
}

</mosaic_0001>

<bundles_post_ra>
// kernel: prototypical_network_forward.1
= control target key start
LH: loop header
LB: loop body
LE: loop exit
PB: predicated region body
PF: predicated region fallthrough
CT: control target
= control target key end

     0   :  { %s5875_s17 = smov 0   ;;  %s9021_s0 = inlined_call_operand.vmem [shape: f32[2,16,768], index: 0, kind: input, shape index: {}]   ;;  %s9022_s1 = inlined_call_operand.vmem [shape: bf16[16,144], index: 1, kind: input, shape index: {}]   ;;  %s9023_s2 = inlined_call_operand.vmem [shape: f32[16,1], index: 2, kind: input, shape index: {}]   ;;  %s9024_s3 = inlined_call_operand.vmem [shape: f32[9,1,768], index: 3, kind: input, shape index: {}]   ;;  %s9025_s4 = inlined_call_operand.vmem [shape: bf16[16,144], index: 4, kind: input, shape index: {}]   ;;  %s9026_s5 = inlined_call_operand.vmem [shape: f32[16,1], index: 5, kind: input, shape index: {}]   ;;  %s9027_s6 = inlined_call_operand.vmem [shape: f32[9,1,768], index: 6, kind: input, shape index: {}]   ;;  %s9028_s7 = inlined_call_operand.vmem [shape: bf16[16,144], index: 7, kind: input, shape index: {}]   ;;  %s9029_s8 = inlined_call_operand.vmem [shape: f32[16,1], index: 8, kind: input, shape index: {}]   ;;  %s9030_s9 = inlined_call_operand.vmem [shape: f32[9,1,768], index: 9, kind: input, shape index: {}]   ;;  %s9031_s10 = inlined_call_operand.vmem [shape: bf16[768,3], index: 10, kind: input, shape index: {}]   ;;  %s9032_s11 = inlined_call_operand.vmem [shape: f32[2,16,3], index: 11, kind: output, shape index: {}]  }
   0x1 LB: > { %s4561_s18 = sadd.s32 4294967295, %s5791_s17   ;;  %p4565_p0 = scmp.ge.s32.totalorder %s5791_s17, 1  ;;  %s5791_s17 = sphi %s5875_s17, %s21_s17  }
   0x2   : > { %p337_p1 = scmp.lt.s32.totalorder %s5791_s17, 3 }
   0x4   : > { %p338_p2 = pnand %p4565_p0, %p337_p1 }
   0x6   : > { %341 = sbr.rel (%p338_p2) target bundleno = 2339 (0x923), region = 64 }
   0xb   : > { %p377_p3 = scmp.lt.s32.totalorder %s4561_s18, 1  ;;  %s5793_s23 = smov 112   ;;  %v424_v14 = vlaneseq  ;;  %v6020_v17 = vld [vmem:[%s9024_s3 + $0x2a] sm:$0x3f]  ;;  %v6072_v39 = vld [vmem:[%s9024_s3 + $0x24] sm:$0x3f] }
   0xc   : > { %s5794_s24 = smov 113   ;;  %s5795_s25 = smov 127   ;;  %v910_v18 = vperm.slane %v6020_v17, 1  ;;  %v909_v19 = vperm.slane %v6020_v17, 0  ;;  %v833_v40 = vperm.slane %v6072_v39, 0  ;;  %v834_v41 = vperm.slane %v6072_v39, 1 }
   0xd   : > { %s9126_s18 = smov (!%p377_p3, %s4561_s18), 1  ;;  %s5796_s26 = smov 111   ;;  %v6015_v16 = vand.u32 127, %v424_v14  ;;  %v6114_v14 = vld [vmem:[%s9024_s3 + $0x1e] sm:$0x3f]  ;;  %vm1368_vm8 = vcmask 130048  }
   0xe   : > { %s5691_s19 = smul.u32 96, %s9126_s18  ;;  %s5797_s27 = smov 1  }
   0xf   : > { %s5798_s30 = smov 15   ;;  %vm893_vm0 = vcmp.lt.s32.totalorder %v6015_v16, 112  ;;  %vm817_vm1 = vcmp.lt.s32.totalorder %v6015_v16, 113  ;;  %s5799_s14 = smov 16   ;;  %vm741_vm2 = vcmp.lt.s32.totalorder %v6015_v16, 127  ;;  %vm969_vm3 = vcmp.lt.s32.totalorder %v6015_v16, 111 }
  0x10   : > { %s5889_s22 = scalar_lea.vmem %s9021_s0, %s5691_s19  ;;  %s5800_s19 = smov 17   ;;  %vm653_vm4 = vcmp.lt.s32.totalorder %v6015_v16, 1  ;;  %vm577_vm5 = vcmp.lt.s32.totalorder %v6015_v16, 15  ;;  %vm501_vm6 = vcmp.lt.s32.totalorder %v6015_v16, 16  ;;  %vm426_vm7 = vcmp.lt.s32.totalorder %v6015_v16, 17 }
  0x11   : > { %v5892_v0 = vld [vmem:[%s5889_s22 + $0x10] sm:$0xff]  ;;  %v5895_v1 = vld [vmem:[%s5889_s22 + $0x8] sm:$0xff]  ;;  %v5898_v2 = vld [vmem:[%s5889_s22] sm:$0xff]  ;;  %s5805_s12 = smov 98   ;;  %s5806_s13 = smov 126   ;;  %vm2139_vm9 = vcmp.lt.s32.totalorder %v6015_v16, 96 }
  0x12   : > { %877 = vrot.lane.b32.xlu2 %v5892_v0, %s5793_s23  ;;  %873 = vrot.lane.b32.xlu1 %v5895_v1, %s5793_s23  ;;  %v5907_v3 = vld [vmem:[%s5889_s22 + $0x40] sm:$0xff]  ;;  %v5910_v4 = vld [vmem:[%s5889_s22 + $0x38] sm:$0xff]  ;;  %s5809_s15 = smov 94   ;;  %vm2063_vm10 = vcmp.lt.s32.totalorder %v6015_v16, 98  ;;  %vm1987_vm11 = vcmp.lt.s32.totalorder %v6015_v16, 126  ;;  %vm2215_vm12 = vcmp.lt.s32.totalorder %v6015_v16, 94 }
  0x13   : > { %869 = vrot.lane.b32.xlu0 %v5898_v2, %s5793_s23  ;;  %v5913_v5 = vld [vmem:[%s5889_s22 + $0x30] sm:$0xff]  ;;  %v5946_v6 = vld [vmem:[%s5889_s22 + $0x20] sm:$0xff]  ;;  %v5949_v7 = vld [vmem:[%s5889_s22 + $0x48] sm:$0xff]  ;;  %vm1899_vm13 = vcmp.lt.s32.totalorder %v6015_v16, 2  ;;  %vm1823_vm14 = vcmp.lt.s32.totalorder %v6015_v16, 30  ;;  %vm1747_vm15 = vcmp.lt.s32.totalorder %v6015_v16, 32 }
  0x14   : > { %v5952_v8 = vld [vmem:[%s5889_s22 + $0x18] sm:$0xff]  ;;  %v5961_v9 = vld [vmem:[%s5889_s22 + $0x50] sm:$0xff]  ;;  %v5999_v12 = vld [vmem:[%s5889_s22 + $0x28] sm:$0xff]  ;;  %s5811_s20 = smov 4   ;;  %s5813_s21 = smov 60  }
  0x15   : > { %v5996_v11 = vld [vmem:[%s5889_s22 + $0x58] sm:$0xff]  ;;  %s5814_s22 = smov 124  }
  0x1a   : > { %879 = vrot.lane.b32.xlu2 %v5907_v3, %s5793_s23  ;;  %875 = vrot.lane.b32.xlu1 %v5910_v4, %s5793_s23 }
  0x1b   : > { %871 = vrot.lane.b32.xlu0 %v5913_v5, %s5793_s23 }
  0x22   : > { %797 = vrot.lane.b32.xlu2 %v5895_v1, %s5794_s24  ;;  %795 = vrot.lane.b32.xlu1 %v5913_v5, %s5794_s24 }
  0x23   : > { %793 = vrot.lane.b32.xlu0 %v5898_v2, %s5794_s24 }
  0x2a   : > { %803 = vrot.lane.b32.xlu2 %v5907_v3, %s5794_s24  ;;  %801 = vrot.lane.b32.xlu1 %v5892_v0, %s5794_s24 }
  0x2b   : > { %799 = vrot.lane.b32.xlu0 %v5910_v4, %s5794_s24 }
  0x32   : > { %721 = vrot.lane.b32.xlu2 %v5895_v1, %s5795_s25  ;;  %719 = vrot.lane.b32.xlu1 %v5913_v5, %s5795_s25 }
  0x33   : > { %717 = vrot.lane.b32.xlu0 %v5898_v2, %s5795_s25 }
  0x3a   : > { %727 = vrot.lane.b32.xlu2 %v5907_v3, %s5795_s25  ;;  %725 = vrot.lane.b32.xlu1 %v5892_v0, %s5795_s25 }
  0x3b   : > { %723 = vrot.lane.b32.xlu0 %v5910_v4, %s5795_s25 }
  0x42   : > { %885 = vrot.lane.b32.xlu2 %v5946_v6, %s5793_s23  ;;  %883 = vrot.lane.b32.xlu1 %v5949_v7, %s5793_s23 }
  0x43   : > { %881 = vrot.lane.b32.xlu0 %v5952_v8, %s5793_s23 }
  0x4a   : > { %807 = vrot.lane.b32.xlu2 %v5949_v7, %s5794_s24  ;;  %805 = vrot.lane.b32.xlu1 %v5952_v8, %s5794_s24 }
  0x4b   : > { %887 = vrot.lane.b32.xlu0 %v5961_v9, %s5793_s23 }
  0x52   : > { %811 = vrot.lane.b32.xlu1 %v5961_v9, %s5794_s24  ;;  %945 = vrot.lane.b32.xlu2 %v5898_v2, %s5796_s26 }
  0x53   : > { %809 = vrot.lane.b32.xlu0 %v5946_v6, %s5794_s24 }
  0x5a   : > { %949 = vrot.lane.b32.xlu1 %v5895_v1, %s5796_s26  ;;  %951 = vrot.lane.b32.xlu2 %v5910_v4, %s5796_s26 }
  0x5b   : > { %947 = vrot.lane.b32.xlu0 %v5913_v5, %s5796_s26 }
  0x62   : > { %955 = vrot.lane.b32.xlu1 %v5907_v3, %s5796_s26  ;;  %629 = vrot.lane.b32.xlu2 %v5898_v2, %s5797_s27 }
  0x63   : > { %953 = vrot.lane.b32.xlu0 %v5892_v0, %s5796_s26 }
  0x6a   : > { %633 = vrot.lane.b32.xlu1 %v5895_v1, %s5797_s27  ;;  %635 = vrot.lane.b32.xlu2 %v5910_v4, %s5797_s27 }
  0x6b   : > { %631 = vrot.lane.b32.xlu0 %v5913_v5, %s5797_s27 }
  0x6c   : > { %v5993_v10 = vpop.permute.xlu2 %877 }
  0x72   : > { %651 = vrot.lane.b32.xlu1 %v5996_v11, %s5797_s27  ;;  %729 = vrot.lane.b32.xlu2 %v5952_v8, %s5795_s25 }
  0x73   : > { %649 = vrot.lane.b32.xlu0 %v5999_v12, %s5797_s27 }
  0x74   : > { %v6007_v13 = vpop.permute.xlu2 %879 }
  0x7a   : > { %733 = vrot.lane.b32.xlu1 %v5946_v6, %s5795_s25  ;;  %735 = vrot.lane.b32.xlu2 %v5961_v9, %s5795_s25 }
  0x7b   : > { %731 = vrot.lane.b32.xlu0 %v5949_v7, %s5795_s25 }
  0x7c   : > { %v798_v15 = vpop.permute.xlu2 %797 }
  0x82   : > { %891 = vrot.lane.b32.xlu1 %v5996_v11, %s5793_s23  ;;  %553 = vrot.lane.b32.xlu2 %v5898_v2, %s5798_s30 }
  0x83   : > { %889 = vrot.lane.b32.xlu0 %v5999_v12, %s5793_s23 }
  0x84   : > { %v6031_v20 = vpop.permute.xlu2 %803  ;;  %v874_v21 = vpop.permute.xlu1 %873 }
  0x85   : > { %v900_v22 = vsel %vm893_vm0, %v874_v21, %v5993_v10  ;;  %v6036_v23 = vpop.permute.xlu0 %869 }
  0x86   : > { %v922_v24 = vmul.f32 %v910_v18, %v900_v22  ;;  %v902_v25 = vsel %vm893_vm0, %v6036_v23, %v874_v21  ;;  %v758_v21 = vperm.slane %v6114_v14, 1 }
  0x87   : > { %v921_v26 = vmul.f32 %v909_v19, %v902_v25 }
  0x89   : > { %v933_v27 = vpack.c.bf16 %v922_v24, %v921_v26 }
  0x8a   : > { %557 = vrot.lane.b32.xlu1 %v5895_v1, %s5798_s30  ;;  %559 = vrot.lane.b32.xlu2 %v5910_v4, %s5798_s30 }
  0x8b   : > { %939 = vst [vmem:[#allocation2 + $0x150] sm:$0xff] %v933_v27  ;;  %555 = vrot.lane.b32.xlu0 %v5913_v5, %s5798_s30 }
  0x8c   : > { %v6047_v28 = vpop.permute.xlu2 %721  ;;  %v876_v29 = vpop.permute.xlu1 %875 }
  0x8d   : > { %v901_v30 = vsel %vm893_vm0, %v876_v29, %v6007_v13  ;;  %v6052_v31 = vpop.permute.xlu0 %871 }
  0x8e   : > { %v928_v32 = vmul.f32 %v910_v18, %v901_v30  ;;  %v903_v33 = vsel %vm893_vm0, %v6052_v31, %v876_v29 }
  0x8f   : > { %v927_v34 = vmul.f32 %v909_v19, %v903_v33  ;;  %v757_v19 = vperm.slane %v6114_v14, 0 }
  0x91   : > { %v936_v35 = vpack.c.bf16 %v928_v32, %v927_v34 }
  0x92   : > { %575 = vrot.lane.b32.xlu1 %v5996_v11, %s5798_s30  ;;  %813 = vrot.lane.b32.xlu2 %v5999_v12, %s5794_s24  ;;  %v4754_v42 = vld [vmem:[#allocation2 + $0x150] sm:$0xf]  ;;  %v5519_v44 = vld [vmem:[#allocation2 + $0x154] sm:$0xf] }
  0x93   : > { %942 = vst [vmem:[#allocation2 + $0x168] sm:$0xff] %v936_v35  ;;  %573 = vrot.lane.b32.xlu0 %v5999_v12, %s5798_s30 }
  0x94   : > { %v6063_v36 = vpop.permute.xlu2 %727  ;;  %v6065_v37 = vpop.permute.xlu1 %795 }
  0x95   : > { %v6067_v38 = vpop.permute.xlu0 %793 }
  0x96   : > { %v826_v46 = vsel %vm817_vm1, %v6067_v38, %v798_v15 }
  0x97   : > { %v845_v53 = vmul.f32 %v833_v40, %v826_v46  ;;  %v912_v46 = vperm.slane %v6020_v17, 3 }
  0x9a   : > { %477 = vrot.lane.b32.xlu1 %v5898_v2, %s5799_s14  ;;  %479 = vrot.lane.b32.xlu2 %v5913_v5, %s5799_s14  ;;  %v5522_v43 = vld [vmem:[#allocation2 + $0x164] sm:$0xf0]  ;;  %v4756_v45 = vld [vmem:[#allocation2 + $0x168] sm:$0xf0] }
  0x9b   : > { %815 = vrot.lane.b32.xlu0 %v5996_v11, %s5794_s24  ;;  %v4755_v47 = vor.u32 %v5522_v43, %v4754_v42  ;;  %v4759_v48 = vor.u32 %v5519_v44, %v4756_v45 }
  0x9c   : > { %v6086_v49 = vpop.permute.xlu2 %885  ;;  %v6088_v50 = vpop.permute.xlu1 %801 }
  0x9d   : > { %v824_v51 = vsel %vm817_vm1, %v798_v15, %v6088_v50  ;;  %1372 = vmatpush.bf16.msra.mxu0 %v4755_v47  ;;  %1400 = vmatpush.bf16.msra.mxu2 %v4759_v48  ;;  %v800_v52 = vpop.permute.xlu0 %799 }
  0x9e   : > { %v846_v54 = vmul.f32 %v834_v41, %v824_v51  ;;  %v825_v55 = vsel %vm817_vm1, %v800_v52, %v6031_v20  ;;  %v827_v56 = vsel %vm817_vm1, %v6065_v37, %v800_v52 }
  0x9f   : > { %v851_v57 = vmul.f32 %v833_v40, %v827_v56  ;;  %v852_v58 = vmul.f32 %v834_v41, %v825_v55 }
  0xa0   : > { %v857_v59 = vpack.c.bf16 %v846_v54, %v845_v53 }
  0xa1   : > { %v860_v60 = vpack.c.bf16 %v852_v58, %v851_v57 }
  0xa2   : > { %863 = vst [vmem:[#allocation2 + $0x120] sm:$0xff] %v857_v59  ;;  %483 = vrot.lane.b32.xlu1 %v5910_v4, %s5799_s14  ;;  %497 = vrot.lane.b32.xlu2 %v5999_v12, %s5799_s14 }
  0xa3   : > { %866 = vst [vmem:[#allocation2 + $0x138] sm:$0xff] %v860_v60  ;;  %481 = vrot.lane.b32.xlu0 %v5895_v1, %s5799_s14 }
  0xa4   : > { %v6105_v61 = vpop.permute.xlu2 %807  ;;  %v6107_v62 = vpop.permute.xlu1 %719 }
  0xa5   : > { %v6109_v63 = vpop.permute.xlu0 %717 }
  0xa6   : > { %v750_v25 = vsel %vm741_vm2, %v6109_v63, %v6047_v28 }
  0xa7   : > { %v769_v34 = vmul.f32 %v757_v19, %v750_v25 }
  0xa9   : > { %v4730_v15 = vld [vmem:[#allocation2 + $0x120] sm:$0xf]  ;;  %v5513_v18 = vld [vmem:[#allocation2 + $0x124] sm:$0xf] }
  0xaa   : > { %637 = vrot.lane.b32.xlu1 %v5892_v0, %s5797_s27  ;;  %639 = vrot.lane.b32.xlu2 %v5907_v3, %s5797_s27  ;;  %v5516_v22 = vld [vmem:[#allocation2 + $0x134] sm:$0xf0]  ;;  %v4732_v24 = vld [vmem:[#allocation2 + $0x138] sm:$0xf0] }
  0xab   : > { %499 = vrot.lane.b32.xlu0 %v5996_v11, %s5799_s14  ;;  %v4731_v26 = vor.u32 %v5516_v22, %v4730_v15  ;;  %v4735_v27 = vor.u32 %v5513_v18, %v4732_v24 }
  0xac   : > { %v6129_v29 = vpop.permute.xlu1 %725  ;;  %v6131_v30 = vpop.permute.xlu2 %945 }
  0xad   : > { %v748_v32 = vsel %vm741_vm2, %v6047_v28, %v6129_v29  ;;  %1373 = vmatpush.bf16.msra.mxu0 %v4731_v26  ;;  %1401 = vmatpush.bf16.msra.mxu2 %v4735_v27  ;;  %v724_v33 = vpop.permute.xlu0 %723  ;;  %v911_v28 = vperm.slane %v6020_v17, 2  ;;  %v835_v27 = vperm.slane %v6072_v39, 2 }
  0xae   : > { %v770_v35 = vmul.f32 %v758_v21, %v748_v32  ;;  %v749_v40 = vsel %vm741_vm2, %v724_v33, %v6063_v36  ;;  %v751_v41 = vsel %vm741_vm2, %v6107_v62, %v724_v33  ;;  %v836_v33 = vperm.slane %v6072_v39, 3 }
  0xaf   : > { %v775_v42 = vmul.f32 %v757_v19, %v751_v41  ;;  %v776_v43 = vmul.f32 %v758_v21, %v749_v40 }
  0xb0   : > { %v781_v44 = vpack.c.bf16 %v770_v35, %v769_v34 }
  0xb1   : > { %v784_v45 = vpack.c.bf16 %v776_v43, %v775_v42 }
  0xb2   : > { %787 = vst [vmem:[#allocation2 + $0xf0] sm:$0xff] %v781_v44  ;;  %643 = vrot.lane.b32.xlu1 %v5949_v7, %s5797_s27  ;;  %737 = vrot.lane.b32.xlu2 %v5999_v12, %s5795_s25 }
  0xb3   : > { %790 = vst [vmem:[#allocation2 + $0x108] sm:$0xff] %v784_v45  ;;  %641 = vrot.lane.b32.xlu0 %v5952_v8, %s5797_s27  ;;  %v708_v45 = vpack.c.bf16 %v5910_v4, %v5913_v5 }
  0xb4   : > { %v884_v47 = vpop.permute.xlu1 %883  ;;  %v6151_v48 = vpop.permute.xlu2 %951 }
  0xb5   : > { %v882_v51 = vpop.permute.xlu0 %881  ;;  %v899_v18 = vsel %vm893_vm0, %v6007_v13, %v884_v47  ;;  %v823_v13 = vsel %vm817_vm1, %v6031_v20, %v6105_v61  ;;  %714 = vst [vmem:[#allocation2 + $0xd8] sm:$0xff] %v708_v45 }
  0xb6   : > { %v896_v52 = vsel %vm893_vm0, %v882_v51, %v6086_v49  ;;  %v898_v53 = vsel %vm893_vm0, %v5993_v10, %v882_v51  ;;  %v929_v25 = vmul.f32 %v911_v28, %v899_v18  ;;  %v853_v20 = vmul.f32 %v835_v27, %v823_v13 }
  0xb7   : > { %v923_v54 = vmul.f32 %v911_v28, %v898_v53  ;;  %v924_v55 = vmul.f32 %v912_v46, %v896_v52 }
  0xb9   : > { %v934_v56 = vpack.c.bf16 %v924_v55, %v923_v54  ;;  %v4706_v57 = vld [vmem:[#allocation2 + $0xf0] sm:$0xf]  ;;  %v5507_v58 = vld [vmem:[#allocation2 + $0xf4] sm:$0xf] }
  0xba   : > { %400 = vrot.lane.b32.xlu1 %v5898_v2, %s5800_s19  ;;  %402 = vrot.lane.b32.xlu2 %v5913_v5, %s5800_s19  ;;  %v5510_v59 = vld [vmem:[#allocation2 + $0x104] sm:$0xf0]  ;;  %v4708_v60 = vld [vmem:[#allocation2 + $0x108] sm:$0xf0]  ;;  %v6220_v5 = vld [vmem:[%s9024_s3 + $0x30] sm:$0x3f] }
  0xbb   : > { %940 = vst [vmem:[#allocation2 + $0x158] sm:$0xff] %v934_v56  ;;  %739 = vrot.lane.b32.xlu0 %v5996_v11, %s5795_s25  ;;  %v4707_v15 = vor.u32 %v5510_v59, %v4706_v57  ;;  %v4711_v10 = vor.u32 %v5507_v58, %v4708_v60  ;;  %v985_v57 = vperm.slane %v6220_v5, 0  ;;  %v986_v58 = vperm.slane %v6220_v5, 1 }
  0xbc   : > { %v806_v19 = vpop.permute.xlu1 %805  ;;  %v6168_v21 = vpop.permute.xlu2 %629  ;;  %v5504_v53 = vld [vmem:[#allocation2 + $0xd4] sm:$0xf0]  ;;  %v4684_v54 = vld [vmem:[#allocation2 + $0xd8] sm:$0xf0] }
  0xbd   : > { %1374 = vmatpush.bf16.msra.mxu0 %v4707_v15  ;;  %1402 = vmatpush.bf16.msra.mxu2 %v4711_v10  ;;  %v6170_v22 = vpop.permute.xlu0 %887  ;;  %v822_v34 = vsel %vm817_vm1, %v6088_v50, %v806_v19  ;;  %v705_v50 = vpack.c.bf16 %v5895_v1, %v5898_v2 }
  0xbe   : > { %v897_v24 = vsel %vm893_vm0, %v884_v47, %v6170_v22  ;;  %v847_v28 = vmul.f32 %v835_v27, %v822_v34 }
  0xbf   : > { %v930_v26 = vmul.f32 %v912_v46, %v897_v24  ;;  %711 = vst [vmem:[#allocation2 + $0xc0] sm:$0xff] %v705_v50 }
  0xc1   : > { %v937_v32 = vpack.c.bf16 %v930_v26, %v929_v25 }
  0xc2   : > { %406 = vrot.lane.b32.xlu1 %v5910_v4, %s5800_s19  ;;  %420 = vrot.lane.b32.xlu2 %v5999_v12, %s5800_s19 }
  0xc3   : > { %943 = vst [vmem:[#allocation2 + $0x170] sm:$0xff] %v937_v32  ;;  %404 = vrot.lane.b32.xlu0 %v5895_v1, %s5800_s19 }
  0xc4   : > { %v6190_v35 = vpop.permute.xlu1 %811  ;;  %v6192_v40 = vpop.permute.xlu2 %635 }
  0xc5   : > { %v821_v41 = vsel %vm817_vm1, %v6105_v61, %v6190_v35  ;;  %v6198_v42 = vpop.permute.xlu0 %809 }
  0xc6   : > { %v854_v43 = vmul.f32 %v836_v33, %v821_v41  ;;  %v820_v44 = vsel %vm817_vm1, %v806_v19, %v6198_v42  ;;  %v4682_v61 = vld [vmem:[#allocation2 + $0xc0] sm:$0xf]  ;;  %v5501_v52 = vld [vmem:[#allocation2 + $0xc4] sm:$0xf]  ;;  %v6264_v41 = vld [vmem:[%s9024_s3 + $0x12] sm:$0x3f] }
  0xc7   : > { %v848_v46 = vmul.f32 %v836_v33, %v820_v44  ;;  %v4683_v55 = vor.u32 %v5504_v53, %v4682_v61  ;;  %v4687_v56 = vor.u32 %v5501_v52, %v4684_v54  ;;  %v670_v45 = vperm.slane %v6264_v41, 1  ;;  %v4762_v52 = vld [vmem:[#allocation2 + $0x158] sm:$0xf] }
  0xc8   : > { %v861_v47 = vpack.c.bf16 %v854_v43, %v853_v20 }
  0xc9   : > { %v858_v51 = vpack.c.bf16 %v848_v46, %v847_v28  ;;  %1375 = vmatpush.bf16.msra.mxu0 %v4683_v55  ;;  %1403 = vmatpush.bf16.msra.mxu2 %v4687_v56  ;;  %v669_v28 = vperm.slane %v6264_v41, 0 }
  0xca   : > { %867 = vst [vmem:[#allocation2 + $0x140] sm:$0xff] %v861_v47  ;;  %561 = vrot.lane.b32.xlu1 %v5892_v0, %s5798_s30  ;;  %563 = vrot.lane.b32.xlu2 %v5907_v3, %s5798_s30  ;;  %v5523_v50 = vld [vmem:[#allocation2 + $0x16c] sm:$0xf0] }
  0xcb   : > { %864 = vst [vmem:[#allocation2 + $0x128] sm:$0xff] %v858_v51  ;;  %422 = vrot.lane.b32.xlu0 %v5996_v11, %s5800_s19  ;;  %v4763_v56 = vor.u32 %v5523_v50, %v4762_v52  ;;  %v838_v50 = vperm.slane %v6072_v39, 5 }
  0xcc   : > { %v950_v1 = vpop.permute.xlu1 %949  ;;  %v6213_v2 = vpop.permute.xlu2 %729 }
  0xcd   : > { %v6215_v4 = vpop.permute.xlu0 %947  ;;  %v978_v60 = vsel %vm969_vm3, %v6131_v30, %v950_v1 }
  0xce   : > { %v979_v59 = vsel %vm969_vm3, %v6215_v4, %v6151_v48  ;;  %v997_v27 = vmul.f32 %v985_v57, %v978_v60 }
  0xcf   : > { %v1003_v24 = vmul.f32 %v985_v57, %v979_v59 }
  0xd1   : > { %v5517_v60 = vld [vmem:[#allocation2 + $0x13c] sm:$0xf0] }
  0xd2   : > { %567 = vrot.lane.b32.xlu1 %v5949_v7, %s5798_s30  ;;  %957 = vrot.lane.b32.xlu2 %v5952_v8, %s5796_s26  ;;  %v4738_v59 = vld [vmem:[#allocation2 + $0x128] sm:$0xf] }
  0xd3   : > { %565 = vrot.lane.b32.xlu0 %v5952_v8, %s5798_s30 }
  0xd4   : > { %v6238_v15 = vpop.permute.xlu1 %955  ;;  %v6240_v10 = vpop.permute.xlu2 %735 }
  0xd5   : > { %v977_v18 = vsel %vm969_vm3, %v6151_v48, %v6238_v15  ;;  %v6246_v19 = vpop.permute.xlu0 %953 }
  0xd6   : > { %v1004_v25 = vmul.f32 %v986_v58, %v977_v18  ;;  %v976_v26 = vsel %vm969_vm3, %v950_v1, %v6246_v19 }
  0xd7   : > { %v998_v32 = vmul.f32 %v986_v58, %v976_v26 }
  0xd8   : > { %v1012_v13 = vpack.c.bf16 %v1004_v25, %v1003_v24 }
  0xd9   : > { %v1009_v33 = vpack.c.bf16 %v998_v32, %v997_v27 }
  0xda   : > { %1018 = vst [vmem:[#allocation2 + $0x198] sm:$0xff] %v1012_v13  ;;  %961 = vrot.lane.b32.xlu1 %v5946_v6, %s5796_s26  ;;  %963 = vrot.lane.b32.xlu2 %v5961_v9, %s5796_s26  ;;  %v4739_v13 = vor.u32 %v5517_v60, %v4738_v59  ;;  %v913_v60 = vperm.slane %v6020_v17, 4 }
  0xdb   : > { %1015 = vst [vmem:[#allocation2 + $0x180] sm:$0xff] %v1009_v33  ;;  %959 = vrot.lane.b32.xlu0 %v5949_v7, %s5796_s26  ;;  %v759_v33 = vperm.slane %v6114_v14, 2 }
  0xdc   : > { %v6257_v48 = vpop.permute.xlu1 %633  ;;  %v6259_v34 = vpop.permute.xlu2 %553 }
  0xdd   : > { %v632_v20 = vpop.permute.xlu0 %631  ;;  %v662_v53 = vsel %vm653_vm4, %v6168_v21, %v6257_v48 }
  0xde   : > { %v663_v51 = vsel %vm653_vm4, %v632_v20, %v6192_v40  ;;  %v682_v26 = vmul.f32 %v670_v45, %v662_v53 }
  0xdf   : > { %v688_v18 = vmul.f32 %v670_v45, %v663_v51 }
  0xe1   : > { %v5528_v43 = vld [vmem:[#allocation2 + $0x194] sm:$0xf0]  ;;  %v4780_v44 = vld [vmem:[#allocation2 + $0x198] sm:$0xf0] }
  0xe2   : > { %487 = vrot.lane.b32.xlu1 %v5907_v3, %s5799_s14  ;;  %489 = vrot.lane.b32.xlu2 %v5952_v8, %s5799_s14  ;;  %v4778_v46 = vld [vmem:[#allocation2 + $0x180] sm:$0xf]  ;;  %v5525_v47 = vld [vmem:[#allocation2 + $0x184] sm:$0xf] }
  0xe3   : > { %485 = vrot.lane.b32.xlu0 %v5892_v0, %s5799_s14  ;;  %v4779_v1 = vor.u32 %v5528_v43, %v4778_v46  ;;  %v4783_v61 = vor.u32 %v5525_v47, %v4780_v44  ;;  %v746_v43 = vsel %vm741_vm2, %v6129_v29, %v6213_v2  ;;  %v837_v44 = vperm.slane %v6072_v39, 4 }
  0xe4   : > { %v6282_v54 = vpop.permute.xlu1 %651  ;;  %v6284_v55 = vpop.permute.xlu2 %559 }
  0xe5   : > { %v665_v57 = vsel %vm653_vm4, %v6282_v54, %v632_v20  ;;  %1393 = vmatpush.bf16.msra.mxu1 %v4779_v1  ;;  %1421 = vmatpush.bf16.msra.mxu3 %v4783_v61  ;;  %v6289_v58 = vpop.permute.xlu0 %649 }
  0xe6   : > { %v687_v24 = vmul.f32 %v669_v28, %v665_v57  ;;  %v664_v25 = vsel %vm653_vm4, %v6289_v58, %v6168_v21  ;;  %v760_v21 = vperm.slane %v6114_v14, 3 }
  0xe7   : > { %v681_v27 = vmul.f32 %v669_v28, %v664_v25  ;;  %v771_v28 = vmul.f32 %v759_v33, %v746_v43 }
  0xe8   : > { %v696_v32 = vpack.c.bf16 %v688_v18, %v687_v24 }
  0xe9   : > { %1428 = vmatpush.bf16.msrb.mxu1 %v4763_v56  ;;  %v693_v20 = vpack.c.bf16 %v682_v26, %v681_v27  ;;  %v914_v26 = vperm.slane %v6020_v17, 5 }
  0xea   : > { %702 = vst [vmem:[#allocation2 + $0xa8] sm:$0xff] %v696_v32  ;;  %645 = vrot.lane.b32.xlu1 %v5946_v6, %s5797_s27  ;;  %647 = vrot.lane.b32.xlu2 %v5961_v9, %s5797_s27 }
  0xeb   : > { %699 = vst [vmem:[#allocation2 + $0x90] sm:$0xff] %v693_v20  ;;  %491 = vrot.lane.b32.xlu0 %v5949_v7, %s5799_s14 }
  0xec   : > { %v6309_v45 = vpop.permute.xlu1 %733  ;;  %v814_v29 = vpop.permute.xlu2 %813 }
  0xed   : > { %1429 = vmatpush.bf16.msrb.mxu1 %v4739_v13  ;;  %v744_v46 = vsel %vm741_vm2, %v6213_v2, %v6309_v45  ;;  %v818_v47 = vsel %vm817_vm1, %v6198_v42, %v814_v29  ;;  %v828_v51 = vsel %vm817_vm1, %v814_v29, %v6067_v38  ;;  %v732_v1 = vpop.permute.xlu0 %731 }
  0xee   : > { %v772_v61 = vmul.f32 %v760_v21, %v744_v46  ;;  %v849_v52 = vmul.f32 %v837_v44, %v818_v47  ;;  %v850_v53 = vmul.f32 %v838_v50, %v828_v51  ;;  %v745_v2 = vsel %vm741_vm2, %v732_v1, %v6240_v10 }
  0xef   : > { %v747_v42 = vsel %vm741_vm2, %v6063_v36, %v732_v1  ;;  %v778_v56 = vmul.f32 %v760_v21, %v745_v2 }
  0xf0   : > { %v782_v57 = vpack.c.bf16 %v772_v61, %v771_v28  ;;  %v859_v59 = vpack.c.bf16 %v850_v53, %v849_v52  ;;  %v777_v38 = vmul.f32 %v759_v33, %v747_v42  ;;  %v6366_v42 = vld [vmem:[%s9024_s3 + $0xc] sm:$0x3f] }
  0xf1   : > { %v5498_v18 = vld [vmem:[#allocation2 + $0xa4] sm:$0xf0]  ;;  %v4660_v24 = vld [vmem:[#allocation2 + $0xa8] sm:$0xf0] }
  0xf2   : > { %788 = vst [vmem:[#allocation2 + $0xf8] sm:$0xff] %v782_v57  ;;  %v785_v25 = vpack.c.bf16 %v778_v56, %v777_v38  ;;  %410 = vrot.lane.b32.xlu1 %v5907_v3, %s5800_s19  ;;  %v4658_v27 = vld [vmem:[#allocation2 + $0x90] sm:$0xf]  ;;  %v5495_v32 = vld [vmem:[#allocation2 + $0x94] sm:$0xf]  ;;  %412 = vrot.lane.b32.xlu2 %v5952_v8, %s5800_s19  ;;  %v594_v56 = vperm.slane %v6366_v42, 1 }
  0xf3   : > { %865 = vst [vmem:[#allocation2 + $0x130] sm:$0xff] %v859_v59  ;;  %408 = vrot.lane.b32.xlu0 %v5892_v0, %s5800_s19  ;;  %v4659_v36 = vor.u32 %v5498_v18, %v4658_v27  ;;  %v4663_v13 = vor.u32 %v5495_v32, %v4660_v24  ;;  %v593_v57 = vperm.slane %v6366_v42, 0 }
  0xf4   : > { %791 = vst [vmem:[#allocation2 + $0x110] sm:$0xff] %v785_v25  ;;  %v892_v33 = vpop.permute.xlu1 %891  ;;  %v6339_v20 = vpop.permute.xlu2 %479 }
  0xf5   : > { %v895_v43 = vsel %vm893_vm0, %v6170_v22, %v892_v33  ;;  %v905_v17 = vsel %vm893_vm0, %v892_v33, %v6052_v31  ;;  %v890_v21 = vpop.permute.xlu0 %889  ;;  %1376 = vmatpush.bf16.msra.mxu0 %v4659_v36  ;;  %1404 = vmatpush.bf16.msra.mxu2 %v4663_v13  ;;  %v706_v33 = vpack.c.bf16 %v5952_v8, %v5892_v0 }
  0xf6   : > { %v931_v29 = vmul.f32 %v913_v60, %v895_v43  ;;  %v932_v28 = vmul.f32 %v914_v26, %v905_v17  ;;  %v894_v46 = vsel %vm893_vm0, %v6086_v49, %v890_v21  ;;  %v904_v47 = vsel %vm893_vm0, %v890_v21, %v6036_v23 }
  0xf7   : > { %v925_v51 = vmul.f32 %v913_v60, %v894_v46  ;;  %v926_v1 = vmul.f32 %v914_v26, %v904_v47  ;;  %v709_v17 = vpack.c.bf16 %v5949_v7, %v5907_v3  ;;  %712 = vst [vmem:[#allocation2 + $0xc8] sm:$0xff] %v706_v33  ;;  %v6412_v3 = vld [vmem:[%s9024_s3 + $0x6] sm:$0x3f] }
  0xf8   : > { %v938_v22 = vpack.c.bf16 %v932_v28, %v931_v29  ;;  %v761_v29 = vperm.slane %v6114_v14, 4  ;;  %v762_v28 = vperm.slane %v6114_v14, 5 }
  0xf9   : > { %v935_v61 = vpack.c.bf16 %v926_v1, %v925_v51  ;;  %v4714_v52 = vld [vmem:[#allocation2 + $0xf8] sm:$0xf]  ;;  %715 = vst [vmem:[#allocation2 + $0xe0] sm:$0xff] %v709_v17 }
  0xfa   : > { %944 = vst [vmem:[#allocation2 + $0x178] sm:$0xff] %v938_v22  ;;  %569 = vrot.lane.b32.xlu1 %v5946_v6, %s5798_s30  ;;  %571 = vrot.lane.b32.xlu2 %v5961_v9, %s5798_s30  ;;  %v517_v22 = vperm.slane %v6412_v3, 0  ;;  %s5803_s30 = smov 30  }
  0xfb   : > { %941 = vst [vmem:[#allocation2 + $0x160] sm:$0xff] %v935_v61  ;;  %414 = vrot.lane.b32.xlu0 %v5949_v7, %s5800_s19  ;;  %v5511_v31 = vld [vmem:[#allocation2 + $0x10c] sm:$0xf0] }
  0xfc   : > { %v6359_v49 = vpop.permute.xlu1 %557  ;;  %v6361_v23 = vpop.permute.xlu2 %497  ;;  %v4715_v53 = vor.u32 %v5511_v31, %v4714_v52 }
  0xfd   : > { %v556_v2 = vpop.permute.xlu0 %555  ;;  %v586_v38 = vsel %vm577_vm5, %v6259_v34, %v6359_v49 }
  0xfe   : > { %1430 = vmatpush.bf16.msrb.mxu1 %v4715_v53  ;;  %v587_v59 = vsel %vm577_vm5, %v556_v2, %v6284_v55  ;;  %v606_v36 = vmul.f32 %v594_v56, %v586_v38 }
  0xff   : > { %v612_v26 = vmul.f32 %v594_v56, %v587_v59  ;;  %v518_v59 = vperm.slane %v6412_v3, 1 }
 0x102   : > { %495 = vrot.lane.b32.xlu1 %v5961_v9, %s5799_s14  ;;  %416 = vrot.lane.b32.xlu2 %v5946_v6, %s5800_s19 }
 0x103   : > { %493 = vrot.lane.b32.xlu0 %v5946_v6, %s5799_s14  ;;  %s5808_s14 = smov 34  }
 0x104   : > { %v6384_v60 = vpop.permute.xlu1 %575  ;;  %v6386_v18 = vpop.permute.xlu2 %639 }
 0x105   : > { %v589_v24 = vsel %vm577_vm5, %v6384_v60, %v556_v2  ;;  %v6391_v25 = vpop.permute.xlu0 %573  ;;  %v4690_v2 = vld [vmem:[#allocation2 + $0xc8] sm:$0xf] }
 0x106   : > { %v611_v27 = vmul.f32 %v593_v57, %v589_v24  ;;  %v588_v32 = vsel %vm577_vm5, %v6391_v25, %v6259_v34  ;;  %v5505_v24 = vld [vmem:[#allocation2 + $0xdc] sm:$0xf0] }
 0x107   : > { %v605_v13 = vmul.f32 %v593_v57, %v588_v32 }
 0x108   : > { %v620_v43 = vpack.c.bf16 %v612_v26, %v611_v27 }
 0x109   : > { %v617_v21 = vpack.c.bf16 %v606_v36, %v605_v13 }
 0x10a   : > { %626 = vst [vmem:[#allocation2 + $0x78] sm:$0xff] %v620_v43  ;;  %965 = vrot.lane.b32.xlu1 %v5999_v12, %s5796_s26  ;;  %967 = vrot.lane.b32.xlu2 %v5996_v11, %s5796_s26  ;;  %s5804_s26 = smov 96  }
 0x10b   : > { %623 = vst [vmem:[#allocation2 + $0x60] sm:$0xff] %v617_v21  ;;  %418 = vrot.lane.b32.xlu0 %v5961_v9, %s5800_s19 }
 0x10c   : > { %v478_v0 = vpop.permute.xlu1 %477  ;;  %v738_v8 = vpop.permute.xlu2 %737 }
 0x10d   : > { %v742_v7 = vsel %vm741_vm2, %v6309_v45, %v738_v8  ;;  %v752_v34 = vsel %vm741_vm2, %v738_v8, %v6109_v63  ;;  %v816_v46 = vpop.permute.xlu0 %815 }
 0x10e   : > { %v773_v47 = vmul.f32 %v761_v29, %v742_v7  ;;  %v774_v51 = vmul.f32 %v762_v28, %v752_v34  ;;  %v819_v1 = vsel %vm817_vm1, %v6190_v35, %v816_v46  ;;  %v829_v45 = vsel %vm817_vm1, %v816_v46, %v6065_v37 }
 0x10f   : > { %v855_v63 = vmul.f32 %v837_v44, %v819_v1  ;;  %v856_v52 = vmul.f32 %v838_v50, %v829_v45  ;;  %v512_v35 = vsel %vm501_vm6, %v6361_v23, %v478_v0  ;;  %v4691_v50 = vor.u32 %v5505_v24, %v4690_v2 }
 0x110   : > { %v783_v61 = vpack.c.bf16 %v774_v51, %v773_v47  ;;  %v529_v27 = vmul.f32 %v517_v22, %v512_v35  ;;  %v671_v47 = vperm.slane %v6264_v41, 2  ;;  %v672_v51 = vperm.slane %v6264_v41, 3 }
 0x111   : > { %v5492_v31 = vld [vmem:[#allocation2 + $0x74] sm:$0xf0]  ;;  %v4636_v53 = vld [vmem:[#allocation2 + $0x78] sm:$0xf0]  ;;  %v862_v56 = vpack.c.bf16 %v856_v52, %v855_v63  ;;  %1431 = vmatpush.bf16.msrb.mxu1 %v4691_v50  ;;  %v661_v1 = vsel %vm653_vm4, %v6192_v40, %v6386_v18  ;;  %vm2992_vm1 = vcmp.lt.s32.totalorder %v6015_v16, 64 }
 0x112   : > { %789 = vst [vmem:[#allocation2 + $0x100] sm:$0xff] %v783_v61  ;;  %v4634_v57 = vld [vmem:[#allocation2 + $0x60] sm:$0xf]  ;;  %v5489_v37 = vld [vmem:[#allocation2 + $0x64] sm:$0xf]  ;;  %v689_v52 = vmul.f32 %v671_v47, %v661_v1 }
 0x113   : > { %v4635_v44 = vor.u32 %v5492_v31, %v4634_v57  ;;  %v4639_v38 = vor.u32 %v5489_v37, %v4636_v53  ;;  %868 = vst [vmem:[#allocation2 + $0x148] sm:$0xff] %v862_v56 }
 0x114   : > { %v6440_v26 = vpop.permute.xlu1 %483  ;;  %v6442_v39 = vpop.permute.xlu2 %402 }
 0x115   : > { %v6444_v32 = vpop.permute.xlu0 %481  ;;  %1377 = vmatpush.bf16.msra.mxu0 %v4635_v44  ;;  %1405 = vmatpush.bf16.msra.mxu2 %v4639_v38  ;;  %v511_v43 = vsel %vm501_vm6, %v6339_v20, %v6440_v26 }
 0x116   : > { %v510_v36 = vsel %vm501_vm6, %v478_v0, %v6444_v32  ;;  %v536_v0 = vmul.f32 %v518_v59, %v511_v43 }
 0x117   : > { %v530_v13 = vmul.f32 %v518_v59, %v510_v36 }
 0x119   : > { %v541_v33 = vpack.c.bf16 %v530_v13, %v529_v27  ;;  %v6488_v27 = vld [vmem:[%s9024_s3] sm:$0x3f] }
 0x11b   : > { %547 = vst [vmem:[#allocation2 + $0x30] sm:$0xff] %v541_v33 }
 0x11c   : > { %v638_v17 = vpop.permute.xlu1 %637  ;;  %v6453_v21 = vpop.permute.xlu2 %420 }
 0x11d   : > { %v6455_v8 = vpop.permute.xlu0 %499  ;;  %v660_v45 = vsel %vm653_vm4, %v6257_v48, %v638_v17 }
 0x11e   : > { %v513_v7 = vsel %vm501_vm6, %v6455_v8, %v6339_v20  ;;  %v683_v53 = vmul.f32 %v671_v47, %v660_v45 }
 0x11f   : > { %v535_v34 = vmul.f32 %v517_v22, %v513_v7  ;;  %v441_v7 = vperm.slane %v6488_v27, 0 }
 0x121   : > { %v544_v46 = vpack.c.bf16 %v536_v0, %v535_v34 }
 0x122   : > { %v4610_v56 = vld [vmem:[#allocation2 + $0x30] sm:$0xf]  ;;  %v5483_v57 = vld [vmem:[#allocation2 + $0x34] sm:$0xf] }
 0x123   : > { %550 = vst [vmem:[#allocation2 + $0x48] sm:$0xff] %v544_v46 }
 0x124   : > { %v6470_v63 = vpop.permute.xlu1 %643  ;;  %v6472_v20 = vpop.permute.xlu2 %563 }
 0x125   : > { %v659_v22 = vsel %vm653_vm4, %v6386_v18, %v6470_v63  ;;  %v6478_v61 = vpop.permute.xlu0 %641 }
 0x126   : > { %v690_v31 = vmul.f32 %v672_v51, %v659_v22  ;;  %v658_v40 = vsel %vm653_vm4, %v638_v17, %v6478_v61  ;;  %v5475_v17 = vld [vmem:[%s9022_s1 + $0x4] sm:$0xf] }
 0x127   : > { %v684_v2 = vmul.f32 %v672_v51, %v658_v40  ;;  %v5801_v40 = vmov 0  }
 0x128   : > { %v697_v48 = vpack.c.bf16 %v690_v31, %v689_v52  ;;  %5722 = vset.pattern.permute.xlu0 %v5801_v40  ;;  %5723 = vset.pattern.permute.xlu1 %v5801_v40 }
 0x129   : > { %v694_v35 = vpack.c.bf16 %v684_v2, %v683_v53  ;;  %v1077_v53 = vld [vmem:[%s9023_s2] sm:$0xff]  ;;  %5724 = vset.pattern.permute.xlu2 %v5801_v40  ;;  %v5476_v40 = vld [vmem:[%s9022_s1 + $0x4] sm:$0xf0] }
 0x12a   : > { %703 = vst [vmem:[#allocation2 + $0xb0] sm:$0xff] %v697_v48  ;;  %v5486_v37 = vld [vmem:[#allocation2 + $0x44] sm:$0xf0]  ;;  %v4612_v59 = vld [vmem:[#allocation2 + $0x48] sm:$0xf0]  ;;  %1081 = vperm.xlu0 %5722, %v1077_v53   ;;  %v988_v53 = vperm.slane %v6220_v5, 3 }
 0x12b   : > { %700 = vst [vmem:[#allocation2 + $0x98] sm:$0xff] %v694_v35  ;;  %v4611_v44 = vor.u32 %v5486_v37, %v4610_v56  ;;  %v4615_v18 = vor.u32 %v5483_v57, %v4612_v59 }
 0x12c   : > { %v401_v38 = vpop.permute.xlu1 %400  ;;  %v6483_v24 = vpop.permute.xlu2 %957 }
 0x12d   : > { %v740_v50 = vpop.permute.xlu0 %739  ;;  %1378 = vmatpush.bf16.msra.mxu0 %v4611_v44  ;;  %1406 = vmatpush.bf16.msra.mxu2 %v4615_v18  ;;  %v707_v44 = vpack.c.bf16 %v5999_v12, %v5946_v6  ;;  %v710_v18 = vpack.c.bf16 %v5996_v11, %v5961_v9  ;;  %v674_v6 = vperm.slane %v6264_v41, 5 }
 0x12e   : > { %v743_v36 = vsel %vm741_vm2, %v6240_v10, %v740_v50  ;;  %v753_v13 = vsel %vm741_vm2, %v740_v50, %v6107_v62  ;;  %v4580_v10 = vld [vmem:[%s9022_s1 + $0x8] sm:$0xf0] }
 0x12f   : > { %v779_v33 = vmul.f32 %v761_v29, %v743_v36  ;;  %v780_v43 = vmul.f32 %v762_v28, %v753_v13  ;;  %v6508_v34 = vor.u32 %v5475_v17, %v4580_v10  ;;  %v437_v29 = vsel %vm426_vm7, %v6453_v21, %v401_v38  ;;  %713 = vst [vmem:[#allocation2 + $0xd0] sm:$0xff] %v707_v44 }
 0x130   : > { %v442_v28 = vperm.slane %v6488_v27, 1  ;;  %v453_v1 = vmul.f32 %v441_v7, %v437_v29  ;;  %v585_v36 = vsel %vm577_vm5, %v6284_v55, %v6472_v20  ;;  %v596_v13 = vperm.slane %v6366_v42, 3  ;;  %716 = vst [vmem:[#allocation2 + $0xe8] sm:$0xff] %v710_v18 }
 0x131   : > { %v786_v0 = vpack.c.bf16 %v780_v43, %v779_v33  ;;  %v5499_v62 = vld [vmem:[#allocation2 + $0xac] sm:$0xf0]  ;;  %4800 = vmatmul.msk.bf16.vlgmr.msra.gmra.mxu1 %vm1368_vm8, %v6508_v34  ;;  %4801 = vmatmul.msk.bf16.vlgmr.msra.gmra.mxu3 %vm1368_vm8, %v6508_v34 }
 0x132   : > { %v4666_v14 = vld [vmem:[#allocation2 + $0x98] sm:$0xf] }
 0x133   : > { %792 = vst [vmem:[#allocation2 + $0x118] sm:$0xff] %v786_v0  ;;  %v4667_v46 = vor.u32 %v5499_v62, %v4666_v14  ;;  %v5524_v14 = vld [vmem:[#allocation2 + $0x174] sm:$0xf0] }
 0x134   : > { %v6518_v47 = vpop.permute.xlu1 %406  ;;  %v6520_v51 = vpop.permute.xlu2 %963 }
 0x135   : > { %1432 = vmatpush.bf16.msrb.mxu1 %v4667_v46  ;;  %v6522_v45 = vpop.permute.xlu0 %404  ;;  %v436_v2 = vsel %vm426_vm7, %v6442_v39, %v6518_v47  ;;  %v4770_v46 = vld [vmem:[#allocation2 + $0x160] sm:$0xf] }
 0x136   : > { %v435_v22 = vsel %vm426_vm7, %v401_v38, %v6522_v45  ;;  %v460_v37 = vmul.f32 %v442_v28, %v436_v2  ;;  %v595_v38 = vperm.slane %v6366_v42, 2  ;;  %v4771_v18 = vor.u32 %v5524_v14, %v4770_v46 }
 0x137   : > { %v454_v52 = vmul.f32 %v442_v28, %v435_v22  ;;  %v987_v28 = vperm.slane %v6220_v5, 2  ;;  %v5506_v46 = vld [vmem:[#allocation2 + $0xe4] sm:$0xf0] }
 0x138   : > { %v613_v12 = vmul.f32 %v595_v38, %v585_v36 }
 0x139   : > { %v465_v31 = vpack.c.bf16 %v454_v52, %v453_v1 }
 0x13a   : > { %v5512_v14 = vld [vmem:[#allocation2 + $0x114] sm:$0xf0] }
 0x13b   : > { %471 = vst [vmem:[#allocation2] sm:$0xff] %v465_v31 }
 0x13c   : > { %v562_v48 = vpop.permute.xlu1 %561  ;;  %v6534_v35 = vpop.permute.xlu2 %489 }
 0x13d   : > { %v6536_v56 = vpop.permute.xlu0 %422  ;;  %v584_v9 = vsel %vm577_vm5, %v6359_v49, %v562_v48 }
 0x13e   : > { %v438_v57 = vsel %vm426_vm7, %v6536_v56, %v6442_v39  ;;  %v673_v39 = vperm.slane %v6264_v41, 4  ;;  %v607_v0 = vmul.f32 %v595_v38, %v584_v9 }
 0x13f   : > { %v459_v59 = vmul.f32 %v441_v7, %v438_v57  ;;  %v974_v57 = vsel %vm969_vm3, %v6246_v19, %v6483_v24  ;;  %v5518_v19 = vld [vmem:[#allocation2 + $0x144] sm:$0xf0] }
 0x140   : > { %v999_v9 = vmul.f32 %v987_v28, %v974_v57 }
 0x141   : > { %v468_v50 = vpack.c.bf16 %v460_v37, %v459_v59 }
 0x142   : > { %v4586_v52 = vld [vmem:[#allocation2] sm:$0xf]  ;;  %v5477_v31 = vld [vmem:[#allocation2 + $0x4] sm:$0xf] }
 0x143   : > { %474 = vst [vmem:[#allocation2 + $0x18] sm:$0xff] %v468_v50 }
 0x144   : > { %v6557_v11 = vpop.permute.xlu1 %567  ;;  %v648_v33 = vpop.permute.xlu2 %647 }
 0x145   : > { %v583_v55 = vsel %vm577_vm5, %v6472_v20, %v6557_v11  ;;  %v6563_v43 = vpop.permute.xlu0 %565  ;;  %v655_v10 = vsel %vm653_vm4, %v648_v33, %v6282_v54  ;;  %v657_v49 = vsel %vm653_vm4, %v6470_v63, %v648_v33  ;;  %v4578_v63 = vld [vmem:[%s9022_s1] sm:$0xf] }
 0x146   : > { %v614_v17 = vmul.f32 %v596_v13, %v583_v55  ;;  %v582_v7 = vsel %vm577_vm5, %v562_v48, %v6563_v43  ;;  %v691_v20 = vmul.f32 %v673_v39, %v657_v49  ;;  %v692_v62 = vmul.f32 %v674_v6, %v655_v10 }
 0x147   : > { %v608_v29 = vmul.f32 %v596_v13, %v582_v7  ;;  %v6592_v38 = vor.u32 %v5476_v40, %v4578_v63  ;;  %v519_v63 = vperm.slane %v6412_v3, 2 }
 0x148   : > { %v621_v54 = vpack.c.bf16 %v614_v17, %v613_v12  ;;  %v698_v1 = vpack.c.bf16 %v692_v62, %v691_v20  ;;  %v597_v20 = vperm.slane %v6366_v42, 4 }
 0x149   : > { %v618_v22 = vpack.c.bf16 %v608_v29, %v607_v0  ;;  %v598_v29 = vperm.slane %v6366_v42, 5 }
 0x14a   : > { %627 = vst [vmem:[#allocation2 + $0x80] sm:$0xff] %v621_v54  ;;  %v5480_v2 = vld [vmem:[#allocation2 + $0x14] sm:$0xf0]  ;;  %v4588_v48 = vld [vmem:[#allocation2 + $0x18] sm:$0xf0]  ;;  %v520_v54 = vperm.slane %v6412_v3, 3 }
 0x14b   : > { %704 = vst [vmem:[#allocation2 + $0xb8] sm:$0xff] %v698_v1  ;;  %v4587_v37 = vor.u32 %v5480_v2, %v4586_v52  ;;  %v4591_v59 = vor.u32 %v5477_v31, %v4588_v48  ;;  %v4722_v52 = vld [vmem:[#allocation2 + $0x100] sm:$0xf] }
 0x14c   : > { %624 = vst [vmem:[#allocation2 + $0x68] sm:$0xff] %v618_v22  ;;  %v6590_v44 = vpop.permute.xlu1 %961  ;;  %v6598_v36 = vpop.permute.xlu2 %412 }
 0x14d   : > { %v972_v50 = vsel %vm969_vm3, %v6483_v24, %v6590_v44  ;;  %v960_v13 = vpop.permute.xlu0 %959  ;;  %1379 = vmatpush.bf16.msra.mxu0 %v4587_v37  ;;  %1407 = vmatpush.bf16.msra.mxu2 %v4591_v59  ;;  %v4746_v24 = vld [vmem:[#allocation2 + $0x130] sm:$0xf] }
 0x14e   : > { %v1000_v12 = vmul.f32 %v988_v53, %v972_v50  ;;  %v973_v55 = vsel %vm969_vm3, %v960_v13, %v6520_v51  ;;  %v975_v33 = vsel %vm969_vm3, %v6238_v15, %v960_v13  ;;  %v4747_v7 = vor.u32 %v5518_v19, %v4746_v24  ;;  %v4698_v15 = vld [vmem:[#allocation2 + $0xd0] sm:$0xf]  ;;  %v4764_v13 = vld [vmem:[#allocation2 + $0x170] sm:$0xf0]  ;;  %v5521_v19 = vld [vmem:[#allocation2 + $0x164] sm:$0xf] }
 0x14f   : > { %v1005_v17 = vmul.f32 %v987_v28, %v975_v33  ;;  %v1006_v10 = vmul.f32 %v988_v53, %v973_v55  ;;  %v4723_v53 = vor.u32 %v5512_v14, %v4722_v52  ;;  %v4699_v37 = vor.u32 %v5506_v46, %v4698_v15  ;;  %v5520_v14 = vld [vmem:[#allocation2 + $0x15c] sm:$0xf]  ;;  %v4740_v52 = vld [vmem:[#allocation2 + $0x140] sm:$0xf0] }
 0x150   : > { %v1010_v49 = vpack.c.bf16 %v1000_v12, %v999_v9  ;;  %1380 = vmatmul.bf16.vlgmr.msra.gmra.mxu0 %v6592_v38  ;;  %1408 = vmatmul.bf16.vlgmr.msra.gmra.mxu2 %v6592_v38  ;;  %v4772_v9 = vld [vmem:[#allocation2 + $0x178] sm:$0xf0] }
 0x151   : > { %1484 = vmatpush.bf16.msrb.mxu2 %v4771_v18  ;;  %v1013_v0 = vpack.c.bf16 %v1006_v10, %v1005_v17  ;;  %v5493_v62 = vld [vmem:[#allocation2 + $0x7c] sm:$0xf0]  ;;  %v1078_v17 = vld [vmem:[%s9023_s2 + $0x8] sm:$0xff]  ;;  %v4775_v46 = vor.u32 %v5521_v19, %v4772_v9  ;;  %v989_v9 = vperm.slane %v6220_v5, 4 }
 0x152   : > { %1016 = vst [vmem:[#allocation2 + $0x188] sm:$0xff] %v1010_v49  ;;  %1086 = vperm.xlu1 %5723, %v1078_v17   ;;  %v444_v17 = vperm.slane %v6488_v27, 3 }
 0x153   : > { %1019 = vst [vmem:[#allocation2 + $0x1a0] sm:$0xff] %v1013_v0  ;;  %v4642_v28 = vld [vmem:[#allocation2 + $0x68] sm:$0xf] }
 0x154   : > { %v488_v1 = vpop.permute.xlu1 %487  ;;  %v4643_v22 = vor.u32 %v5493_v62, %v4642_v28  ;;  %v572_v31 = vpop.permute.xlu2 %571  ;;  %v4767_v28 = vor.u32 %v5520_v14, %v4764_v13  ;;  %v5509_v14 = vld [vmem:[#allocation2 + $0x104] sm:$0xf] }
 0x155   : > { %1485 = vmatpush.bf16.msrb.mxu2 %v4747_v7  ;;  %v486_v40 = vpop.permute.xlu0 %485  ;;  %v579_v2 = vsel %vm577_vm5, %v572_v31, %v6384_v60  ;;  %v581_v48 = vsel %vm577_vm5, %v6557_v11, %v572_v31  ;;  %v446_v7 = vperm.slane %v6488_v27, 5  ;;  %v509_v31 = vsel %vm501_vm6, %v6440_v26, %v488_v1 }
 0x156   : > { %1433 = vmatpush.bf16.msrb.mxu1 %v4643_v22  ;;  %v506_v57 = vsel %vm501_vm6, %v486_v40, %v6534_v35  ;;  %v615_v59 = vmul.f32 %v597_v20, %v581_v48  ;;  %v616_v18 = vmul.f32 %v598_v29, %v579_v2  ;;  %v508_v60 = vsel %vm501_vm6, %v6444_v32, %v486_v40  ;;  %v5514_v22 = vld [vmem:[#allocation2 + $0x12c] sm:$0xf] }
 0x157   : > { %v532_v50 = vmul.f32 %v520_v54, %v506_v57  ;;  %v531_v11 = vmul.f32 %v519_v63, %v508_v60  ;;  %v445_v32 = vperm.slane %v6488_v27, 4 }
 0x158   : > { %v622_v12 = vpack.c.bf16 %v616_v18, %v615_v59 }
 0x159   : > { %1486 = vmatpush.bf16.msrb.mxu2 %v4723_v53  ;;  %v4786_v55 = vld [vmem:[#allocation2 + $0x188] sm:$0xf]  ;;  %v5526_v33 = vld [vmem:[#allocation2 + $0x18c] sm:$0xf]  ;;  %v542_v10 = vpack.c.bf16 %v532_v50, %v531_v11  ;;  %v5515_v50 = vld [vmem:[#allocation2 + $0x134] sm:$0xf] }
 0x15a   : > { %v5529_v24 = vld [vmem:[#allocation2 + $0x19c] sm:$0xf0]  ;;  %v4788_v49 = vld [vmem:[#allocation2 + $0x1a0] sm:$0xf0]  ;;  %628 = vst [vmem:[#allocation2 + $0x88] sm:$0xff] %v622_v12 }
 0x15b   : > { %v4787_v0 = vor.u32 %v5529_v24, %v4786_v55  ;;  %v4791_v62 = vor.u32 %v5526_v33, %v4788_v49  ;;  %548 = vst [vmem:[#allocation2 + $0x38] sm:$0xff] %v542_v10  ;;  %v5508_v11 = vld [vmem:[#allocation2 + $0xfc] sm:$0xf]  ;;  %v990_v55 = vperm.slane %v6220_v5, 5  ;;  %v4692_v33 = vld [vmem:[#allocation2 + $0xe0] sm:$0xf0] }
 0x15c   : > { %v646_v15 = vpop.permute.xlu1 %645  ;;  %v417_v2 = vpop.permute.xlu2 %416  ;;  %v4724_v12 = vld [vmem:[#allocation2 + $0x118] sm:$0xf0]  ;;  %v5503_v10 = vld [vmem:[#allocation2 + $0xd4] sm:$0xf]  ;;  %v4700_v24 = vld [vmem:[#allocation2 + $0xe8] sm:$0xf0] }
 0x15d   : > { %1487 = vmatpush.bf16.msrb.mxu2 %v4699_v37  ;;  %v654_v40 = vsel %vm653_vm4, %v646_v15, %v6289_v58  ;;  %v656_v53 = vsel %vm653_vm4, %v6478_v61, %v646_v15  ;;  %1449 = vmatpush.bf16.msrb.mxu3 %v4787_v0  ;;  %v6644_v48 = vpop.permute.xlu0 %491  ;;  %v427_v26 = vsel %vm426_vm7, %v417_v2, %v6453_v21  ;;  %v4748_v61 = vld [vmem:[#allocation2 + $0x148] sm:$0xf0]  ;;  %v443_v49 = vperm.slane %v6488_v27, 2 }
 0x15e   : > { %1477 = vmatpush.bf16.msrb.mxu0 %v4791_v62  ;;  %v685_v57 = vmul.f32 %v673_v39, %v656_v53  ;;  %v686_v37 = vmul.f32 %v674_v6, %v654_v40  ;;  %v429_v58 = vsel %vm426_vm7, %v6598_v36, %v417_v2  ;;  %v458_v18 = vmul.f32 %v446_v7, %v427_v26 }
 0x15f   : > { %v457_v59 = vmul.f32 %v445_v32, %v429_v58  ;;  %v507_v41 = vsel %vm501_vm6, %v488_v1, %v6644_v48  ;;  %v4743_v39 = vor.u32 %v5514_v22, %v4740_v52  ;;  %v537_v6 = vmul.f32 %v519_v63, %v509_v31  ;;  %v4716_v1 = vld [vmem:[#allocation2 + $0x110] sm:$0xf0] }
 0x160   : > { %v695_v21 = vpack.c.bf16 %v686_v37, %v685_v57  ;;  %v538_v60 = vmul.f32 %v520_v54, %v507_v41  ;;  %4802 = vmatmul.msk.bf16.vlgmr.msrb.gmra.mxu3 %vm1368_vm8, %v6508_v34  ;;  %v4751_v19 = vor.u32 %v5515_v50, %v4748_v61  ;;  %v5502_v54 = vld [vmem:[#allocation2 + $0xcc] sm:$0xf]  ;;  %v4719_v62 = vor.u32 %v5508_v11, %v4716_v1  ;;  %v4668_v58 = vld [vmem:[#allocation2 + $0xb0] sm:$0xf0] }
 0x161   : > { %1456 = vmatpush.bf16.msra.mxu3 %v4767_v28  ;;  %4803 = vmatmul.msk.bf16.vlgmr.msrb.gmra.mxu0 %vm1368_vm8, %v6508_v34  ;;  %v467_v13 = vpack.c.bf16 %v458_v18, %v457_v59  ;;  %v4695_v22 = vor.u32 %v5502_v54, %v4692_v33  ;;  %v4703_v53 = vor.u32 %v5503_v10, %v4700_v24  ;;  %v5490_v54 = vld [vmem:[#allocation2 + $0x6c] sm:$0xf]  ;;  %v4644_v33 = vld [vmem:[#allocation2 + $0x80] sm:$0xf0]  ;;  %vm3144_vm4 = vcmp.lt.s32.totalorder %v6015_v16, 4 }
 0x162   : > { %1512 = vmatpush.bf16.msra.mxu0 %v4775_v46  ;;  %701 = vst [vmem:[#allocation2 + $0xa0] sm:$0xff] %v695_v21  ;;  %v545_v63 = vpack.c.bf16 %v538_v60, %v537_v6  ;;  %v4727_v46 = vor.u32 %v5509_v14, %v4724_v12  ;;  %v4676_v6 = vld [vmem:[#allocation2 + $0xb8] sm:$0xf0]  ;;  %v4618_v21 = vld [vmem:[#allocation2 + $0x38] sm:$0xf] }
 0x163   : > { %473 = vst [vmem:[#allocation2 + $0x10] sm:$0xff] %v467_v13  ;;  %v5484_v42 = vld [vmem:[#allocation2 + $0x3c] sm:$0xf] }
 0x164   : > { %551 = vst [vmem:[#allocation2 + $0x50] sm:$0xff] %v545_v63  ;;  %v411_v0 = vpop.permute.xlu1 %410  ;;  %v968_v15 = vpop.permute.xlu2 %967 }
 0x165   : > { %1457 = vmatpush.bf16.msra.mxu3 %v4743_v39  ;;  %v409_v28 = vpop.permute.xlu0 %408  ;;  %v971_v52 = vsel %vm969_vm3, %v6520_v51, %v968_v15  ;;  %v981_v31 = vsel %vm969_vm3, %v968_v15, %v6215_v4  ;;  %v5496_v4 = vld [vmem:[#allocation2 + $0x9c] sm:$0xf]  ;;  %v4647_v15 = vor.u32 %v5490_v54, %v4644_v33 }
 0x166   : > { %1513 = vmatpush.bf16.msra.mxu0 %v4751_v19  ;;  %v431_v40 = vsel %vm426_vm7, %v409_v28, %v6598_v36  ;;  %v1007_v2 = vmul.f32 %v989_v9, %v971_v52  ;;  %v1008_v57 = vmul.f32 %v990_v55, %v981_v31  ;;  %v433_v51 = vsel %vm426_vm7, %v6522_v45, %v409_v28  ;;  %v5500_v36 = vld [vmem:[#allocation2 + $0xb4] sm:$0xf0] }
 0x167   : > { %v456_v37 = vmul.f32 %v444_v17, %v431_v40  ;;  %v455_v26 = vmul.f32 %v443_v49, %v433_v51  ;;  %v434_v45 = vsel %vm426_vm7, %v6518_v47, %v411_v0  ;;  %v4671_v19 = vor.u32 %v5496_v4, %v4668_v58  ;;  %v5494_v51 = vld [vmem:[#allocation2 + $0x84] sm:$0xf0] }
 0x168   : > { %v1014_v61 = vpack.c.bf16 %v1008_v57, %v1007_v2 }
 0x169   : > { %1458 = vmatpush.bf16.msra.mxu3 %v4719_v62  ;;  %v4674_v59 = vld [vmem:[#allocation2 + $0xa0] sm:$0xf]  ;;  %v5497_v18 = vld [vmem:[#allocation2 + $0xa4] sm:$0xf]  ;;  %v466_v41 = vpack.c.bf16 %v456_v37, %v455_v26  ;;  %v461_v62 = vmul.f32 %v443_v49, %v434_v45  ;;  %v4652_v37 = vld [vmem:[#allocation2 + $0x88] sm:$0xf0] }
 0x16a   : > { %1514 = vmatpush.bf16.msra.mxu0 %v4727_v46  ;;  %v4675_v39 = vor.u32 %v5500_v36, %v4674_v59  ;;  %1020 = vst [vmem:[#allocation2 + $0x1a8] sm:$0xff] %v1014_v61  ;;  %v4679_v50 = vor.u32 %v5497_v18, %v4676_v6  ;;  %v521_v46 = vperm.slane %v6412_v3, 4 }
 0x16b   : > { %v5487_v60 = vld [vmem:[#allocation2 + $0x4c] sm:$0xf0]  ;;  %472 = vst [vmem:[#allocation2 + $0x8] sm:$0xff] %v466_v41  ;;  %v4620_v28 = vld [vmem:[#allocation2 + $0x50] sm:$0xf0] }
 0x16c   : > { %v570_v11 = vpop.permute.xlu1 %569  ;;  %v4619_v13 = vor.u32 %v5487_v60, %v4618_v21  ;;  %1488 = vmatpush.bf16.msrb.mxu2 %v4675_v39 }
 0x16d   : > { %1459 = vmatpush.bf16.msra.mxu3 %v4695_v22  ;;  %v578_v1 = vsel %vm577_vm5, %v570_v11, %v6391_v25  ;;  %v580_v12 = vsel %vm577_vm5, %v6563_v43, %v570_v11  ;;  %v415_v63 = vpop.permute.xlu0 %414  ;;  %v4623_v22 = vor.u32 %v5484_v42, %v4620_v28  ;;  %vm3232_vm5 = vcmp.lt.s32.totalorder %v6015_v16, 124 }
 0x16e   : > { %1515 = vmatpush.bf16.msra.mxu0 %v4703_v53  ;;  %v609_v10 = vmul.f32 %v597_v20, %v580_v12  ;;  %v610_v47 = vmul.f32 %v598_v29, %v578_v1  ;;  %1434 = vmatpush.bf16.msrb.mxu1 %v4619_v13  ;;  %v432_v24 = vsel %vm426_vm7, %v411_v0, %v415_v63  ;;  %v522_v20 = vperm.slane %v6412_v3, 5 }
 0x16f   : > { %v462_v25 = vmul.f32 %v444_v17, %v432_v24 }
 0x170   : > { %v619_v14 = vpack.c.bf16 %v610_v47, %v609_v10  ;;  %v5479_v47 = vld [vmem:[#allocation2 + $0x14] sm:$0xf] }
 0x171   : > { %1460 = vmatpush.bf16.msra.mxu3 %v4671_v19  ;;  %v469_v43 = vpack.c.bf16 %v462_v25, %v461_v62  ;;  %v4796_v54 = vld [vmem:[#allocation2 + $0x1a8] sm:$0xf0] }
 0x172   : > { %1516 = vmatpush.bf16.msra.mxu0 %v4679_v50  ;;  %625 = vst [vmem:[#allocation2 + $0x70] sm:$0xff] %v619_v14 }
 0x173   : > { %475 = vst [vmem:[#allocation2 + $0x20] sm:$0xff] %v469_v43 }
 0x174   : > { %v496_v29 = vpop.permute.xlu1 %495 }
 0x175   : > { %1461 = vmatpush.bf16.msra.mxu3 %v4647_v15  ;;  %v503_v49 = vsel %vm501_vm6, %v496_v29, %v6455_v8  ;;  %v505_v17 = vsel %vm501_vm6, %v6644_v48, %v496_v29  ;;  %v494_v0 = vpop.permute.xlu0 %493  ;;  %v4594_v8 = vld [vmem:[#allocation2 + $0x8] sm:$0xf]  ;;  %v5478_v48 = vld [vmem:[#allocation2 + $0xc] sm:$0xf] }
 0x176   : > { %v539_v52 = vmul.f32 %v521_v46, %v505_v17  ;;  %v540_v31 = vmul.f32 %v522_v20, %v503_v49  ;;  %v502_v40 = vsel %vm501_vm6, %v494_v0, %v6361_v23  ;;  %v504_v3 = vsel %vm501_vm6, %v6534_v35, %v494_v0 }
 0x177   : > { %v533_v53 = vmul.f32 %v521_v46, %v504_v3  ;;  %v534_v2 = vmul.f32 %v522_v20, %v502_v40  ;;  %vm4503_vm6 = vcmask 23552  }
 0x178   : > { %v546_v57 = vpack.c.bf16 %v540_v31, %v539_v52 }
 0x179   : > { %1462 = vmatpush.bf16.msra.mxu3 %v4623_v22  ;;  %v543_v26 = vpack.c.bf16 %v534_v2, %v533_v53  ;;  %v4650_v4 = vld [vmem:[#allocation2 + $0x70] sm:$0xf]  ;;  %v5491_v58 = vld [vmem:[#allocation2 + $0x74] sm:$0xf] }
 0x17a   : > { %552 = vst [vmem:[#allocation2 + $0x58] sm:$0xff] %v546_v57  ;;  %v5481_v61 = vld [vmem:[#allocation2 + $0x1c] sm:$0xf0]  ;;  %v4596_v59 = vld [vmem:[#allocation2 + $0x20] sm:$0xf0]  ;;  %v4651_v36 = vor.u32 %v5494_v51, %v4650_v4  ;;  %v4655_v23 = vor.u32 %v5491_v58, %v4652_v37 }
 0x17b   : > { %549 = vst [vmem:[#allocation2 + $0x40] sm:$0xff] %v543_v26  ;;  %v4595_v18 = vor.u32 %v5481_v61, %v4594_v8  ;;  %v4599_v41 = vor.u32 %v5478_v48, %v4596_v59 }
 0x17c   : > { %v966_v35 = vpop.permute.xlu1 %965  ;;  %1489 = vmatpush.bf16.msrb.mxu2 %v4651_v36  ;;  %1517 = vmatpush.bf16.msra.mxu0 %v4655_v23 }
 0x17d   : > { %v970_v39 = vsel %vm969_vm3, %v6590_v44, %v966_v35  ;;  %v980_v6 = vsel %vm969_vm3, %v966_v35, %v6131_v30  ;;  %1435 = vmatpush.bf16.msrb.mxu1 %v4595_v18  ;;  %1463 = vmatpush.bf16.msra.mxu3 %v4599_v41  ;;  %v419_v21 = vpop.permute.xlu0 %418  ;;  %vm3068_vm3 = vcmp.lt.s32.totalorder %v6015_v16, 60 }
 0x17e   : > { %v1001_v60 = vmul.f32 %v989_v9, %v970_v39  ;;  %v1002_v50 = vmul.f32 %v990_v55, %v980_v6  ;;  %v428_v45 = vsel %vm426_vm7, %v419_v21, %v6536_v56  ;;  %v430_v44 = vsel %vm426_vm7, %v415_v63, %v419_v21  ;;  %v5530_v63 = vld [vmem:[#allocation2 + $0x1a4] sm:$0xf0] }
 0x17f   : > { %v463_v11 = vmul.f32 %v445_v32, %v430_v44  ;;  %v464_v30 = vmul.f32 %v446_v7, %v428_v45  ;;  %v4602_v32 = vld [vmem:[#allocation2 + $0x10] sm:$0xf] }
 0x180   : > { %v1011_v13 = vpack.c.bf16 %v1002_v50, %v1001_v60  ;;  %1436 = vmatmul.bf16.vlgmr.msrb.gmra.mxu1 %v6592_v38  ;;  %1464 = vmatmul.bf16.vlgmr.msra.gmra.mxu3 %v6592_v38 }
 0x181   : > { %v470_v5 = vpack.c.bf16 %v464_v30, %v463_v11  ;;  %v5488_v9 = vld [vmem:[#allocation2 + $0x54] sm:$0xf0]  ;;  %v4628_v55 = vld [vmem:[#allocation2 + $0x58] sm:$0xf0] }
 0x182   : > { %1017 = vst [vmem:[#allocation2 + $0x190] sm:$0xff] %v1011_v13  ;;  %v4626_v19 = vld [vmem:[#allocation2 + $0x40] sm:$0xf]  ;;  %v5485_v56 = vld [vmem:[#allocation2 + $0x44] sm:$0xf] }
 0x183   : > { %476 = vst [vmem:[#allocation2 + $0x28] sm:$0xff] %v470_v5  ;;  %v4627_v1 = vor.u32 %v5488_v9, %v4626_v19  ;;  %v4631_v12 = vor.u32 %v5485_v56, %v4628_v55 }
 0x185   : > { %1490 = vmatpush.bf16.msrb.mxu2 %v4627_v1  ;;  %1518 = vmatpush.bf16.msra.mxu0 %v4631_v12 }
 0x189   : > { %v4794_v27 = vld [vmem:[#allocation2 + $0x190] sm:$0xf]  ;;  %v5527_v7 = vld [vmem:[#allocation2 + $0x194] sm:$0xf] }
 0x18a   : > { %v5482_v33 = vld [vmem:[#allocation2 + $0x24] sm:$0xf0]  ;;  %v4795_v10 = vor.u32 %v5530_v63, %v4794_v27  ;;  %v4604_v24 = vld [vmem:[#allocation2 + $0x28] sm:$0xf0]  ;;  %v4799_v62 = vor.u32 %v5527_v7, %v4796_v54 }
 0x18b   : > { %v4603_v25 = vor.u32 %v5482_v33, %v4602_v32  ;;  %v4607_v14 = vor.u32 %v5479_v47, %v4604_v24 }
 0x18c   : > { %1505 = vmatpush.bf16.msra.mxu1 %v4795_v10 }
 0x18d   : > { %1491 = vmatpush.bf16.msrb.mxu2 %v4603_v25  ;;  %1519 = vmatpush.bf16.msra.mxu0 %v4607_v14 }
 0x190   : > { %1533 = vmatpush.bf16.msrb.mxu1 %v4799_v62  ;;  %1492 = vmatmul.bf16.vlgmr.msrb.gmra.mxu2 %v6592_v38 }
 0x191   : > { %4804 = vmatmul.msk.bf16.vlgmr.msra.gmra.mxu1 %vm1368_vm8, %v6508_v34  ;;  %1520 = vmatmul.bf16.vlgmr.msra.gmra.mxu0 %v6592_v38 }
 0x19c   : > { %v1082_v15 = vpop.permute.xlu0 %1081 }
 0x1a1   : > { %4805 = vmatmul.msk.bf16.vlgmr.msrb.gmra.mxu1 %vm1368_vm8, %v6508_v34 }
 0x1ae   : > { %v1395_v28 = vpop.f32.mrf.mxu1 }
 0x1b4   : > { %v1423_v22 = vpop.f32.mrf.mxu3 }
 0x1b6   : > { %v1397_v2 = vpop.f32.mrf.mxu1 }
 0x1bc   : > { %v1425_v31 = vpop.f32.mrf.mxu3 }
 0x1c4   : > { %v1087_v34 = vpop.permute.xlu1 %1086 }
 0x1cd   : > { %v1381_v43 = vpop.f32.mrf.mxu0 }
 0x1ce   : > { %v1382_v46 = vadd.f32 %v1381_v43, %v1082_v15 }
 0x1d0   : > { %v6745_v20 = vadd.f32 %v1395_v28, %v1382_v46 }
 0x1d2   : > { %v1540_v42 = vmax.f32 %v6745_v20, 0.0 }
 0x1d3   : > { %v1409_v29 = vpop.f32.mrf.mxu2 }
 0x1d4   : > { %1552 = vrot.lane.b32.xlu2 %v1540_v42, %s5795_s25  ;;  %v1410_v49 = vadd.f32 %v1409_v29, %v1082_v15 }
 0x1d5   : > { %v1383_v8 = vpop.f32.mrf.mxu0 }
 0x1d6   : > { %v6751_v17 = vadd.f32 %v1423_v22, %v1410_v49  ;;  %v1384_v48 = vadd.f32 %v1383_v8, %v1087_v34 }
 0x1d8   : > { %v1541_v38 = vmax.f32 %v6751_v17, 0.0  ;;  %v1398_v23 = vadd.f32 %v1397_v2, %v1384_v48 }
 0x1da   : > { %v1546_v6 = vmax.f32 %v1398_v23, 0.0 }
 0x1db   : > { %v1411_v0 = vpop.f32.mrf.mxu2 }
 0x1dc   : > { %1556 = vrot.lane.b32.xlu2 %v1541_v38, %s5795_s25  ;;  %v1412_v52 = vadd.f32 %v1411_v0, %v1087_v34 }
 0x1de   : > { %v6757_v40 = vadd.f32 %v1425_v31, %v1412_v52  ;;  %v1479_v58 = vpop.f32.mrf.mxu0 }
 0x1e0   : > { %v1547_v3 = vmax.f32 %v6757_v40, 0.0 }
 0x1e2   : > { %1558 = vrot.lane.b32.xlu0 %v1547_v3, %s5795_s25 }
 0x1e3   : > { %v1451_v53 = vpop.f32.mrf.mxu3 }
 0x1e6   : > { %v1481_v45 = vpop.f32.mrf.mxu0 }
 0x1eb   : > { %v1453_v57 = vpop.f32.mrf.mxu3 }
 0x1fd   : > { %v1437_v51 = vpop.f32.mrf.mxu1 }
 0x1fe   : > { %v1438_v37 = vadd.f32 %v1437_v51, %v1082_v15 }
 0x200   : > { %v6763_v26 = vadd.f32 %v1451_v53, %v1438_v37 }
 0x202   : > { %v1542_v4 = vmax.f32 %v6763_v26, 0.0 }
 0x203   : > { %v1465_v61 = vpop.f32.mrf.mxu3 }
 0x204   : > { %v1466_v59 = vadd.f32 %v1465_v61, %v1082_v15  ;;  %1560 = vrot.lane.b32.xlu1 %v1542_v4, %s5795_s25 }
 0x205   : > { %v1439_v36 = vpop.f32.mrf.mxu1 }
 0x206   : > { %v1480_v18 = vadd.f32 %v1479_v58, %v1466_v59  ;;  %v1440_v41 = vadd.f32 %v1439_v36, %v1087_v34 }
 0x208   : > { %v1543_v35 = vmax.f32 %v1480_v18, 0.0  ;;  %v6769_v39 = vadd.f32 %v1453_v57, %v1440_v41 }
 0x20a   : > { %v1548_v21 = vmax.f32 %v6769_v39, 0.0  ;;  %1564 = vrot.lane.b32.xlu0 %v1543_v35, %s5795_s25 }
 0x20b   : > { %v1467_v60 = vpop.f32.mrf.mxu3 }
 0x20c   : > { %v1468_v50 = vadd.f32 %v1467_v60, %v1087_v34  ;;  %1554 = vrot.lane.b32.xlu1 %v1546_v6, %s5795_s25  ;;  %1562 = vrot.lane.b32.xlu2 %v1548_v21, %s5795_s25 }
 0x20e   : > { %v1507_v44 = vpop.f32.mrf.mxu1  ;;  %v6777_v11 = vadd.f32 %v1481_v45, %v1468_v50  ;;  %v1521_v19 = vpop.f32.mrf.mxu0 }
 0x20f   : > { %v1522_v12 = vadd.f32 %v1521_v19, %v1082_v15 }
 0x210   : > { %v1549_v30 = vmax.f32 %v6777_v11, 0.0 }
 0x213   : > { %v1493_v13 = vpop.f32.mrf.mxu2 }
 0x214   : > { %v1494_v5 = vadd.f32 %v1493_v13, %v1082_v15  ;;  %1566 = vrot.lane.b32.xlu1 %v1549_v30, %s5795_s25 }
 0x216   : > { %v1509_v9 = vpop.f32.mrf.mxu1  ;;  %v6783_v55 = vadd.f32 %v1507_v44, %v1494_v5  ;;  %v1523_v10 = vpop.f32.mrf.mxu0 }
 0x217   : > { %v1524_v47 = vadd.f32 %v1523_v10, %v1087_v34 }
 0x218   : > { %v1544_v56 = vmax.f32 %v6783_v55, 0.0 }
 0x21a   : > { %1568 = vrot.lane.b32.xlu2 %v1544_v56, %s5795_s25 }
 0x21b   : > { %v1495_v1 = vpop.f32.mrf.mxu2 }
 0x21c   : > { %v1496_v32 = vadd.f32 %v1495_v1, %v1087_v34 }
 0x21e   : > { %v1535_v63 = vpop.f32.mrf.mxu1  ;;  %v1510_v27 = vadd.f32 %v1509_v9, %v1496_v32 }
 0x21f   : > { %v1536_v7 = vadd.f32 %v1535_v63, %v1522_v12 }
 0x220   : > { %v1550_v54 = vmax.f32 %v1510_v27, 0.0 }
 0x221   : > { %v1545_v33 = vmax.f32 %v1536_v7, 0.0 }
 0x222   : > { %1570 = vrot.lane.b32.xlu0 %v1550_v54, %s5795_s25 }
 0x223   : > { %1572 = vrot.lane.b32.xlu1 %v1545_v33, %s5795_s25 }
 0x226   : > { %v1537_v24 = vpop.f32.mrf.mxu1 }
 0x227   : > { %v1538_v62 = vadd.f32 %v1537_v24, %v1524_v47 }
 0x229   : > { %v1551_v25 = vmax.f32 %v1538_v62, 0.0 }
 0x22b   : > { %1574 = vrot.lane.b32.xlu2 %v1551_v25, %s5795_s25  ;;  %s5802_s25 = smov 32  }
 0x22e   : > { %v1553_v14 = vpop.permute.xlu2 %1552 }
 0x236   : > { %v1557_v43 = vpop.permute.xlu2 %1556 }
 0x237   : > { %v1584_v15 = vsel %vm741_vm2, %v1553_v14, %v1557_v43 }
 0x238   : > { %v1588_v28 = vmax.f32 %v1540_v42, %v1584_v15 }
 0x23a   : > { %1600 = vrot.lane.b32.xlu0 %v1588_v28, %s5793_s23 }
 0x254   : > { %v1559_v46 = vpop.permute.xlu0 %1558 }
 0x266   : > { %v1563_v29 = vpop.permute.xlu2 %1562 }
 0x267   : > { %v1583_v22 = vsel %vm741_vm2, %v1559_v46, %v1563_v29 }
 0x268   : > { %v6801_v49 = vmax.f32 %v1547_v3, %v1583_v22 }
 0x26a   : > { %1606 = vrot.lane.b32.xlu0 %v6801_v49, %s5793_s23 }
 0x274   : > { %v1569_v42 = vpop.permute.xlu2 %1568 }
 0x276   : > { %v1561_v34 = vpop.permute.xlu1 %1560 }
 0x277   : > { %v1582_v0 = vsel %vm741_vm2, %v1557_v43, %v1561_v34 }
 0x278   : > { %v6809_v20 = vmax.f32 %v1541_v38, %v1582_v0 }
 0x27a   : > { %1604 = vrot.lane.b32.xlu2 %v6809_v20, %s5793_s23 }
 0x27c   : > { %v1565_v52 = vpop.permute.xlu0 %1564 }
 0x27d   : > { %v1578_v31 = vsel %vm741_vm2, %v1565_v52, %v1569_v42  ;;  %v1580_v2 = vsel %vm741_vm2, %v1561_v34, %v1565_v52 }
 0x27e   : > { %v1555_v40 = vpop.permute.xlu1 %1554  ;;  %v6815_v3 = vmax.f32 %v1543_v35, %v1578_v31  ;;  %v6831_v48 = vmax.f32 %v1542_v4, %v1580_v2 }
 0x27f   : > { %v1585_v53 = vsel %vm741_vm2, %v1555_v40, %v1559_v46 }
 0x280   : > { %1612 = vrot.lane.b32.xlu0 %v6815_v3, %s5793_s23  ;;  %v1594_v17 = vmax.f32 %v1546_v6, %v1585_v53 }
 0x282   : > { %1602 = vrot.lane.b32.xlu1 %v1594_v17, %s5793_s23 }
 0x285   : > { %v1575_v38 = vpop.permute.xlu2 %1574 }
 0x286   : > { %v1587_v57 = vsel %vm741_vm2, %v1575_v38, %v1555_v40  ;;  %v1567_v8 = vpop.permute.xlu1 %1566 }
 0x287   : > { %v1599_v51 = vmax.f32 %v1551_v25, %v1587_v57  ;;  %v1581_v37 = vsel %vm741_vm2, %v1563_v29, %v1567_v8 }
 0x288   : > { %v6835_v58 = vmax.f32 %v1548_v21, %v1581_v37 }
 0x289   : > { %1622 = vrot.lane.b32.xlu0 %v1599_v51, %s5793_s23 }
 0x28a   : > { %1608 = vrot.lane.b32.xlu1 %v6831_v48, %s5793_s23  ;;  %1610 = vrot.lane.b32.xlu2 %v6835_v58, %s5793_s23 }
 0x294   : > { %v1571_v59 = vpop.permute.xlu0 %1570 }
 0x295   : > { %v1573_v61 = vpop.permute.xlu1 %1572  ;;  %v1579_v26 = vsel %vm741_vm2, %v1567_v8, %v1571_v59  ;;  %v1577_v41 = vsel %vm741_vm2, %v1571_v59, %v1575_v38 }
 0x296   : > { %v1586_v36 = vsel %vm741_vm2, %v1573_v61, %v1553_v14  ;;  %v6847_v4 = vmax.f32 %v1549_v30, %v1579_v26  ;;  %v1576_v18 = vsel %vm741_vm2, %v1569_v42, %v1573_v61  ;;  %v1598_v39 = vmax.f32 %v1550_v54, %v1577_v41 }
 0x297   : > { %v6849_v23 = vmax.f32 %v1545_v33, %v1586_v36  ;;  %v6861_v35 = vmax.f32 %v1544_v56, %v1576_v18  ;;  %vm2917_vm2 = vcmp.lt.s32.totalorder %v6015_v16, 68 }
 0x298   : > { %1614 = vrot.lane.b32.xlu1 %v6847_v4, %s5793_s23 }
 0x299   : > { %1620 = vrot.lane.b32.xlu2 %v6849_v23, %s5793_s23 }
 0x2a0   : > { %1616 = vrot.lane.b32.xlu1 %v6861_v35, %s5793_s23 }
 0x2a1   : > { %1618 = vrot.lane.b32.xlu2 %v1598_v39, %s5793_s23  ;;  %s5807_s23 = smov 2  }
 0x2ac   : > { %v1601_v6 = vpop.permute.xlu0 %1600 }
 0x2d4   : > { %v1605_v21 = vpop.permute.xlu2 %1604 }
 0x2d5   : > { %v1632_v60 = vsel %vm893_vm0, %v1601_v6, %v1605_v21 }
 0x2d6   : > { %v1636_v50 = vmax.f32 %v1588_v28, %v1632_v60 }
 0x2d8   : > { %1723 = vrot.lane.b32.xlu2 %v1636_v50, %s5802_s25  ;;  %1799 = vrot.lane.b32.xlu1 %v1636_v50, %s5803_s30 }
 0x2d9   : > { %2115 = vrot.lane.b32.xlu0 %v1636_v50, %s5804_s26 }
 0x2dc   : > { %v1607_v45 = vpop.permute.xlu0 %1606 }
 0x2e1   : > { %2039 = vrot.lane.b32.xlu0 %v1636_v50, %s5805_s12 }
 0x2e4   : > { %v1611_v44 = vpop.permute.xlu2 %1610 }
 0x2e5   : > { %v1631_v13 = vsel %vm893_vm0, %v1607_v45, %v1611_v44 }
 0x2e6   : > { %v6879_v55 = vmax.f32 %v6801_v49, %v1631_v13  ;;  %v7083_v13 = vld [vmem:[%s9027_s6 + $0x2a] sm:$0x3f] }
 0x2e9   : > { %1963 = vrot.lane.b32.xlu0 %v1636_v50, %s5806_s13 }
 0x2f1   : > { %1875 = vrot.lane.b32.xlu0 %v1636_v50, %s5807_s23 }
 0x2f2   : > { %v1613_v11 = vpop.permute.xlu0 %1612 }
 0x2f3   : > { %v1621_v30 = vpop.permute.xlu2 %1620 }
 0x2f4   : > { %v1603_v5 = vpop.permute.xlu1 %1602  ;;  %v1634_v46 = vsel %vm893_vm0, %v1621_v30, %v1601_v6 }
 0x2f5   : > { %v1633_v9 = vsel %vm893_vm0, %v1603_v5, %v1607_v45  ;;  %v6927_v0 = vmax.f32 %v6849_v23, %v1634_v46 }
 0x2f6   : > { %v1642_v19 = vmax.f32 %v1594_v17, %v1633_v9  ;;  %v2156_v9 = vperm.slane %v7083_v13, 1 }
 0x2f8   : > { %2117 = vrot.lane.b32.xlu1 %v1642_v19, %s5804_s26  ;;  %v1954_v56 = vpack.c.bf16 %v6879_v55, %v1642_v19 }
 0x2f9   : > { %1648 = vrot.lane.b32.xlu0 %v1636_v50, %s5808_s14 }
 0x2fa   : > { %1960 = vst [vmem:[#allocation2 + $0xd8] sm:$0xff] %v1954_v56 }
 0x2fb   : > { %v1623_v1 = vpop.permute.xlu0 %1622  ;;  %v1619_v12 = vpop.permute.xlu2 %1618 }
 0x2fc   : > { %v1635_v32 = vsel %vm893_vm0, %v1623_v1, %v1603_v5  ;;  %v1625_v63 = vsel %vm893_vm0, %v1619_v12, %v1623_v1  ;;  %v1609_v54 = vpop.permute.xlu1 %1608  ;;  %v2155_v5 = vperm.slane %v7083_v13, 0 }
 0x2fd   : > { %v6888_v27 = vmax.f32 %v1599_v51, %v1635_v32  ;;  %v6890_v7 = vmax.f32 %v1598_v39, %v1625_v63  ;;  %v1630_v33 = vsel %vm893_vm0, %v1605_v21, %v1609_v54  ;;  %v1628_v29 = vsel %vm893_vm0, %v1609_v54, %v1613_v11  ;;  %v7109_v54 = vld [vmem:[%s9027_s6 + $0x24] sm:$0x3f] }
 0x2fe   : > { %v1637_v10 = vmax.f32 %v6809_v20, %v1630_v33  ;;  %v1638_v20 = vmax.f32 %v6831_v48, %v1628_v29  ;;  %v7137_v29 = vld [vmem:[%s9027_s6 + $0x1e] sm:$0x3f] }
 0x2ff   : > { %v1956_v47 = vpack.c.bf16 %v6888_v27, %v6890_v7 }
 0x300   : > { %2041 = vrot.lane.b32.xlu1 %v1642_v19, %s5805_s12  ;;  %2119 = vrot.lane.b32.xlu2 %v1637_v10, %s5804_s26  ;;  %v1951_v24 = vpack.c.bf16 %v1637_v10, %v1636_v50 }
 0x301   : > { %1962 = vst [vmem:[#allocation2 + $0xe8] sm:$0xff] %v1956_v47  ;;  %2191 = vrot.lane.b32.xlu0 %v1636_v50, %s5809_s15  ;;  %v2080_v47 = vperm.slane %v7109_v54, 1 }
 0x302   : > { %1957 = vst [vmem:[#allocation2 + $0xc0] sm:$0xff] %v1951_v24 }
 0x308   : > { %1965 = vrot.lane.b32.xlu1 %v1642_v19, %s5806_s13  ;;  %2043 = vrot.lane.b32.xlu2 %v1637_v10, %s5805_s12 }
 0x309   : > { %1803 = vrot.lane.b32.xlu0 %v1637_v10, %s5803_s30 }
 0x30a   : > { %v1615_v62 = vpop.permute.xlu1 %1614 }
 0x30b   : > { %v1627_v25 = vsel %vm893_vm0, %v1615_v62, %v1619_v12  ;;  %v1629_v14 = vsel %vm893_vm0, %v1611_v44, %v1615_v62 }
 0x30c   : > { %v6908_v43 = vmax.f32 %v6835_v58, %v1629_v14  ;;  %v6911_v15 = vmax.f32 %v6847_v4, %v1627_v25 }
 0x30e   : > { %v1955_v28 = vpack.c.bf16 %v6911_v15, %v6908_v43 }
 0x310   : > { %1877 = vrot.lane.b32.xlu1 %v1642_v19, %s5807_s23  ;;  %1967 = vrot.lane.b32.xlu2 %v1637_v10, %s5806_s13  ;;  %1961 = vst [vmem:[#allocation2 + $0xe0] sm:$0xff] %v1955_v28 }
 0x311   : > { %1725 = vrot.lane.b32.xlu0 %v1642_v19, %s5802_s25 }
 0x312   : > { %v1617_v22 = vpop.permute.xlu1 %1616 }
 0x313   : > { %v1624_v49 = vsel %vm893_vm0, %v1617_v22, %v1621_v30  ;;  %v1626_v34 = vsel %vm893_vm0, %v1613_v11, %v1617_v22  ;;  %vm1672_vm0 = vcmp.lt.s32.totalorder %v6015_v16, 34 }
 0x314   : > { %v6931_v42 = vmax.f32 %v6815_v3, %v1626_v34  ;;  %v6934_v52 = vmax.f32 %v6861_v35, %v1624_v49  ;;  %v2003_v49 = vperm.slane %v7137_v29, 0  ;;  %v2004_v34 = vperm.slane %v7137_v29, 1 }
 0x316   : > { %v1952_v31 = vpack.c.bf16 %v6931_v42, %v1638_v20  ;;  %v1953_v40 = vpack.c.bf16 %v6927_v0, %v6934_v52 }
 0x318   : > { %1727 = vrot.lane.b32.xlu1 %v1637_v10, %s5802_s25  ;;  %1879 = vrot.lane.b32.xlu2 %v1637_v10, %s5807_s23  ;;  %1958 = vst [vmem:[#allocation2 + $0xc8] sm:$0xff] %v1952_v31 }
 0x319   : > { %2121 = vrot.lane.b32.xlu0 %v6879_v55, %s5804_s26  ;;  %1959 = vst [vmem:[#allocation2 + $0xd0] sm:$0xff] %v1953_v40 }
 0x320   : > { %1650 = vrot.lane.b32.xlu1 %v1642_v19, %s5808_s14  ;;  %1801 = vrot.lane.b32.xlu2 %v1642_v19, %s5803_s30 }
 0x321   : > { %2045 = vrot.lane.b32.xlu0 %v6879_v55, %s5805_s12 }
 0x328   : > { %2193 = vrot.lane.b32.xlu1 %v1642_v19, %s5809_s15  ;;  %1652 = vrot.lane.b32.xlu2 %v1637_v10, %s5808_s14 }
 0x329   : > { %1969 = vrot.lane.b32.xlu0 %v6879_v55, %s5806_s13 }
 0x330   : > { %2123 = vrot.lane.b32.xlu1 %v1638_v20, %s5804_s26  ;;  %2195 = vrot.lane.b32.xlu2 %v1637_v10, %s5809_s15  ;;  %v2079_v10 = vperm.slane %v7109_v54, 0 }
 0x331   : > { %1881 = vrot.lane.b32.xlu0 %v6879_v55, %s5807_s23 }
 0x332   : > { %v6975_v53 = vpop.permute.xlu2 %1723 }
 0x338   : > { %2047 = vrot.lane.b32.xlu1 %v1638_v20, %s5805_s12  ;;  %1729 = vrot.lane.b32.xlu2 %v6879_v55, %s5802_s25 }
 0x339   : > { %1654 = vrot.lane.b32.xlu0 %v6879_v55, %s5808_s14 }
 0x340   : > { %1971 = vrot.lane.b32.xlu1 %v1638_v20, %s5806_s13  ;;  %1883 = vrot.lane.b32.xlu2 %v1638_v20, %s5807_s23 }
 0x341   : > { %2197 = vrot.lane.b32.xlu0 %v6879_v55, %s5809_s15 }
 0x348   : > { %1807 = vrot.lane.b32.xlu2 %v1638_v20, %s5803_s30  ;;  %1805 = vrot.lane.b32.xlu1 %v6879_v55, %s5803_s30 }
 0x349   : > { %1885 = vrot.lane.b32.xlu0 %v6908_v43, %s5807_s23 }
 0x34a   : > { %v6992_v57 = vpop.permute.xlu1 %1799 }
 0x34b   : > { %v6969_v3 = vpop.permute.xlu0 %2115 }
 0x350   : > { %1731 = vrot.lane.b32.xlu2 %v1638_v20, %s5802_s25  ;;  %2199 = vrot.lane.b32.xlu1 %v1638_v20, %s5809_s15 }
 0x351   : > { %1809 = vrot.lane.b32.xlu0 %v6908_v43, %s5803_s30 }
 0x353   : > { %v6977_v17 = vpop.permute.xlu0 %2039 }
 0x358   : > { %1656 = vrot.lane.b32.xlu1 %v1638_v20, %s5808_s14  ;;  %2125 = vrot.lane.b32.xlu2 %v6908_v43, %s5804_s26 }
 0x359   : > { %1733 = vrot.lane.b32.xlu0 %v6908_v43, %s5802_s25 }
 0x35a   : > { %v2120_v38 = vpop.permute.xlu2 %2119 }
 0x35b   : > { %v6984_v2 = vpop.permute.xlu0 %1963  ;;  %v2148_v55 = vsel %vm2139_vm9, %v6969_v3, %v2120_v38 }
 0x35c   : > { %v2167_v32 = vmul.f32 %v2155_v5, %v2148_v55 }
 0x360   : > { %2049 = vrot.lane.b32.xlu2 %v6908_v43, %s5805_s12  ;;  %1895 = vrot.lane.b32.xlu1 %v6927_v0, %s5807_s23 }
 0x361   : > { %2127 = vrot.lane.b32.xlu0 %v6931_v42, %s5804_s26 }
 0x362   : > { %v6994_v8 = vpop.permute.xlu2 %2043 }
 0x363   : > { %v6996_v51 = vpop.permute.xlu0 %1875  ;;  %v2072_v24 = vsel %vm2063_vm10, %v6977_v17, %v6994_v8 }
 0x364   : > { %v2091_v28 = vmul.f32 %v2079_v10, %v2072_v24 }
 0x368   : > { %1973 = vrot.lane.b32.xlu2 %v6908_v43, %s5806_s13  ;;  %2051 = vrot.lane.b32.xlu1 %v6931_v42, %s5805_s12 }
 0x369   : > { %2055 = vrot.lane.b32.xlu0 %v6934_v52, %s5805_s12 }
 0x36a   : > { %v7004_v37 = vpop.permute.xlu1 %2117  ;;  %v7006_v48 = vpop.permute.xlu2 %1967 }
 0x36b   : > { %v7008_v58 = vpop.permute.xlu0 %1648  ;;  %v1996_v20 = vsel %vm1987_vm11, %v6984_v2, %v7006_v48 }
 0x370   : > { %2201 = vrot.lane.b32.xlu2 %v6908_v43, %s5809_s15  ;;  %1979 = vrot.lane.b32.xlu1 %v6934_v52, %s5806_s13 }
 0x371   : > { %1743 = vrot.lane.b32.xlu0 %v6927_v0, %s5802_s25 }
 0x372   : > { %v7016_v61 = vpop.permute.xlu1 %2041  ;;  %v7018_v59 = vpop.permute.xlu2 %1879 }
 0x373   : > { %9076 = vst [vmem:[#allocation3_spill] sm:$0xff] %v7016_v61  ;;  %v7020_v36 = vpop.permute.xlu0 %2191 }
 0x374   : > { %9077 = vst [vmem:[#allocation4_spill] sm:$0xff] %v7020_v36 }
 0x378   : > { %1658 = vrot.lane.b32.xlu2 %v6908_v43, %s5808_s14  ;;  %1668 = vrot.lane.b32.xlu1 %v6927_v0, %s5808_s14 }
 0x379   : > { %2135 = vrot.lane.b32.xlu0 %v6927_v0, %s5804_s26 }
 0x37a   : > { %v7028_v26 = vpop.permute.xlu1 %1965  ;;  %v7030_v4 = vpop.permute.xlu2 %1801 }
 0x37b   : > { %9078 = vst [vmem:[#allocation5_spill] sm:$0xff] %v7028_v26  ;;  %v7032_v23 = vpop.permute.xlu0 %1803 }
 0x380   : > { %1887 = vrot.lane.b32.xlu1 %v6931_v42, %s5807_s23  ;;  %2131 = vrot.lane.b32.xlu2 %v6934_v52, %s5804_s26 }
 0x381   : > { %2059 = vrot.lane.b32.xlu0 %v6927_v0, %s5805_s12 }
 0x382   : > { %v7040_v18 = vpop.permute.xlu1 %1877  ;;  %v7042_v41 = vpop.permute.xlu2 %1652 }
 0x383   : > { %v7044_v35 = vpop.permute.xlu0 %1725 }
 0x388   : > { %1811 = vrot.lane.b32.xlu1 %v6931_v42, %s5803_s30  ;;  %1819 = vrot.lane.b32.xlu2 %v6927_v0, %s5803_s30 }
 0x389   : > { %1983 = vrot.lane.b32.xlu0 %v6927_v0, %s5806_s13 }
 0x38a   : > { %v7052_v39 = vpop.permute.xlu1 %1727  ;;  %v7054_v6 = vpop.permute.xlu2 %2195 }
 0x38b   : > { %v2122_v21 = vpop.permute.xlu0 %2121 }
 0x38c   : > { %v2149_v31 = vsel %vm2139_vm9, %v7004_v37, %v2122_v21 }
 0x390   : > { %1735 = vrot.lane.b32.xlu1 %v6931_v42, %s5802_s25  ;;  %1975 = vrot.lane.b32.xlu2 %v6931_v42, %s5806_s13 }
 0x391   : > { %2203 = vrot.lane.b32.xlu0 %v6931_v42, %s5809_s15 }
 0x392   : > { %v7062_v60 = vpop.permute.xlu1 %1650  ;;  %v7064_v50 = vpop.permute.xlu2 %1729 }
 0x393   : > { %v7066_v45 = vpop.permute.xlu0 %2045 }
 0x398   : > { %2207 = vrot.lane.b32.xlu2 %v6934_v52, %s5809_s15  ;;  %2129 = vrot.lane.b32.xlu1 %v6911_v15, %s5804_s26 }
 0x399   : > { %2133 = vrot.lane.b32.xlu0 %v6890_v7, %s5804_s26 }
 0x39a   : > { %v7074_v44 = vpop.permute.xlu1 %2193  ;;  %v7076_v11 = vpop.permute.xlu2 %1883 }
 0x39b   : > { %9079 = vst [vmem:[#allocation6_spill] sm:$0xff] %v7074_v44  ;;  %v7078_v30 = vpop.permute.xlu0 %1969 }
 0x3a0   : > { %1897 = vrot.lane.b32.xlu2 %v6888_v27, %s5807_s23  ;;  %2057 = vrot.lane.b32.xlu1 %v6890_v7, %s5805_s12 }
 0x3a1   : > { %1821 = vrot.lane.b32.xlu0 %v6888_v27, %s5803_s30 }
 0x3a2   : > { %v7097_v19 = vpop.permute.xlu1 %2123  ;;  %v7099_v56 = vpop.permute.xlu2 %1807 }
 0x3a3   : > { %v2146_v1 = vsel %vm2139_vm9, %v2120_v38, %v7097_v19  ;;  %v7104_v12 = vpop.permute.xlu0 %1881 }
 0x3a4   : > { %v2168_v63 = vmul.f32 %v2156_v9, %v2146_v1 }
 0x3a6   : > { %v2179_v33 = vpack.c.bf16 %v2168_v63, %v2167_v32  ;;  %v2015_v32 = vmul.f32 %v2003_v49, %v1996_v20  ;;  %v2173_v63 = vmul.f32 %v2155_v5, %v2149_v31 }
 0x3a8   : > { %2185 = vst [vmem:[#allocation2 + $0x150] sm:$0xff] %v2179_v33  ;;  %2053 = vrot.lane.b32.xlu2 %v6911_v15, %s5805_s12  ;;  %1745 = vrot.lane.b32.xlu1 %v6888_v27, %s5802_s25 }
 0x3a9   : > { %1977 = vrot.lane.b32.xlu0 %v6911_v15, %s5806_s13 }
 0x3aa   : > { %v7124_v62 = vpop.permute.xlu1 %2047  ;;  %v7126_v25 = vpop.permute.xlu2 %1731 }
 0x3ab   : > { %v2070_v14 = vsel %vm2063_vm10, %v6994_v8, %v7124_v62  ;;  %v7132_v43 = vpop.permute.xlu0 %1654 }
 0x3ac   : > { %v2092_v46 = vmul.f32 %v2080_v47, %v2070_v14 }
 0x3ae   : > { %v2103_v22 = vpack.c.bf16 %v2092_v46, %v2091_v28  ;;  %v7189_v46 = vld [vmem:[%s9027_s6 + $0x30] sm:$0x3f] }
 0x3b0   : > { %2109 = vst [vmem:[#allocation2 + $0x120] sm:$0xff] %v2103_v22  ;;  %1891 = vrot.lane.b32.xlu2 %v6934_v52, %s5807_s23  ;;  %1815 = vrot.lane.b32.xlu1 %v6934_v52, %s5803_s30 }
 0x3b1   : > { %1660 = vrot.lane.b32.xlu0 %v6931_v42, %s5808_s14 }
 0x3b2   : > { %v7155_v40 = vpop.permute.xlu1 %1971  ;;  %v7157_v38 = vpop.permute.xlu2 %2125 }
 0x3b3   : > { %v1994_v8 = vsel %vm1987_vm11, %v7006_v48, %v7155_v40  ;;  %v2198_v55 = vpop.permute.xlu0 %2197  ;;  %v2147_v1 = vsel %vm2139_vm9, %v2122_v21, %v7157_v38  ;;  %v2073_v48 = vsel %vm2063_vm10, %v7016_v61, %v7066_v45 }
 0x3b4   : > { %v2016_v33 = vmul.f32 %v2004_v34, %v1994_v8  ;;  %v2174_v24 = vmul.f32 %v2156_v9, %v2147_v1  ;;  %v2097_v22 = vmul.f32 %v2079_v10, %v2073_v48  ;;  %v2231_v8 = vperm.slane %v7189_v46, 0  ;;  %v4991_v1 = vld [vmem:[#allocation2 + $0x150] sm:$0xf] }
 0x3b5   : > { %v2224_v10 = vsel %vm2215_vm12, %v7020_v36, %v7054_v6 }
 0x3b6   : > { %v2027_v14 = vpack.c.bf16 %v2016_v33, %v2015_v32  ;;  %v2182_v42 = vpack.c.bf16 %v2174_v24, %v2173_v63 }
 0x3b7   : > { %v4967_v36 = vld [vmem:[#allocation2 + $0x120] sm:$0xf] }
 0x3b8   : > { %2033 = vst [vmem:[#allocation2 + $0xf0] sm:$0xff] %v2027_v14  ;;  %1981 = vrot.lane.b32.xlu2 %v6890_v7, %s5806_s13  ;;  %2137 = vrot.lane.b32.xlu1 %v6888_v27, %s5804_s26 }
 0x3b9   : > { %2188 = vst [vmem:[#allocation2 + $0x168] sm:$0xff] %v2182_v42  ;;  %2209 = vrot.lane.b32.xlu0 %v6890_v7, %s5809_s15 }
 0x3ba   : > { %v7176_v21 = vpop.permute.xlu1 %1805  ;;  %v7178_v5 = vpop.permute.xlu2 %2049 }
 0x3bb   : > { %v7180_v9 = vpop.permute.xlu0 %1885  ;;  %v2071_v28 = vsel %vm2063_vm10, %v7066_v45, %v7178_v5  ;;  %v2232_v45 = vperm.slane %v7189_v46, 1 }
 0x3bc   : > { %v2098_v20 = vmul.f32 %v2080_v47, %v2071_v28  ;;  %v1997_v47 = vsel %vm1987_vm11, %v7028_v26, %v7078_v30  ;;  %v2243_v28 = vmul.f32 %v2231_v8, %v2224_v10 }
 0x3be   : > { %v2106_v31 = vpack.c.bf16 %v2098_v20, %v2097_v22  ;;  %v2021_v22 = vmul.f32 %v2003_v49, %v1997_v47 }
 0x3c0   : > { %2112 = vst [vmem:[#allocation2 + $0x138] sm:$0xff] %v2106_v31  ;;  %1670 = vrot.lane.b32.xlu2 %v6888_v27, %s5808_s14  ;;  %2061 = vrot.lane.b32.xlu1 %v6888_v27, %s5805_s12  ;;  %v5578_v32 = vld [vmem:[#allocation2 + $0x164] sm:$0xf0]  ;;  %s5474_s12 = sshll.u32 %s9126_s18, 4 }
 0x3c1   : > { %1893 = vrot.lane.b32.xlu0 %v6890_v7, %s5807_s23  ;;  %v4992_v63 = vor.u32 %v5578_v32, %v4991_v1  ;;  %s386_s19 = scalar_lea.vmem %s9032_s11, %s5474_s12 }
 0x3c2   : > { %v7208_v33 = vpop.permute.xlu1 %2199  ;;  %v7210_v24 = vpop.permute.xlu2 %1973 }
 0x3c3   : > { %v2222_v14 = vsel %vm2215_vm12, %v7054_v6, %v7208_v33  ;;  %v7216_v42 = vpop.permute.xlu0 %1809  ;;  %2617 = vmatpush.bf16.msrb.mxu3 %v4992_v63  ;;  %v1995_v48 = vsel %vm1987_vm11, %v7078_v30, %v7210_v24  ;;  %v2225_v30 = vsel %vm2215_vm12, %v7074_v44, %v2198_v55 }
 0x3c4   : > { %v2244_v20 = vmul.f32 %v2232_v45, %v2222_v14  ;;  %v2022_v31 = vmul.f32 %v2004_v34, %v1995_v48 }
 0x3c6   : > { %v2255_v1 = vpack.c.bf16 %v2244_v20, %v2243_v28  ;;  %v2030_v32 = vpack.c.bf16 %v2022_v31, %v2021_v22  ;;  %v4943_v28 = vld [vmem:[#allocation2 + $0xf0] sm:$0xf] }
 0x3c7   : > { %v5572_v26 = vld [vmem:[#allocation2 + $0x134] sm:$0xf0] }
 0x3c8   : > { %2261 = vst [vmem:[#allocation2 + $0x180] sm:$0xff] %v2255_v1  ;;  %1889 = vrot.lane.b32.xlu2 %v6911_v15, %s5807_s23  ;;  %1985 = vrot.lane.b32.xlu1 %v6888_v27, %s5806_s13  ;;  %v4968_v6 = vor.u32 %v5572_v26, %v4967_v36  ;;  %v7243_v36 = vld [vmem:[%s9027_s6 + $0x12] sm:$0x3f]  ;;  %v2249_v26 = vmul.f32 %v2231_v8, %v2225_v30  ;;  %v4919_v1 = vld [vmem:[#allocation2 + $0xc0] sm:$0xf] }
 0x3c9   : > { %2036 = vst [vmem:[#allocation2 + $0x108] sm:$0xff] %v2030_v32  ;;  %1739 = vrot.lane.b32.xlu0 %v6934_v52, %s5802_s25  ;;  %v9039_v48 = vperm.slane %v7243_v36, 1  ;;  %v1908_v8 = vsel %vm1899_vm13, %v6996_v51, %v7018_v59 }
 0x3ca   : > { %v7231_v49 = vpop.permute.xlu1 %1656  ;;  %2618 = vmatpush.bf16.msrb.mxu3 %v4968_v6  ;;  %v7233_v34 = vpop.permute.xlu2 %2201 }
 0x3cb   : > { %9080 = vst [vmem:[#allocation7_spill] sm:$0xff] %v7233_v34  ;;  %v7235_v10 = vpop.permute.xlu0 %1733  ;;  %v2223_v47 = vsel %vm2215_vm12, %v2198_v55, %v7233_v34  ;;  %v9038_v55 = vperm.slane %v7243_v36, 0  ;;  %v1928_v30 = vmul.f32 %v9039_v48, %v1908_v8  ;;  %v9041_v8 = vperm.slane %v7109_v54, 2 }
 0x3cc   : > { %v2250_v63 = vmul.f32 %v2232_v45, %v2223_v47 }
 0x3ce   : > { %v2258_v14 = vpack.c.bf16 %v2250_v63, %v2249_v26  ;;  %v5560_v26 = vld [vmem:[#allocation2 + $0xd4] sm:$0xf0] }
 0x3cf   : > { %v4920_v63 = vor.u32 %v5560_v26, %v4919_v1  ;;  %v5015_v44 = vld [vmem:[#allocation2 + $0x180] sm:$0xf] }
 0x3d0   : > { %2264 = vst [vmem:[#allocation2 + $0x198] sm:$0xff] %v2258_v14  ;;  %1813 = vrot.lane.b32.xlu2 %v6911_v15, %s5803_s30  ;;  %2205 = vrot.lane.b32.xlu1 %v6911_v15, %s5809_s15  ;;  %v5566_v22 = vld [vmem:[#allocation2 + $0x104] sm:$0xf0]  ;;  %v9044_v14 = vperm.slane %v7083_v13, 2 }
 0x3d1   : > { %1666 = vrot.lane.b32.xlu0 %v6890_v7, %s5808_s14  ;;  %v4944_v45 = vor.u32 %v5566_v22, %v4943_v28  ;;  %v2323_v22 = vld [vmem:[%s9026_s5] sm:$0xff] }
 0x3d2   : > { %v7258_v20 = vpop.permute.xlu1 %1895  ;;  %v7260_v31 = vpop.permute.xlu2 %1658 }
 0x3d3   : > { %9081 = vst [vmem:[#allocation8_spill] sm:$0xff] %v7260_v31  ;;  %v2128_v32 = vpop.permute.xlu0 %2127  ;;  %v1910_v6 = vsel %vm1899_vm13, %v7258_v20, %v6996_v51  ;;  %2619 = vmatpush.bf16.msrb.mxu3 %v4944_v45  ;;  %v4993_v31 = vld [vmem:[#allocation2 + $0x168] sm:$0xf0]  ;;  %v5581_v45 = vld [vmem:[#allocation2 + $0x184] sm:$0xf] }
 0x3d4   : > { %v1927_v47 = vmul.f32 %v9038_v55, %v1910_v6  ;;  %v2144_v26 = vsel %vm2139_vm9, %v7097_v19, %v2128_v32 }
 0x3d6   : > { %v1939_v28 = vpack.c.bf16 %v1928_v30, %v1927_v47  ;;  %v9042_v30 = vperm.slane %v7083_v13, 3  ;;  %v5575_v47 = vld [vmem:[#allocation2 + $0x154] sm:$0xf] }
 0x3d7   : > { %2620 = vmatpush.bf16.msrb.mxu3 %v4920_v63  ;;  %v5584_v51 = vld [vmem:[#allocation2 + $0x194] sm:$0xf0]  ;;  %v5017_v34 = vld [vmem:[#allocation2 + $0x198] sm:$0xf0]  ;;  %v9040_v63 = vperm.slane %v7109_v54, 3 }
 0x3d8   : > { %1945 = vst [vmem:[#allocation2 + $0x90] sm:$0xff] %v1939_v28  ;;  %1737 = vrot.lane.b32.xlu2 %v6911_v15, %s5802_s25  ;;  %1662 = vrot.lane.b32.xlu1 %v6911_v15, %s5808_s14  ;;  %v5016_v1 = vor.u32 %v5584_v51, %v5015_v44  ;;  %v5020_v6 = vor.u32 %v5581_v45, %v5017_v34  ;;  %v4969_v15 = vld [vmem:[#allocation2 + $0x138] sm:$0xf0]  ;;  %v5569_v45 = vld [vmem:[#allocation2 + $0x124] sm:$0xf] }
 0x3d9   : > { %2327 = vperm.xlu0 %5722, %v2323_v22   ;;  %v4996_v28 = vor.u32 %v5575_v47, %v4993_v31  ;;  %v2169_v31 = vmul.f32 %v9044_v14, %v2144_v26  ;;  %v7314_v47 = vld [vmem:[%s9027_s6 + $0x6] sm:$0x3f]  ;;  %v4945_v26 = vld [vmem:[#allocation2 + $0x108] sm:$0xf0] }
 0x3da   : > { %v2052_v55 = vpop.permute.xlu1 %2051  ;;  %2638 = vmatpush.bf16.msra.mxu1 %v5016_v1  ;;  %2666 = vmatpush.bf16.msrb.mxu0 %v5020_v6  ;;  %v7284_v48 = vpop.permute.xlu2 %2131  ;;  %v7306_v1 = vld [vmem:[%s9027_s6 + $0xc] sm:$0x3f]  ;;  %v4972_v6 = vor.u32 %v5569_v45, %v4969_v15  ;;  %v1756_v45 = vsel %vm1747_vm15, %v6975_v53, %v7052_v39 }
 0x3db   : > { %v2068_v44 = vsel %vm2063_vm10, %v7124_v62, %v2052_v55  ;;  %v7289_v34 = vpop.permute.xlu0 %2055  ;;  %v2142_v19 = vsel %vm2139_vm9, %v2128_v32, %v7284_v48  ;;  %v1839_v15 = vperm.slane %v7306_v1, 0 }
 0x3dc   : > { %v2093_v22 = vmul.f32 %v9041_v8, %v2068_v44  ;;  %v2066_v51 = vsel %vm2063_vm10, %v2052_v55, %v7289_v34  ;;  %v2170_v62 = vmul.f32 %v9042_v30, %v2142_v19  ;;  %v9043_v44 = vperm.slane %v7306_v1, 1  ;;  %v5563_v19 = vld [vmem:[#allocation2 + $0xf4] sm:$0xf]  ;;  %v4921_v30 = vld [vmem:[#allocation2 + $0xd8] sm:$0xf0] }
 0x3dd   : > { %v2094_v32 = vmul.f32 %v9040_v63, %v2066_v51  ;;  %v9046_v51 = vperm.slane %v7314_v47, 0 }
 0x3de   : > { %2645 = vmatpush.bf16.msrb.mxu1 %v4996_v28  ;;  %v2180_v55 = vpack.c.bf16 %v2170_v62, %v2169_v31  ;;  %v1832_v31 = vsel %vm1823_vm14, %v6992_v57, %v7032_v23  ;;  %v4948_v62 = vor.u32 %v5563_v19, %v4945_v26  ;;  %v7348_v19 = vld [vmem:[%s9027_s6] sm:$0x3f] }
 0x3df   : > { %v2104_v28 = vpack.c.bf16 %v2094_v32, %v2093_v22  ;;  %v1764_v22 = vperm.slane %v7314_v47, 1  ;;  %v1852_v26 = vmul.f32 %v9043_v44, %v1832_v31  ;;  %v9048_v14 = vperm.slane %v7348_v19, 1 }
 0x3e0   : > { %2186 = vst [vmem:[#allocation2 + $0x158] sm:$0xff] %v2180_v55  ;;  %1817 = vrot.lane.b32.xlu2 %v6890_v7, %s5803_s30  ;;  %1741 = vrot.lane.b32.xlu1 %v6890_v7, %s5802_s25 }
 0x3e1   : > { %2110 = vst [vmem:[#allocation2 + $0x128] sm:$0xff] %v2104_v28 }
 0x3e2   : > { %2646 = vmatpush.bf16.msrb.mxu1 %v4972_v6  ;;  %v7333_v7 = vpop.permute.xlu1 %1979  ;;  %v7335_v32 = vpop.permute.xlu2 %1819  ;;  %v5557_v6 = vld [vmem:[#allocation2 + $0xc4] sm:$0xf] }
 0x3e3   : > { %v7337_v55 = vpop.permute.xlu0 %1743  ;;  %v1834_v28 = vsel %vm1823_vm14, %v7335_v32, %v6992_v57  ;;  %v1776_v57 = vmul.f32 %v1764_v22, %v1756_v45  ;;  %v9056_v45 = vperm.slane %v7083_v13, 5 }
 0x3e4   : > { %v1758_v63 = vsel %vm1747_vm15, %v7337_v55, %v6975_v53  ;;  %v1851_v8 = vmul.f32 %v1839_v15, %v1834_v28  ;;  %v1681_v53 = vsel %vm1672_vm0, %v7008_v58, %v7042_v41 }
 0x3e5   : > { %v1775_v31 = vmul.f32 %v9046_v51, %v1758_v63  ;;  %v9047_v63 = vperm.slane %v7348_v19, 0 }
 0x3e6   : > { %2647 = vmatpush.bf16.msrb.mxu1 %v4948_v62  ;;  %v4924_v62 = vor.u32 %v5557_v6, %v4921_v30  ;;  %v1863_v44 = vpack.c.bf16 %v1852_v26, %v1851_v8  ;;  %v2005_v8 = vperm.slane %v7137_v29, 2  ;;  %v2159_v30 = vperm.slane %v7083_v13, 4 }
 0x3e7   : > { %v1787_v61 = vpack.c.bf16 %v1776_v57, %v1775_v31  ;;  %v2006_v6 = vperm.slane %v7137_v29, 3 }
 0x3e8   : > { %1869 = vst [vmem:[#allocation2 + $0x60] sm:$0xff] %v1863_v44  ;;  %1664 = vrot.lane.b32.xlu2 %v6934_v52, %s5808_s14  ;;  %2211 = vrot.lane.b32.xlu1 %v6927_v0, %s5809_s15  ;;  %v1700_v52 = vmul.f32 %v9048_v14, %v1681_v53 }
 0x3e9   : > { %1793 = vst [vmem:[#allocation2 + $0x30] sm:$0xff] %v1787_v61 }
 0x3ea   : > { %2648 = vmatpush.bf16.msrb.mxu1 %v4924_v62  ;;  %v7375_v28 = vpop.permute.xlu1 %1668  ;;  %v1976_v44 = vpop.permute.xlu2 %1975 }
 0x3eb   : > { %v1683_v0 = vsel %vm1672_vm0, %v7375_v28, %v7008_v58  ;;  %v2136_v26 = vpop.permute.xlu0 %2135  ;;  %v1990_v61 = vsel %vm1987_vm11, %v1976_v44, %v7333_v7  ;;  %v1992_v57 = vsel %vm1987_vm11, %v7155_v40, %v1976_v44 }
 0x3ec   : > { %v1699_v31 = vmul.f32 %v9047_v63, %v1683_v0  ;;  %v2140_v62 = vsel %vm2139_vm9, %v7284_v48, %v2136_v26  ;;  %v2150_v58 = vsel %vm2139_vm9, %v2136_v26, %v6969_v3  ;;  %v2017_v53 = vmul.f32 %v2005_v8, %v1992_v57  ;;  %v2324_v48 = vld [vmem:[%s9026_s5 + $0x8] sm:$0xff] }
 0x3ed   : > { %v2171_v51 = vmul.f32 %v2159_v30, %v2140_v62  ;;  %v2172_v40 = vmul.f32 %v9056_v45, %v2150_v58  ;;  %v2018_v44 = vmul.f32 %v2006_v6, %v1990_v61  ;;  %v1917_v3 = vperm.slane %v7243_v36, 2 }
 0x3ee   : > { %v1711_v0 = vpack.c.bf16 %v1700_v52, %v1699_v31  ;;  %v1918_v26 = vperm.slane %v7243_v36, 3  ;;  %v1906_v61 = vsel %vm1899_vm13, %v7018_v59, %v7076_v11  ;;  %v9050_v57 = vperm.slane %v7109_v54, 4 }
 0x3ef   : > { %v2181_v63 = vpack.c.bf16 %v2172_v40, %v2171_v51  ;;  %v2028_v14 = vpack.c.bf16 %v2018_v44, %v2017_v53  ;;  %v9049_v51 = vperm.slane %v7109_v54, 5  ;;  %v1929_v58 = vmul.f32 %v1917_v3, %v1906_v61 }
 0x3f0   : > { %1717 = vst [vmem:[#allocation2] sm:$0xff] %v1711_v0  ;;  %2213 = vrot.lane.b32.xlu2 %v6888_v27, %s5809_s15  ;;  %2332 = vperm.xlu1 %5723, %v2324_v48   ;;  %v1841_v44 = vperm.slane %v7306_v1, 2  ;;  %v1909_v0 = vsel %vm1899_vm13, %v7040_v18, %v7104_v12  ;;  %v9053_v61 = vperm.slane %v7137_v29, 4 }
 0x3f1   : > { %2187 = vst [vmem:[#allocation2 + $0x160] sm:$0xff] %v2181_v63 }
 0x3f2   : > { %2034 = vst [vmem:[#allocation2 + $0xf8] sm:$0xff] %v2028_v14  ;;  %v7418_v52 = vpop.permute.xlu1 %1887  ;;  %v7420_v31 = vpop.permute.xlu2 %2207 }
 0x3f3   : > { %v1904_v27 = vsel %vm1899_vm13, %v7076_v11, %v7418_v52  ;;  %v2060_v62 = vpop.permute.xlu0 %2059 }
 0x3f4   : > { %v1930_v59 = vmul.f32 %v1918_v26, %v1904_v27  ;;  %v2064_v14 = vsel %vm2063_vm10, %v7289_v34, %v2060_v62  ;;  %v2074_v63 = vsel %vm2063_vm10, %v2060_v62, %v6977_v17  ;;  %v1830_v17 = vsel %vm1823_vm14, %v7032_v23, %v7099_v56 }
 0x3f5   : > { %v2095_v53 = vmul.f32 %v9050_v57, %v2064_v14  ;;  %v2096_v11 = vmul.f32 %v9049_v51, %v2074_v63  ;;  %v9051_v34 = vperm.slane %v7306_v1, 3  ;;  %v9052_v27 = vperm.slane %v7137_v29, 5 }
 0x3f6   : > { %v1940_v40 = vpack.c.bf16 %v1930_v59, %v1929_v58  ;;  %v9082_v59 = vperm.slane %v7243_v36, 1  ;;  %v1853_v63 = vmul.f32 %v1841_v44, %v1830_v17  ;;  %v9083_v17 = vperm.slane %v7243_v36, 0 }
 0x3f7   : > { %v2105_v48 = vpack.c.bf16 %v2096_v11, %v2095_v53 }
 0x3f8   : > { %1946 = vst [vmem:[#allocation2 + $0x98] sm:$0xff] %v1940_v40  ;;  %v1934_v14 = vmul.f32 %v9082_v59, %v1909_v0 }
 0x3f9   : > { %2111 = vst [vmem:[#allocation2 + $0x130] sm:$0xff] %v2105_v48 }
 0x3fa   : > { %v7452_v62 = vpop.permute.xlu1 %1811  ;;  %v7454_v58 = vpop.permute.xlu2 %1897 }
 0x3fb   : > { %v1828_v23 = vsel %vm1823_vm14, %v7099_v56, %v7452_v62  ;;  %v1984_v53 = vpop.permute.xlu0 %1983  ;;  %v1911_v11 = vsel %vm1899_vm13, %v7454_v58, %v7040_v18 }
 0x3fc   : > { %v1854_v40 = vmul.f32 %v9051_v34, %v1828_v23  ;;  %v1988_v48 = vsel %vm1987_vm11, %v7333_v7, %v1984_v53  ;;  %v1998_v0 = vsel %vm1987_vm11, %v1984_v53, %v6984_v2  ;;  %v1933_v56 = vmul.f32 %v9083_v17, %v1911_v11  ;;  %v5531_v2 = vld [vmem:[%s9025_s4 + $0x4] sm:$0xf]  ;;  %v4817_v53 = vld [vmem:[%s9025_s4 + $0x8] sm:$0xf0] }
 0x3fd   : > { %v2019_v59 = vmul.f32 %v9053_v61, %v1988_v48  ;;  %v2020_v18 = vmul.f32 %v9052_v27, %v1998_v0  ;;  %v9055_v23 = vperm.slane %v7314_v47, 2  ;;  %v9054_v7 = vperm.slane %v7314_v47, 3 }
 0x3fe   : > { %v1864_v51 = vpack.c.bf16 %v1854_v40, %v1853_v63  ;;  %v1942_v57 = vpack.c.bf16 %v1934_v14, %v1933_v56  ;;  %v1754_v63 = vsel %vm1747_vm15, %v7052_v39, %v7126_v25  ;;  %v2233_v14 = vperm.slane %v7189_v46, 2 }
 0x3ff   : > { %v2029_v34 = vpack.c.bf16 %v2020_v18, %v2019_v59  ;;  %v7496_v11 = vor.u32 %v5531_v2, %v4817_v53  ;;  %v1777_v39 = vmul.f32 %v9055_v23, %v1754_v63  ;;  %v4895_v53 = vld [vmem:[#allocation2 + $0x90] sm:$0xf]  ;;  %v5551_v63 = vld [vmem:[#allocation2 + $0x94] sm:$0xf] }
 0x400   : > { %1870 = vst [vmem:[#allocation2 + $0x68] sm:$0xff] %v1864_v51  ;;  %v2234_v51 = vperm.slane %v7189_v46, 3 }
 0x401   : > { %2035 = vst [vmem:[#allocation2 + $0x100] sm:$0xff] %v2029_v34  ;;  %5037 = vmatmul.msk.bf16.vlgmr.msra.gmra.mxu1 %vm1368_vm8, %v7496_v11  ;;  %5038 = vmatmul.msk.bf16.vlgmr.msrb.gmra.mxu0 %vm1368_vm8, %v7496_v11 }
 0x402   : > { %1948 = vst [vmem:[#allocation2 + $0xa8] sm:$0xff] %v1942_v57  ;;  %v7498_v40 = vpop.permute.xlu1 %1735  ;;  %v2054_v48 = vpop.permute.xlu2 %2053 }
 0x403   : > { %v1752_v0 = vsel %vm1747_vm15, %v7126_v25, %v7498_v40  ;;  %v2204_v17 = vpop.permute.xlu0 %2203 }
 0x404   : > { %v1778_v57 = vmul.f32 %v9054_v7, %v1752_v0  ;;  %v2218_v34 = vsel %vm2215_vm12, %v2204_v17, %v7420_v31  ;;  %v2220_v25 = vsel %vm2215_vm12, %v7208_v33, %v2204_v17  ;;  %v1919_v0 = vperm.slane %v7243_v36, 4 }
 0x405   : > { %v2245_v56 = vmul.f32 %v2233_v14, %v2220_v25  ;;  %v2246_v59 = vmul.f32 %v2234_v51, %v2218_v34  ;;  %v1920_v7 = vperm.slane %v7243_v36, 5 }
 0x406   : > { %v1788_v18 = vpack.c.bf16 %v1778_v57, %v1777_v39 }
 0x407   : > { %v2256_v2 = vpack.c.bf16 %v2246_v59, %v2245_v56  ;;  %v9084_v56 = vperm.slane %v7083_v13, 2 }
 0x408   : > { %1794 = vst [vmem:[#allocation2 + $0x38] sm:$0xff] %v1788_v18 }
 0x409   : > { %2262 = vst [vmem:[#allocation2 + $0x188] sm:$0xff] %v2256_v2  ;;  %v5554_v27 = vld [vmem:[#allocation2 + $0xa4] sm:$0xf0]  ;;  %v4897_v61 = vld [vmem:[#allocation2 + $0xa8] sm:$0xf0] }
 0x40a   : > { %v2130_v23 = vpop.permute.xlu1 %2129  ;;  %v4896_v33 = vor.u32 %v5554_v27, %v4895_v53  ;;  %v4900_v17 = vor.u32 %v5551_v63, %v4897_v61  ;;  %v1892_v45 = vpop.permute.xlu2 %1891  ;;  %v9085_v27 = vperm.slane %v7083_v13, 3 }
 0x40b   : > { %v2145_v34 = vsel %vm2139_vm9, %v7157_v38, %v2130_v23  ;;  %v7527_v39 = vpop.permute.xlu0 %2133  ;;  %v1900_v57 = vsel %vm1899_vm13, %v1892_v45, %v7258_v20  ;;  %v1902_v25 = vsel %vm1899_vm13, %v7418_v52, %v1892_v45  ;;  %v2069_v52 = vsel %vm2063_vm10, %v7178_v5, %v2054_v48 }
 0x40c   : > { %v2175_v59 = vmul.f32 %v9084_v56, %v2145_v34  ;;  %v2143_v61 = vsel %vm2139_vm9, %v2130_v23, %v7527_v39  ;;  %2621 = vmatpush.bf16.msrb.mxu3 %v4896_v33  ;;  %2649 = vmatpush.bf16.msrb.mxu1 %v4900_v17  ;;  %v1931_v38 = vmul.f32 %v1919_v0, %v1902_v25  ;;  %v9086_v34 = vperm.slane %v7109_v54, 2 }
 0x40d   : > { %v2176_v18 = vmul.f32 %v9085_v27, %v2143_v61  ;;  %v1932_v20 = vmul.f32 %v1920_v7, %v1900_v57  ;;  %v1833_v23 = vsel %vm1823_vm14, %v7030_v4, %v7176_v21  ;;  %v9087_v57 = vperm.slane %v7109_v54, 3 }
 0x40e   : > { %v2099_v5 = vmul.f32 %v9086_v34, %v2069_v52  ;;  %v1757_v27 = vsel %vm1747_vm15, %v7044_v35, %v7064_v50 }
 0x40f   : > { %v2183_v2 = vpack.c.bf16 %v2176_v18, %v2175_v59  ;;  %v1941_v45 = vpack.c.bf16 %v1932_v20, %v1931_v38  ;;  %v9088_v59 = vperm.slane %v7306_v1, 1  ;;  %v4999_v20 = vld [vmem:[#allocation2 + $0x158] sm:$0xf] }
 0x411   : > { %2189 = vst [vmem:[#allocation2 + $0x170] sm:$0xff] %v2183_v2  ;;  %v1858_v61 = vmul.f32 %v9088_v59, %v1833_v23  ;;  %v5576_v2 = vld [vmem:[#allocation2 + $0x15c] sm:$0xf] }
 0x412   : > { %1947 = vst [vmem:[#allocation2 + $0xa0] sm:$0xff] %v1941_v45  ;;  %v7553_v53 = vpop.permute.xlu1 %2057  ;;  %v7555_v63 = vpop.permute.xlu2 %1981 }
 0x413   : > { %v2067_v33 = vsel %vm2063_vm10, %v2054_v48, %v7553_v53  ;;  %v7560_v17 = vpop.permute.xlu0 %1821 }
 0x414   : > { %v2100_v25 = vmul.f32 %v9087_v57, %v2067_v33  ;;  %v1835_v56 = vsel %vm1823_vm14, %v7560_v17, %v7030_v4  ;;  %v1682_v4 = vsel %vm1672_vm0, %v7062_v60, %v7132_v43  ;;  %v1782_v33 = vmul.f32 %v1764_v22, %v1757_v27 }
 0x415   : > { %v1857_v38 = vmul.f32 %v1839_v15, %v1835_v56  ;;  %v9089_v57 = vperm.slane %v7348_v19, 1 }
 0x416   : > { %v2107_v48 = vpack.c.bf16 %v2100_v25, %v2099_v5 }
 0x417   : > { %v1866_v18 = vpack.c.bf16 %v1858_v61, %v1857_v38  ;;  %v1706_v25 = vmul.f32 %v9089_v57, %v1682_v4  ;;  %v9090_v61 = vperm.slane %v7314_v47, 0 }
 0x418   : > { %2113 = vst [vmem:[#allocation2 + $0x140] sm:$0xff] %v2107_v48  ;;  %v5579_v45 = vld [vmem:[#allocation2 + $0x16c] sm:$0xf0]  ;;  %v5001_v52 = vld [vmem:[#allocation2 + $0x170] sm:$0xf0] }
 0x419   : > { %1872 = vst [vmem:[#allocation2 + $0x78] sm:$0xff] %v1866_v18  ;;  %v5000_v23 = vor.u32 %v5579_v45, %v4999_v20  ;;  %v5004_v15 = vor.u32 %v5576_v2, %v5001_v52  ;;  %v4975_v2 = vld [vmem:[#allocation2 + $0x128] sm:$0xf]  ;;  %v4871_v52 = vld [vmem:[#allocation2 + $0x60] sm:$0xf] }
 0x41a   : > { %v7584_v34 = vpop.permute.xlu1 %1745  ;;  %v7586_v5 = vpop.permute.xlu2 %1670 }
 0x41b   : > { %v1759_v56 = vsel %vm1747_vm15, %v7584_v34, %v7044_v35  ;;  %v1978_v59 = vpop.permute.xlu0 %1977  ;;  %2673 = vmatpush.bf16.msra.mxu2 %v5000_v23  ;;  %2701 = vmatpush.bf16.msra.mxu0 %v5004_v15  ;;  %v1684_v22 = vsel %vm1672_vm0, %v7586_v5, %v7062_v60  ;;  %v9091_v35 = vperm.slane %v7348_v19, 0  ;;  %v5545_v23 = vld [vmem:[#allocation2 + $0x64] sm:$0xf]  ;;  %v5570_v15 = vld [vmem:[#allocation2 + $0x12c] sm:$0xf] }
 0x41c   : > { %v1781_v38 = vmul.f32 %v9090_v61, %v1759_v56  ;;  %v1991_v48 = vsel %vm1987_vm11, %v1978_v59, %v7555_v63  ;;  %v1993_v27 = vsel %vm1987_vm11, %v7210_v24, %v1978_v59  ;;  %v1907_v24 = vsel %vm1899_vm13, %v7104_v12, %v7180_v9 }
 0x41d   : > { %v1705_v18 = vmul.f32 %v9091_v35, %v1684_v22  ;;  %v2023_v20 = vmul.f32 %v2005_v8, %v1993_v27  ;;  %v2024_v60 = vmul.f32 %v2006_v6, %v1991_v48  ;;  %v1843_v56 = vperm.slane %v7306_v1, 4 }
 0x41e   : > { %v1790_v4 = vpack.c.bf16 %v1782_v33, %v1781_v38  ;;  %v1844_v8 = vperm.slane %v7306_v1, 5  ;;  %v1689_v38 = vperm.slane %v7348_v19, 2  ;;  %v1690_v48 = vperm.slane %v7348_v19, 3 }
 0x41f   : > { %v1714_v45 = vpack.c.bf16 %v1706_v25, %v1705_v18  ;;  %v2031_v57 = vpack.c.bf16 %v2024_v60, %v2023_v20  ;;  %v5573_v59 = vld [vmem:[#allocation2 + $0x13c] sm:$0xf0]  ;;  %v4977_v22 = vld [vmem:[#allocation2 + $0x140] sm:$0xf0]  ;;  %v1935_v12 = vmul.f32 %v1917_v3, %v1907_v24  ;;  %v1679_v18 = vsel %vm1672_vm0, %v7042_v41, %v7231_v49 }
 0x420   : > { %1796 = vst [vmem:[#allocation2 + $0x48] sm:$0xff] %v1790_v4  ;;  %v5548_v6 = vld [vmem:[#allocation2 + $0x74] sm:$0xf0]  ;;  %v4873_v61 = vld [vmem:[#allocation2 + $0x78] sm:$0xf0]  ;;  %v4976_v33 = vor.u32 %v5573_v59, %v4975_v2  ;;  %v4980_v25 = vor.u32 %v5570_v15, %v4977_v22 }
 0x421   : > { %2037 = vst [vmem:[#allocation2 + $0x110] sm:$0xff] %v2031_v57  ;;  %v4872_v27 = vor.u32 %v5548_v6, %v4871_v52  ;;  %v4876_v35 = vor.u32 %v5545_v23, %v4873_v61  ;;  %v1701_v23 = vmul.f32 %v1689_v38, %v1679_v18  ;;  %v4847_v57 = vld [vmem:[#allocation2 + $0x30] sm:$0xf]  ;;  %v5539_v59 = vld [vmem:[#allocation2 + $0x34] sm:$0xf]  ;;  %v1831_v6 = vsel %vm1823_vm14, %v7176_v21, %v7216_v42 }
 0x422   : > { %1720 = vst [vmem:[#allocation2 + $0x18] sm:$0xff] %v1714_v45  ;;  %v1816_v20 = vpop.permute.xlu1 %1815  ;;  %2674 = vmatpush.bf16.msra.mxu2 %v4976_v33  ;;  %2702 = vmatpush.bf16.msra.mxu0 %v4980_v25  ;;  %v7626_v60 = vpop.permute.xlu2 %1889  ;;  %v4951_v22 = vld [vmem:[#allocation2 + $0xf8] sm:$0xf]  ;;  %v4823_v25 = vld [vmem:[#allocation2] sm:$0xf]  ;;  %v1859_v21 = vmul.f32 %v1841_v44, %v1831_v6 }
 0x423   : > { %v1824_v2 = vsel %vm1823_vm14, %v1816_v20, %v7335_v32  ;;  %v1826_v4 = vsel %vm1823_vm14, %v7452_v62, %v1816_v20  ;;  %v7634_v3 = vpop.permute.xlu0 %1660  ;;  %2622 = vmatpush.bf16.msrb.mxu3 %v4872_v27  ;;  %2650 = vmatpush.bf16.msrb.mxu1 %v4876_v35  ;;  %v1905_v41 = vsel %vm1899_vm13, %v7180_v9, %v7626_v60 }
 0x424   : > { %v1855_v45 = vmul.f32 %v1843_v56, %v1826_v4  ;;  %v1856_v52 = vmul.f32 %v1844_v8, %v1824_v2  ;;  %v1677_v32 = vsel %vm1672_vm0, %v7231_v49, %v7634_v3  ;;  %v1936_v62 = vmul.f32 %v1918_v26, %v1905_v41  ;;  %v5564_v26 = vld [vmem:[#allocation2 + $0xfc] sm:$0xf]  ;;  %v4927_v2 = vld [vmem:[#allocation2 + $0xc8] sm:$0xf] }
 0x425   : > { %v1702_v9 = vmul.f32 %v1690_v48, %v1677_v32 }
 0x426   : > { %v1865_v15 = vpack.c.bf16 %v1856_v52, %v1855_v45  ;;  %v1943_v24 = vpack.c.bf16 %v1936_v62, %v1935_v12  ;;  %v5558_v12 = vld [vmem:[#allocation2 + $0xcc] sm:$0xf] }
 0x427   : > { %v1712_v49 = vpack.c.bf16 %v1702_v9, %v1701_v23  ;;  %v5542_v61 = vld [vmem:[#allocation2 + $0x44] sm:$0xf0]  ;;  %v4849_v33 = vld [vmem:[#allocation2 + $0x48] sm:$0xf0]  ;;  %v4815_v9 = vld [vmem:[%s9025_s4] sm:$0xf] }
 0x428   : > { %1871 = vst [vmem:[#allocation2 + $0x70] sm:$0xff] %v1865_v15  ;;  %v4848_v27 = vor.u32 %v5542_v61, %v4847_v57  ;;  %v4852_v35 = vor.u32 %v5539_v59, %v4849_v33  ;;  %v5567_v18 = vld [vmem:[#allocation2 + $0x10c] sm:$0xf0]  ;;  %v4953_v20 = vld [vmem:[#allocation2 + $0x110] sm:$0xf0]  ;;  %v9093_v61 = vperm.slane %v7306_v1, 3 }
 0x429   : > { %1718 = vst [vmem:[#allocation2 + $0x8] sm:$0xff] %v1712_v49  ;;  %v4952_v4 = vor.u32 %v5567_v18, %v4951_v22  ;;  %v4956_v41 = vor.u32 %v5564_v26, %v4953_v20  ;;  %v5536_v45 = vld [vmem:[#allocation2 + $0x14] sm:$0xf0]  ;;  %v4825_v52 = vld [vmem:[#allocation2 + $0x18] sm:$0xf0]  ;;  %v9092_v49 = vperm.slane %v7083_v13, 5 }
 0x42a   : > { %1949 = vst [vmem:[#allocation2 + $0xb0] sm:$0xff] %v1943_v24  ;;  %v2138_v32 = vpop.permute.xlu1 %2137  ;;  %2623 = vmatpush.bf16.msrb.mxu3 %v4848_v27  ;;  %2651 = vmatpush.bf16.msrb.mxu1 %v4852_v35  ;;  %v7660_v62 = vpop.permute.xlu2 %1813  ;;  %v4824_v23 = vor.u32 %v5536_v45, %v4823_v25  ;;  %v5532_v15 = vld [vmem:[%s9025_s4 + $0x4] sm:$0xf0]  ;;  %v5533_v22 = vld [vmem:[#allocation2 + $0x4] sm:$0xf] }
 0x42b   : > { %v2141_v57 = vsel %vm2139_vm9, %v7527_v39, %v2138_v32  ;;  %v2151_v44 = vsel %vm2139_vm9, %v2138_v32, %v7004_v37  ;;  %v7674_v24 = vpop.permute.xlu0 %2209  ;;  %2675 = vmatpush.bf16.msra.mxu2 %v4952_v4  ;;  %2703 = vmatpush.bf16.msra.mxu0 %v4956_v41  ;;  %v1829_v59 = vsel %vm1823_vm14, %v7216_v42, %v7660_v62  ;;  %v5561_v26 = vld [vmem:[#allocation2 + $0xdc] sm:$0xf0]  ;;  %v4929_v25 = vld [vmem:[#allocation2 + $0xe0] sm:$0xf0]  ;;  %v4903_v42 = vld [vmem:[#allocation2 + $0x98] sm:$0xf] }
 0x42c   : > { %v2177_v6 = vmul.f32 %v2159_v30, %v2141_v57  ;;  %v2178_v39 = vmul.f32 %v9092_v49, %v2151_v44  ;;  %v1860_v33 = vmul.f32 %v9093_v61, %v1829_v59  ;;  %v4828_v37 = vor.u32 %v5533_v22, %v4825_v52  ;;  %v5552_v13 = vld [vmem:[#allocation2 + $0x9c] sm:$0xf] }
 0x42d   : > { %v4928_v27 = vor.u32 %v5561_v26, %v4927_v2  ;;  %v4932_v35 = vor.u32 %v5558_v12, %v4929_v25  ;;  %v7686_v18 = vor.u32 %v5532_v15, %v4815_v9  ;;  %v1755_v2 = vsel %vm1747_vm15, %v7064_v50, %v7235_v10  ;;  %v4879_v25 = vld [vmem:[#allocation2 + $0x68] sm:$0xf] }
 0x42e   : > { %v2184_v20 = vpack.c.bf16 %v2178_v39, %v2177_v6  ;;  %v1867_v4 = vpack.c.bf16 %v1860_v33, %v1859_v21  ;;  %2624 = vmatpush.bf16.msrb.mxu3 %v4824_v23  ;;  %2652 = vmatpush.bf16.msrb.mxu1 %v4828_v37  ;;  %v9094_v23 = vld [vmem:[#allocation3_spill] sm:$0xff]  ;;  %v9095_v50 = vperm.slane %v7109_v54, 4  ;;  %v9096_v59 = vperm.slane %v7109_v54, 5 }
 0x42f   : > { %2676 = vmatpush.bf16.msra.mxu2 %v4928_v27  ;;  %2704 = vmatpush.bf16.msra.mxu0 %v4932_v35  ;;  %v9097_v49 = vperm.slane %v7314_v47, 2  ;;  %v9098_v54 = vperm.slane %v7314_v47, 3  ;;  %v5546_v27 = vld [vmem:[#allocation2 + $0x6c] sm:$0xf] }
 0x430   : > { %2190 = vst [vmem:[#allocation2 + $0x178] sm:$0xff] %v2184_v20  ;;  %v1767_v20 = vperm.slane %v7314_v47, 4 }
 0x431   : > { %1873 = vst [vmem:[#allocation2 + $0x80] sm:$0xff] %v1867_v4  ;;  %2625 = vmatmul.bf16.vlgmr.msrb.gmra.mxu3 %v7686_v18  ;;  %2653 = vmatmul.bf16.vlgmr.msrb.gmra.mxu1 %v7686_v18  ;;  %v5555_v30 = vld [vmem:[#allocation2 + $0xac] sm:$0xf0]  ;;  %v4905_v41 = vld [vmem:[#allocation2 + $0xb0] sm:$0xf0]  ;;  %v1783_v39 = vmul.f32 %v9097_v49, %v1755_v2 }
 0x432   : > { %v2062_v12 = vpop.permute.xlu1 %2061  ;;  %v4904_v45 = vor.u32 %v5555_v30, %v4903_v42  ;;  %v4908_v52 = vor.u32 %v5552_v13, %v4905_v41  ;;  %v7694_v21 = vpop.permute.xlu2 %1737  ;;  %v9099_v30 = vld [vmem:[#allocation5_spill] sm:$0xff] }
 0x433   : > { %v2065_v32 = vsel %vm2063_vm10, %v7553_v53, %v2062_v12  ;;  %v2075_v9 = vsel %vm2063_vm10, %v2062_v12, %v9094_v23  ;;  %v1894_v15 = vpop.permute.xlu0 %1893  ;;  %v1753_v57 = vsel %vm1747_vm15, %v7235_v10, %v7694_v21 }
 0x434   : > { %v2101_v44 = vmul.f32 %v9095_v50, %v2065_v32  ;;  %v2102_v22 = vmul.f32 %v9096_v59, %v2075_v9  ;;  %v1901_v53 = vsel %vm1899_vm13, %v1894_v15, %v7454_v58  ;;  %v1903_v6 = vsel %vm1899_vm13, %v7626_v60, %v1894_v15  ;;  %2677 = vmatpush.bf16.msra.mxu2 %v4904_v45 }
 0x435   : > { %v1937_v10 = vmul.f32 %v1919_v0, %v1903_v6  ;;  %v1938_v61 = vmul.f32 %v1920_v7, %v1901_v53  ;;  %2705 = vmatpush.bf16.msra.mxu0 %v4908_v52  ;;  %v1784_v33 = vmul.f32 %v9098_v54, %v1753_v57  ;;  %v1768_v0 = vperm.slane %v7314_v47, 5  ;;  %v5540_v53 = vld [vmem:[#allocation2 + $0x3c] sm:$0xf] }
 0x436   : > { %v2108_v37 = vpack.c.bf16 %v2102_v22, %v2101_v44  ;;  %v9100_v45 = vperm.slane %v7137_v29, 4  ;;  %v9101_v32 = vperm.slane %v7137_v29, 5  ;;  %v1692_v59 = vperm.slane %v7348_v19, 5  ;;  %v4855_v22 = vld [vmem:[#allocation2 + $0x38] sm:$0xf] }
 0x437   : > { %v1944_v58 = vpack.c.bf16 %v1938_v61, %v1937_v10  ;;  %v1791_v26 = vpack.c.bf16 %v1784_v33, %v1783_v39  ;;  %v1691_v39 = vperm.slane %v7348_v19, 4 }
 0x438   : > { %2114 = vst [vmem:[#allocation2 + $0x148] sm:$0xff] %v2108_v37  ;;  %v5549_v60 = vld [vmem:[#allocation2 + $0x7c] sm:$0xf0]  ;;  %v4881_v35 = vld [vmem:[#allocation2 + $0x80] sm:$0xf0] }
 0x439   : > { %1950 = vst [vmem:[#allocation2 + $0xb8] sm:$0xff] %v1944_v58  ;;  %v4880_v4 = vor.u32 %v5549_v60, %v4879_v25  ;;  %v4884_v36 = vor.u32 %v5546_v27, %v4881_v35 }
 0x43a   : > { %1797 = vst [vmem:[#allocation2 + $0x50] sm:$0xff] %v1791_v26  ;;  %v1986_v7 = vpop.permute.xlu1 %1985  ;;  %v1818_v42 = vpop.permute.xlu2 %1817 }
 0x43b   : > { %v1989_v13 = vsel %vm1987_vm11, %v7555_v63, %v1986_v7  ;;  %v1999_v41 = vsel %vm1987_vm11, %v1986_v7, %v9099_v30  ;;  %v1740_v2 = vpop.permute.xlu0 %1739  ;;  %2678 = vmatpush.bf16.msra.mxu2 %v4880_v4  ;;  %2706 = vmatpush.bf16.msra.mxu0 %v4884_v36  ;;  %v1825_v12 = vsel %vm1823_vm14, %v1818_v42, %v7560_v17  ;;  %v9103_v4 = vld [vmem:[#allocation8_spill] sm:$0xff] }
 0x43c   : > { %v2025_v52 = vmul.f32 %v9100_v45, %v1989_v13  ;;  %v2026_v23 = vmul.f32 %v9101_v32, %v1999_v41  ;;  %v1748_v63 = vsel %vm1747_vm15, %v1740_v2, %v7337_v55  ;;  %v1750_v9 = vsel %vm1747_vm15, %v7498_v40, %v1740_v2  ;;  %v9104_v2 = vld [vmem:[#allocation6_spill] sm:$0xff] }
 0x43d   : > { %v1779_v15 = vmul.f32 %v1767_v20, %v1750_v9  ;;  %v1780_v17 = vmul.f32 %v1768_v0, %v1748_v63  ;;  %v1827_v57 = vsel %vm1823_vm14, %v7660_v62, %v1818_v42  ;;  %v1862_v29 = vmul.f32 %v1844_v8, %v1825_v12 }
 0x43e   : > { %v2032_v50 = vpack.c.bf16 %v2026_v23, %v2025_v52  ;;  %v1861_v55 = vmul.f32 %v1843_v56, %v1827_v57  ;;  %v9102_v56 = vld [vmem:[#allocation7_spill] sm:$0xff] }
 0x43f   : > { %v1789_v44 = vpack.c.bf16 %v1780_v17, %v1779_v15  ;;  %v5023_v15 = vld [vmem:[#allocation2 + $0x188] sm:$0xf]  ;;  %v5580_v17 = vld [vmem:[#allocation2 + $0x174] sm:$0xf0] }
 0x440   : > { %2038 = vst [vmem:[#allocation2 + $0x118] sm:$0xff] %v2032_v50  ;;  %v1868_v40 = vpack.c.bf16 %v1862_v29, %v1861_v55  ;;  %v5582_v29 = vld [vmem:[#allocation2 + $0x18c] sm:$0xf] }
 0x441   : > { %1795 = vst [vmem:[#allocation2 + $0x40] sm:$0xff] %v1789_v44  ;;  %v5543_v6 = vld [vmem:[#allocation2 + $0x4c] sm:$0xf0]  ;;  %v4857_v49 = vld [vmem:[#allocation2 + $0x50] sm:$0xf0] }
 0x442   : > { %1874 = vst [vmem:[#allocation2 + $0x88] sm:$0xff] %v1868_v40  ;;  %v2206_v62 = vpop.permute.xlu1 %2205  ;;  %v4856_v10 = vor.u32 %v5543_v6, %v4855_v22  ;;  %v4860_v8 = vor.u32 %v5540_v53, %v4857_v49  ;;  %v1665_v61 = vpop.permute.xlu2 %1664  ;;  %v5577_v44 = vld [vmem:[#allocation2 + $0x164] sm:$0xf]  ;;  %v5574_v53 = vld [vmem:[#allocation2 + $0x144] sm:$0xf0] }
 0x443   : > { %v2219_v1 = vsel %vm2215_vm12, %v2206_v62, %v7674_v24  ;;  %v2221_v54 = vsel %vm2215_vm12, %v9102_v56, %v2206_v62  ;;  %v1673_v33 = vsel %vm1672_vm0, %v1665_v61, %v7375_v28  ;;  %v1675_v37 = vsel %vm1672_vm0, %v7634_v3, %v1665_v61  ;;  %v1667_v25 = vpop.permute.xlu0 %1666  ;;  %v4985_v6 = vld [vmem:[#allocation2 + $0x148] sm:$0xf0]  ;;  %v5571_v61 = vld [vmem:[#allocation2 + $0x134] sm:$0xf] }
 0x444   : > { %v2251_v58 = vmul.f32 %v2233_v14, %v2221_v54  ;;  %v2252_v26 = vmul.f32 %v2234_v51, %v2219_v1  ;;  %2679 = vmatpush.bf16.msra.mxu2 %v4856_v10  ;;  %2707 = vmatpush.bf16.msra.mxu0 %v4860_v8  ;;  %v1703_v27 = vmul.f32 %v1691_v39, %v1675_v37  ;;  %v2235_v14 = vperm.slane %v7189_v46, 4  ;;  %v4983_v8 = vld [vmem:[#allocation2 + $0x130] sm:$0xf]  ;;  %v5534_v37 = vld [vmem:[#allocation2 + $0xc] sm:$0xf] }
 0x445   : > { %v1704_v60 = vmul.f32 %v1692_v59, %v1673_v33  ;;  %v1680_v28 = vsel %vm1672_vm0, %v7132_v43, %v9103_v4  ;;  %v1674_v3 = vsel %vm1672_vm0, %v1667_v25, %v7586_v5  ;;  %v2236_v51 = vperm.slane %v7189_v46, 5 }
 0x446   : > { %v2259_v35 = vpack.c.bf16 %v2252_v26, %v2251_v58  ;;  %v1707_v7 = vmul.f32 %v1689_v38, %v1680_v28  ;;  %v1710_v42 = vmul.f32 %v1692_v59, %v1674_v3  ;;  %v4984_v1 = vor.u32 %v5574_v53, %v4983_v8  ;;  %v4959_v26 = vld [vmem:[#allocation2 + $0x100] sm:$0xf]  ;;  %v5559_v28 = vld [vmem:[#allocation2 + $0xd4] sm:$0xf] }
 0x447   : > { %v1713_v36 = vpack.c.bf16 %v1704_v60, %v1703_v27  ;;  %v4988_v56 = vor.u32 %v5571_v61, %v4985_v6  ;;  %v5568_v54 = vld [vmem:[#allocation2 + $0x114] sm:$0xf0]  ;;  %v4961_v33 = vld [vmem:[#allocation2 + $0x118] sm:$0xf0] }
 0x448   : > { %2265 = vst [vmem:[#allocation2 + $0x1a0] sm:$0xff] %v2259_v35  ;;  %v4960_v27 = vor.u32 %v5568_v54, %v4959_v26 }
 0x449   : > { %1719 = vst [vmem:[#allocation2 + $0x10] sm:$0xff] %v1713_v36  ;;  %v9105_v36 = vld [vmem:[#allocation4_spill] sm:$0xff]  ;;  %v5550_v46 = vld [vmem:[#allocation2 + $0x84] sm:$0xf0] }
 0x44a   : > { %v1663_v13 = vpop.permute.xlu1 %1662  ;;  %v2214_v30 = vpop.permute.xlu2 %2213 }
 0x44b   : > { %v1676_v43 = vsel %vm1672_vm0, %v1663_v13, %v1667_v25  ;;  %v1678_v5 = vsel %vm1672_vm0, %v9103_v4, %v1663_v13  ;;  %v2217_v41 = vsel %vm2215_vm12, %v7674_v24, %v2214_v30  ;;  %v2227_v12 = vsel %vm2215_vm12, %v2214_v30, %v9104_v2  ;;  %v5009_v24 = vld [vmem:[#allocation2 + $0x178] sm:$0xf0]  ;;  %v5565_v25 = vld [vmem:[#allocation2 + $0x104] sm:$0xf]  ;;  %v4935_v4 = vld [vmem:[#allocation2 + $0xd0] sm:$0xf]  ;;  %v2328_v61 = vpop.permute.xlu0 %2327 }
 0x44c   : > { %v1708_v38 = vmul.f32 %v1690_v48, %v1678_v5  ;;  %v1709_v45 = vmul.f32 %v1691_v39, %v1676_v43  ;;  %v2253_v52 = vmul.f32 %v2235_v14, %v2217_v41  ;;  %v2254_v32 = vmul.f32 %v2236_v51, %v2227_v12  ;;  %v5007_v48 = vld [vmem:[#allocation2 + $0x160] sm:$0xf]  ;;  %v5562_v30 = vld [vmem:[#allocation2 + $0xe4] sm:$0xf0]  ;;  %v4937_v43 = vld [vmem:[#allocation2 + $0xe8] sm:$0xf0] }
 0x44d   : > { %v5008_v40 = vor.u32 %v5580_v17, %v5007_v48  ;;  %v5012_v59 = vor.u32 %v5577_v44, %v5009_v24  ;;  %v4964_v60 = vor.u32 %v5565_v25, %v4961_v33  ;;  %v4936_v5 = vor.u32 %v5562_v30, %v4935_v4  ;;  %v5556_v2 = vld [vmem:[#allocation2 + $0xb4] sm:$0xf0]  ;;  %v4913_v12 = vld [vmem:[#allocation2 + $0xb8] sm:$0xf0]  ;;  %v4863_v48 = vld [vmem:[#allocation2 + $0x40] sm:$0xf] }
 0x44e   : > { %v1715_v23 = vpack.c.bf16 %v1708_v38, %v1707_v7  ;;  %v1716_v63 = vpack.c.bf16 %v1710_v42, %v1709_v45  ;;  %v2260_v9 = vpack.c.bf16 %v2254_v32, %v2253_v52  ;;  %v4911_v38 = vld [vmem:[#allocation2 + $0xa0] sm:$0xf]  ;;  %v5553_v45 = vld [vmem:[#allocation2 + $0xa4] sm:$0xf]  ;;  %v4887_v32 = vld [vmem:[#allocation2 + $0x70] sm:$0xf] }
 0x44f   : > { %v5585_v57 = vld [vmem:[#allocation2 + $0x19c] sm:$0xf0]  ;;  %v5025_v50 = vld [vmem:[#allocation2 + $0x1a0] sm:$0xf0]  ;;  %v4916_v52 = vor.u32 %v5553_v45, %v4913_v12 }
 0x450   : > { %1721 = vst [vmem:[#allocation2 + $0x20] sm:$0xff] %v1715_v23  ;;  %v5024_v55 = vor.u32 %v5585_v57, %v5023_v15  ;;  %v5028_v19 = vor.u32 %v5582_v29, %v5025_v50  ;;  %v5547_v23 = vld [vmem:[#allocation2 + $0x74] sm:$0xf]  ;;  %v5541_v44 = vld [vmem:[#allocation2 + $0x44] sm:$0xf] }
 0x451   : > { %1722 = vst [vmem:[#allocation2 + $0x28] sm:$0xff] %v1716_v63  ;;  %v4888_v63 = vor.u32 %v5550_v46, %v4887_v32  ;;  %v4839_v6 = vld [vmem:[#allocation2 + $0x10] sm:$0xf] }
 0x452   : > { %2266 = vst [vmem:[#allocation2 + $0x1a8] sm:$0xff] %v2260_v9  ;;  %v1742_v22 = vpop.permute.xlu1 %1741  ;;  %2694 = vmatpush.bf16.msra.mxu3 %v5024_v55  ;;  %2722 = vmatpush.bf16.msra.mxu1 %v5028_v19 }
 0x453   : > { %v1749_v49 = vsel %vm1747_vm15, %v1742_v22, %v7584_v34  ;;  %v1751_v39 = vsel %vm1747_vm15, %v7694_v21, %v1742_v22  ;;  %v4831_v21 = vld [vmem:[#allocation2 + $0x8] sm:$0xf] }
 0x454   : > { %v1785_v62 = vmul.f32 %v1767_v20, %v1751_v39  ;;  %v1786_v10 = vmul.f32 %v1768_v0, %v1749_v49  ;;  %v5535_v49 = vld [vmem:[#allocation2 + $0x14] sm:$0xf] }
 0x455   : > { %5039 = vmatmul.msk.bf16.vlgmr.msra.gmra.mxu3 %vm1368_vm8, %v7496_v11  ;;  %5040 = vmatmul.msk.bf16.vlgmr.msra.gmra.mxu1 %vm1368_vm8, %v7496_v11 }
 0x456   : > { %2729 = vmatpush.bf16.msrb.mxu3 %v5008_v40  ;;  %2757 = vmatpush.bf16.msrb.mxu1 %v5012_v59  ;;  %v1792_v34 = vpack.c.bf16 %v1786_v10, %v1785_v62 }
 0x457   : > { %v5537_v20 = vld [vmem:[#allocation2 + $0x1c] sm:$0xf0]  ;;  %v4833_v47 = vld [vmem:[#allocation2 + $0x20] sm:$0xf0] }
 0x458   : > { %1798 = vst [vmem:[#allocation2 + $0x58] sm:$0xff] %v1792_v34  ;;  %v4832_v0 = vor.u32 %v5537_v20, %v4831_v21  ;;  %v4836_v58 = vor.u32 %v5534_v37, %v4833_v47  ;;  %v5538_v22 = vld [vmem:[#allocation2 + $0x24] sm:$0xf0]  ;;  %v4841_v53 = vld [vmem:[#allocation2 + $0x28] sm:$0xf0] }
 0x459   : > { %v5586_v15 = vld [vmem:[#allocation2 + $0x1a4] sm:$0xf0]  ;;  %v5033_v50 = vld [vmem:[#allocation2 + $0x1a8] sm:$0xf0]  ;;  %v4840_v39 = vor.u32 %v5538_v22, %v4839_v6  ;;  %v4844_v62 = vor.u32 %v5535_v49, %v4841_v53 }
 0x45a   : > { %2730 = vmatpush.bf16.msrb.mxu3 %v4984_v1  ;;  %2758 = vmatpush.bf16.msrb.mxu1 %v4988_v56  ;;  %v2212_v35 = vpop.permute.xlu1 %2211 }
 0x45b   : > { %2680 = vmatpush.bf16.msra.mxu2 %v4832_v0  ;;  %2708 = vmatpush.bf16.msra.mxu0 %v4836_v58  ;;  %v2216_v3 = vsel %vm2215_vm12, %v7420_v31, %v2212_v35  ;;  %v2226_v7 = vsel %vm2215_vm12, %v2212_v35, %v9105_v36  ;;  %v4940_v31 = vor.u32 %v5559_v28, %v4937_v43 }
 0x45c   : > { %v2247_v42 = vmul.f32 %v2235_v14, %v2216_v3  ;;  %v2248_v13 = vmul.f32 %v2236_v51, %v2226_v7  ;;  %v4912_v14 = vor.u32 %v5556_v2, %v4911_v38  ;;  %v4889_v51 = vld [vmem:[#allocation2 + $0x88] sm:$0xf0] }
 0x45d   : > { %v4892_v9 = vor.u32 %v5547_v23, %v4889_v51 }
 0x45e   : > { %2731 = vmatpush.bf16.msrb.mxu3 %v4960_v27  ;;  %2759 = vmatpush.bf16.msrb.mxu1 %v4964_v60  ;;  %v2257_v41 = vpack.c.bf16 %v2248_v13, %v2247_v42 }
 0x45f   : > { %2681 = vmatmul.bf16.vlgmr.msra.gmra.mxu2 %v7686_v18  ;;  %2709 = vmatmul.bf16.vlgmr.msra.gmra.mxu0 %v7686_v18  ;;  %v5544_v17 = vld [vmem:[#allocation2 + $0x54] sm:$0xf0]  ;;  %v4865_v24 = vld [vmem:[#allocation2 + $0x58] sm:$0xf0] }
 0x460   : > { %2263 = vst [vmem:[#allocation2 + $0x190] sm:$0xff] %v2257_v41  ;;  %v4864_v40 = vor.u32 %v5544_v17, %v4863_v48  ;;  %v4868_v59 = vor.u32 %v5541_v44, %v4865_v24 }
 0x462   : > { %2732 = vmatpush.bf16.msrb.mxu3 %v4936_v5  ;;  %2760 = vmatpush.bf16.msrb.mxu1 %v4940_v31 }
 0x466   : > { %2733 = vmatpush.bf16.msrb.mxu3 %v4912_v14  ;;  %2761 = vmatpush.bf16.msrb.mxu1 %v4916_v52 }
 0x467   : > { %v5031_v57 = vld [vmem:[#allocation2 + $0x190] sm:$0xf]  ;;  %v5583_v29 = vld [vmem:[#allocation2 + $0x194] sm:$0xf] }
 0x468   : > { %v5032_v55 = vor.u32 %v5586_v15, %v5031_v57  ;;  %v5036_v19 = vor.u32 %v5583_v29, %v5033_v50 }
 0x46a   : > { %2734 = vmatpush.bf16.msrb.mxu3 %v4888_v63  ;;  %2762 = vmatpush.bf16.msrb.mxu1 %v4892_v9 }
 0x46b   : > { %2750 = vmatpush.bf16.msrb.mxu2 %v5032_v55  ;;  %2778 = vmatpush.bf16.msrb.mxu0 %v5036_v19 }
 0x46e   : > { %2735 = vmatpush.bf16.msrb.mxu3 %v4864_v40  ;;  %2763 = vmatpush.bf16.msrb.mxu1 %v4868_v59 }
 0x46f   : > { %5041 = vmatmul.msk.bf16.vlgmr.msrb.gmra.mxu2 %vm1368_vm8, %v7496_v11  ;;  %5042 = vmatmul.msk.bf16.vlgmr.msrb.gmra.mxu0 %vm1368_vm8, %v7496_v11 }
 0x472   : > { %2736 = vmatpush.bf16.msrb.mxu3 %v4840_v39  ;;  %2764 = vmatpush.bf16.msrb.mxu1 %v4844_v62 }
 0x475   : > { %2737 = vmatmul.bf16.vlgmr.msrb.gmra.mxu3 %v7686_v18  ;;  %2765 = vmatmul.bf16.vlgmr.msrb.gmra.mxu1 %v7686_v18  ;;  %v2333_v18 = vpop.permute.xlu1 %2332 }
 0x47e   : > { %v2640_v10 = vpop.f32.mrf.mxu1  ;;  %v2668_v56 = vpop.f32.mrf.mxu0 }
 0x486   : > { %v2642_v8 = vpop.f32.mrf.mxu1  ;;  %v2670_v58 = vpop.f32.mrf.mxu0 }
 0x4ae   : > { %v2654_v1 = vpop.f32.mrf.mxu1 }
 0x4af   : > { %v2655_v34 = vadd.f32 %v2654_v1, %v2328_v61 }
 0x4b1   : > { %v7834_v21 = vadd.f32 %v2668_v56, %v2655_v34 }
 0x4b3   : > { %v2786_v54 = vmax.f32 %v7834_v21, 0.0 }
 0x4b4   : > { %v2626_v33 = vpop.f32.mrf.mxu3 }
 0x4b5   : > { %v2627_v20 = vadd.f32 %v2626_v33, %v2328_v61  ;;  %2801 = vrot.lane.b32.xlu1 %v2786_v54, %s5806_s13 }
 0x4b6   : > { %v2656_v11 = vpop.f32.mrf.mxu1 }
 0x4b7   : > { %v7840_v37 = vadd.f32 %v2640_v10, %v2627_v20  ;;  %v2657_v0 = vadd.f32 %v2656_v11, %v2333_v18 }
 0x4b9   : > { %v2785_v47 = vmax.f32 %v7840_v37, 0.0  ;;  %v7846_v25 = vadd.f32 %v2670_v58, %v2657_v0 }
 0x4bb   : > { %2797 = vrot.lane.b32.xlu2 %v2785_v47, %s5806_s13  ;;  %v2792_v35 = vmax.f32 %v7846_v25, 0.0 }
 0x4bc   : > { %v2628_v26 = vpop.f32.mrf.mxu3 }
 0x4bd   : > { %v2629_v27 = vadd.f32 %v2628_v26, %v2333_v18 }
 0x4bf   : > { %v2643_v60 = vadd.f32 %v2642_v8, %v2629_v27 }
 0x4c1   : > { %v2791_v4 = vmax.f32 %v2643_v60, 0.0 }
 0x4c3   : > { %2799 = vrot.lane.b32.xlu0 %v2791_v4, %s5806_s13  ;;  %2803 = vrot.lane.b32.xlu2 %v2792_v35, %s5806_s13 }
 0x4d2   : > { %v2724_v3 = vpop.f32.mrf.mxu1 }
 0x4d8   : > { %v2696_v13 = vpop.f32.mrf.mxu3 }
 0x4da   : > { %v2726_v12 = vpop.f32.mrf.mxu1 }
 0x4dc   : > { %v2710_v28 = vpop.f32.mrf.mxu0 }
 0x4dd   : > { %v2711_v36 = vadd.f32 %v2710_v28, %v2328_v61 }
 0x4df   : > { %v7853_v7 = vadd.f32 %v2724_v3, %v2711_v36 }
 0x4e0   : > { %v2698_v52 = vpop.f32.mrf.mxu3 }
 0x4e1   : > { %v2788_v42 = vmax.f32 %v7853_v7, 0.0 }
 0x4e2   : > { %v2682_v30 = vpop.f32.mrf.mxu2 }
 0x4e3   : > { %v2683_v43 = vadd.f32 %v2682_v30, %v2328_v61  ;;  %2809 = vrot.lane.b32.xlu2 %v2788_v42, %s5806_s13 }
 0x4e4   : > { %v2712_v5 = vpop.f32.mrf.mxu0 }
 0x4e5   : > { %v2697_v31 = vadd.f32 %v2696_v13, %v2683_v43  ;;  %v2713_v2 = vadd.f32 %v2712_v5, %v2333_v18 }
 0x4e7   : > { %v2787_v41 = vmax.f32 %v2697_v31, 0.0  ;;  %v7860_v45 = vadd.f32 %v2726_v12, %v2713_v2 }
 0x4e9   : > { %2805 = vrot.lane.b32.xlu0 %v2787_v41, %s5806_s13  ;;  %v2794_v51 = vmax.f32 %v7860_v45, 0.0 }
 0x4ea   : > { %v2684_v38 = vpop.f32.mrf.mxu2 }
 0x4eb   : > { %v2685_v14 = vadd.f32 %v2684_v38, %v2333_v18 }
 0x4ec   : > { %v2780_v63 = vpop.f32.mrf.mxu0 }
 0x4ed   : > { %v2699_v46 = vadd.f32 %v2698_v52, %v2685_v14 }
 0x4ef   : > { %v2793_v32 = vmax.f32 %v2699_v46, 0.0 }
 0x4f1   : > { %2807 = vrot.lane.b32.xlu1 %v2793_v32, %s5806_s13  ;;  %2811 = vrot.lane.b32.xlu0 %v2794_v51, %s5806_s13 }
 0x4f2   : > { %v2766_v23 = vpop.f32.mrf.mxu1  ;;  %v2752_v17 = vpop.f32.mrf.mxu2 }
 0x4f3   : > { %v2767_v9 = vadd.f32 %v2766_v23, %v2328_v61 }
 0x4f4   : > { %v2782_v44 = vpop.f32.mrf.mxu0 }
 0x4f5   : > { %v2781_v15 = vadd.f32 %v2780_v63, %v2767_v9 }
 0x4f7   : > { %v2790_v24 = vmax.f32 %v2781_v15, 0.0 }
 0x4f8   : > { %v2738_v57 = vpop.f32.mrf.mxu3 }
 0x4f9   : > { %v2739_v29 = vadd.f32 %v2738_v57, %v2328_v61  ;;  %2817 = vrot.lane.b32.xlu0 %v2790_v24, %s5806_s13 }
 0x4fa   : > { %v2768_v50 = vpop.f32.mrf.mxu1  ;;  %v2754_v59 = vpop.f32.mrf.mxu2 }
 0x4fb   : > { %v2753_v55 = vadd.f32 %v2752_v17, %v2739_v29  ;;  %v2769_v48 = vadd.f32 %v2768_v50, %v2333_v18 }
 0x4fd   : > { %v2789_v19 = vmax.f32 %v2753_v55, 0.0  ;;  %v2783_v22 = vadd.f32 %v2782_v44, %v2769_v48 }
 0x4ff   : > { %2813 = vrot.lane.b32.xlu1 %v2789_v19, %s5806_s13  ;;  %v2796_v49 = vmax.f32 %v2783_v22, 0.0 }
 0x500   : > { %v2740_v40 = vpop.f32.mrf.mxu3 }
 0x501   : > { %v2741_v53 = vadd.f32 %v2740_v40, %v2333_v18 }
 0x503   : > { %v2755_v6 = vadd.f32 %v2754_v59, %v2741_v53 }
 0x505   : > { %v2795_v39 = vmax.f32 %v2755_v6, 0.0 }
 0x507   : > { %2815 = vrot.lane.b32.xlu2 %v2795_v39, %s5806_s13  ;;  %2819 = vrot.lane.b32.xlu1 %v2796_v49, %s5806_s13  ;;  %s5810_s13 = smov 64  }
 0x515   : > { %v2798_v62 = vpop.permute.xlu2 %2797 }
 0x51d   : > { %v2804_v1 = vpop.permute.xlu2 %2803 }
 0x527   : > { %v2802_v10 = vpop.permute.xlu1 %2801 }
 0x528   : > { %v2829_v8 = vsel %vm1987_vm11, %v2798_v62, %v2802_v10 }
 0x529   : > { %v2833_v61 = vmax.f32 %v2785_v47, %v2829_v8 }
 0x52b   : > { %2845 = vrot.lane.b32.xlu2 %v2833_v61, %s5804_s26 }
 0x535   : > { %v2800_v56 = vpop.permute.xlu0 %2799 }
 0x536   : > { %v2830_v34 = vsel %vm1987_vm11, %v2800_v56, %v2804_v1 }
 0x537   : > { %v2839_v33 = vmax.f32 %v2791_v4, %v2830_v34 }
 0x539   : > { %2847 = vrot.lane.b32.xlu0 %v2839_v33, %s5804_s26 }
 0x53d   : > { %v2810_v20 = vpop.permute.xlu2 %2809 }
 0x55b   : > { %v2806_v11 = vpop.permute.xlu0 %2805 }
 0x55c   : > { %v2825_v18 = vsel %vm1987_vm11, %v2806_v11, %v2810_v20  ;;  %v2827_v0 = vsel %vm1987_vm11, %v2802_v10, %v2806_v11 }
 0x55d   : > { %v2834_v37 = vmax.f32 %v2786_v54, %v2827_v0  ;;  %v7885_v47 = vmax.f32 %v2787_v41, %v2825_v18 }
 0x55f   : > { %2849 = vrot.lane.b32.xlu1 %v2834_v37, %s5804_s26  ;;  %2853 = vrot.lane.b32.xlu0 %v7885_v47, %s5804_s26 }
 0x561   : > { %v2816_v13 = vpop.permute.xlu2 %2815 }
 0x563   : > { %v2808_v58 = vpop.permute.xlu1 %2807  ;;  %v2812_v26 = vpop.permute.xlu0 %2811 }
 0x564   : > { %v2828_v27 = vsel %vm1987_vm11, %v2804_v1, %v2808_v58  ;;  %v2826_v60 = vsel %vm1987_vm11, %v2808_v58, %v2812_v26  ;;  %v2824_v30 = vsel %vm1987_vm11, %v2812_v26, %v2816_v13 }
 0x565   : > { %v2840_v4 = vmax.f32 %v2792_v35, %v2828_v27  ;;  %v7896_v21 = vmax.f32 %v2793_v32, %v2826_v60  ;;  %v2842_v31 = vmax.f32 %v2794_v51, %v2824_v30 }
 0x567   : > { %2855 = vrot.lane.b32.xlu1 %v7896_v21, %s5804_s26  ;;  %2851 = vrot.lane.b32.xlu2 %v2840_v4, %s5804_s26 }
 0x56b   : > { %v2818_v54 = vpop.permute.xlu0 %2817 }
 0x56c   : > { %v2831_v28 = vsel %vm1987_vm11, %v2818_v54, %v2798_v62 }
 0x56d   : > { %v2838_v3 = vmax.f32 %v2790_v24, %v2831_v28 }
 0x56f   : > { %2865 = vrot.lane.b32.xlu0 %v2838_v3, %s5804_s26 }
 0x571   : > { %v2814_v36 = vpop.permute.xlu1 %2813 }
 0x572   : > { %v2821_v25 = vsel %vm1987_vm11, %v2814_v36, %v2818_v54  ;;  %v2823_v35 = vsel %vm1987_vm11, %v2810_v20, %v2814_v36 }
 0x573   : > { %v2836_v43 = vmax.f32 %v2788_v42, %v2823_v35  ;;  %v2837_v5 = vmax.f32 %v2789_v19, %v2821_v25 }
 0x575   : > { %2861 = vrot.lane.b32.xlu1 %v2837_v5, %s5804_s26  ;;  %2857 = vrot.lane.b32.xlu2 %v2836_v43, %s5804_s26 }
 0x577   : > { %2859 = vrot.lane.b32.xlu0 %v2842_v31, %s5804_s26 }
 0x579   : > { %v2820_v41 = vpop.permute.xlu1 %2819 }
 0x57a   : > { %v2822_v2 = vsel %vm1987_vm11, %v2816_v13, %v2820_v41  ;;  %v2832_v12 = vsel %vm1987_vm11, %v2820_v41, %v2800_v56 }
 0x57b   : > { %v7921_v38 = vmax.f32 %v2795_v39, %v2822_v2  ;;  %v7923_v7 = vmax.f32 %v2796_v49, %v2832_v12 }
 0x57d   : > { %2867 = vrot.lane.b32.xlu1 %v7923_v7, %s5804_s26  ;;  %2863 = vrot.lane.b32.xlu2 %v7921_v38, %s5804_s26  ;;  %s5812_s26 = smov 68  }
 0x585   : > { %v2846_v45 = vpop.permute.xlu2 %2845 }
 0x5ab   : > { %v2848_v42 = vpop.permute.xlu0 %2847 }
 0x5c1   : > { %v2852_v63 = vpop.permute.xlu2 %2851 }
 0x5c2   : > { %v2878_v15 = vsel %vm2139_vm9, %v2848_v42, %v2852_v63 }
 0x5c3   : > { %v2887_v57 = vmax.f32 %v2839_v33, %v2878_v15 }
 0x5cf   : > { %v2858_v55 = vpop.permute.xlu2 %2857 }
 0x5d1   : > { %v2850_v14 = vpop.permute.xlu1 %2849  ;;  %v2854_v52 = vpop.permute.xlu0 %2853 }
 0x5d2   : > { %v2877_v46 = vsel %vm2139_vm9, %v2846_v45, %v2850_v14  ;;  %v2875_v51 = vsel %vm2139_vm9, %v2850_v14, %v2854_v52  ;;  %v2873_v48 = vsel %vm2139_vm9, %v2854_v52, %v2858_v55 }
 0x5d3   : > { %v2881_v32 = vmax.f32 %v2833_v61, %v2877_v46  ;;  %v2882_v23 = vmax.f32 %v2834_v37, %v2875_v51  ;;  %v7955_v53 = vmax.f32 %v7885_v47, %v2873_v48 }
 0x5d5   : > { %v3196_v9 = vpack.c.bf16 %v2882_v23, %v2881_v32  ;;  %2972 = vrot.lane.b32.xlu1 %v2882_v23, %s5810_s13  ;;  %3120 = vrot.lane.b32.xlu0 %v2881_v32, %s5811_s20 }
 0x5d6   : > { %2968 = vrot.lane.b32.xlu2 %v2881_v32, %s5810_s13 }
 0x5d7   : > { %3202 = vst [vmem:[#allocation2 + $0xc0] sm:$0xff] %v3196_v9  ;;  %v2864_v62 = vpop.permute.xlu2 %2863 }
 0x5d9   : > { %v2856_v17 = vpop.permute.xlu1 %2855 }
 0x5da   : > { %v2876_v24 = vsel %vm2139_vm9, %v2852_v63, %v2856_v17 }
 0x5db   : > { %v2888_v29 = vmax.f32 %v2840_v4, %v2876_v24  ;;  %v8168_v24 = vld [vmem:[%s9030_s9 + $0x6] sm:$0x3f] }
 0x5dd   : > { %v3199_v50 = vpack.c.bf16 %v2888_v29, %v2887_v57  ;;  %2897 = vrot.lane.b32.xlu1 %v2882_v23, %s5812_s26  ;;  %3048 = vrot.lane.b32.xlu0 %v2882_v23, %s5813_s21 }
 0x5de   : > { %2893 = vrot.lane.b32.xlu2 %v2881_v32, %s5812_s26 }
 0x5df   : > { %3205 = vst [vmem:[#allocation2 + $0xd8] sm:$0xff] %v3199_v50 }
 0x5e1   : > { %v2866_v19 = vpop.permute.xlu0 %2865 }
 0x5e2   : > { %v2879_v44 = vsel %vm2139_vm9, %v2866_v19, %v2846_v45 }
 0x5e3   : > { %v7957_v6 = vmax.f32 %v2838_v3, %v2879_v44  ;;  %v9058_v44 = vperm.slane %v8168_v24, 2 }
 0x5e5   : > { %3212 = vrot.lane.b32.xlu1 %v2882_v23, %s5814_s22  ;;  %2970 = vrot.lane.b32.xlu0 %v2887_v57, %s5810_s13 }
 0x5e6   : > { %3208 = vrot.lane.b32.xlu2 %v2881_v32, %s5814_s22 }
 0x5e7   : > { %v2862_v40 = vpop.permute.xlu1 %2861 }
 0x5e8   : > { %v2869_v59 = vsel %vm2139_vm9, %v2862_v40, %v2866_v19  ;;  %v2871_v22 = vsel %vm2139_vm9, %v2858_v55, %v2862_v40 }
 0x5e9   : > { %v2884_v49 = vmax.f32 %v2836_v43, %v2871_v22  ;;  %v7959_v39 = vmax.f32 %v2837_v5, %v2869_v59  ;;  %v2860_v10 = vpop.permute.xlu0 %2859  ;;  %v9057_v59 = vperm.slane %v8168_v24, 3 }
 0x5ea   : > { %v2872_v1 = vsel %vm2139_vm9, %v2860_v10, %v2864_v62  ;;  %v2874_v56 = vsel %vm2139_vm9, %v2856_v17, %v2860_v10  ;;  %v3458_v17 = vld [vmem:[%s9029_s8 + $0x8] sm:$0xff] }
 0x5eb   : > { %v3197_v8 = vpack.c.bf16 %v2884_v49, %v7955_v53  ;;  %v3198_v61 = vpack.c.bf16 %v7957_v6, %v7959_v39  ;;  %v7969_v34 = vmax.f32 %v7896_v21, %v2874_v56  ;;  %v7971_v33 = vmax.f32 %v2842_v31, %v2872_v1 }
 0x5ed   : > { %3203 = vst [vmem:[#allocation2 + $0xc8] sm:$0xff] %v3197_v8  ;;  %v3200_v20 = vpack.c.bf16 %v7971_v33, %v7969_v34  ;;  %3044 = vrot.lane.b32.xlu1 %v2881_v32, %s5813_s21  ;;  %2895 = vrot.lane.b32.xlu0 %v2887_v57, %s5812_s26  ;;  %v8143_v32 = vld [vmem:[%s9030_s9 + $0x2a] sm:$0x3f] }
 0x5ee   : > { %3204 = vst [vmem:[#allocation2 + $0xd0] sm:$0xff] %v3198_v61  ;;  %3124 = vrot.lane.b32.xlu2 %v2882_v23, %s5811_s20  ;;  %v8148_v23 = vld [vmem:[%s9030_s9 + $0x12] sm:$0x3f]  ;;  %v3327_v40 = vperm.slane %v8143_v32, 1 }
 0x5ef   : > { %v2868_v11 = vpop.permute.xlu1 %2867  ;;  %3206 = vst [vmem:[#allocation2 + $0xe0] sm:$0xff] %v3200_v20  ;;  %v3161_v50 = vperm.slane %v8148_v23, 1  ;;  %v3160_v48 = vperm.slane %v8148_v23, 0 }
 0x5f0   : > { %v2870_v18 = vsel %vm2139_vm9, %v2864_v62, %v2868_v11  ;;  %v2880_v0 = vsel %vm2139_vm9, %v2868_v11, %v2848_v42 }
 0x5f1   : > { %v7983_v37 = vmax.f32 %v7921_v38, %v2870_v18  ;;  %v7986_v47 = vmax.f32 %v7923_v7, %v2880_v0  ;;  %v8118_v7 = vld [vmem:[%s9030_s9 + $0xc] sm:$0x3f]  ;;  %v3009_v0 = vperm.slane %v8168_v24, 1 }
 0x5f2   : > { %v9060_v42 = vperm.slane %v8118_v7, 1  ;;  %v9059_v45 = vperm.slane %v8118_v7, 0 }
 0x5f3   : > { %v3201_v58 = vpack.c.bf16 %v7986_v47, %v7983_v37 }
 0x5f5   : > { %3207 = vst [vmem:[#allocation2 + $0xe8] sm:$0xff] %v3201_v58  ;;  %3122 = vrot.lane.b32.xlu1 %v2887_v57, %s5811_s20  ;;  %3210 = vrot.lane.b32.xlu0 %v2887_v57, %s5814_s22 }
 0x5f6   : > { %2974 = vrot.lane.b32.xlu2 %v2888_v29, %s5810_s13 }
 0x5fd   : > { %3050 = vrot.lane.b32.xlu1 %v2888_v29, %s5813_s21  ;;  %3126 = vrot.lane.b32.xlu0 %v2888_v29, %s5811_s20 }
 0x5fe   : > { %2899 = vrot.lane.b32.xlu2 %v2888_v29, %s5812_s26 }
 0x605   : > { %3140 = vrot.lane.b32.xlu1 %v7957_v6, %s5811_s20  ;;  %2976 = vrot.lane.b32.xlu0 %v7955_v53, %s5810_s13 }
 0x606   : > { %3214 = vrot.lane.b32.xlu2 %v2888_v29, %s5814_s22 }
 0x60d   : > { %2988 = vrot.lane.b32.xlu1 %v7957_v6, %s5810_s13  ;;  %2901 = vrot.lane.b32.xlu0 %v7955_v53, %s5812_s26 }
 0x60e   : > { %3046 = vrot.lane.b32.xlu2 %v2887_v57, %s5813_s21  ;;  %v3326_v57 = vperm.slane %v8143_v32, 0 }
 0x615   : > { %2913 = vrot.lane.b32.xlu1 %v7957_v6, %s5812_s26  ;;  %3216 = vrot.lane.b32.xlu0 %v7955_v53, %s5814_s22 }
 0x616   : > { %3064 = vrot.lane.b32.xlu2 %v7957_v6, %s5813_s21 }
 0x61d   : > { %2984 = vrot.lane.b32.xlu1 %v7959_v39, %s5810_s13  ;;  %2905 = vrot.lane.b32.xlu0 %v2884_v49, %s5812_s26 }
 0x61e   : > { %2980 = vrot.lane.b32.xlu2 %v2884_v49, %s5810_s13 }
 0x625   : > { %2978 = vrot.lane.b32.xlu1 %v7969_v34, %s5810_s13  ;;  %3220 = vrot.lane.b32.xlu0 %v2884_v49, %s5814_s22 }
 0x626   : > { %2909 = vrot.lane.b32.xlu2 %v7959_v39, %s5812_s26 }
 0x62d   : > { %2903 = vrot.lane.b32.xlu1 %v7969_v34, %s5812_s26  ;;  %3052 = vrot.lane.b32.xlu0 %v7955_v53, %s5813_s21 }
 0x62e   : > { %3224 = vrot.lane.b32.xlu2 %v7959_v39, %s5814_s22 }
 0x630   : > { %v8027_v26 = vpop.permute.xlu2 %2968 }
 0x635   : > { %3218 = vrot.lane.b32.xlu1 %v7969_v34, %s5814_s22  ;;  %3066 = vrot.lane.b32.xlu0 %v7986_v47, %s5813_s21 }
 0x636   : > { %3142 = vrot.lane.b32.xlu2 %v7986_v47, %s5811_s20 }
 0x638   : > { %v8035_v27 = vpop.permute.xlu2 %2893 }
 0x63d   : > { %3132 = vrot.lane.b32.xlu1 %v2884_v49, %s5811_s20  ;;  %2982 = vrot.lane.b32.xlu0 %v7971_v33, %s5810_s13 }
 0x63e   : > { %2990 = vrot.lane.b32.xlu2 %v7986_v47, %s5810_s13 }
 0x640   : > { %v8042_v60 = vpop.permute.xlu2 %3208 }
 0x645   : > { %2907 = vrot.lane.b32.xlu1 %v7971_v33, %s5812_s26  ;;  %3056 = vrot.lane.b32.xlu0 %v2884_v49, %s5813_s21 }
 0x646   : > { %2915 = vrot.lane.b32.xlu2 %v7986_v47, %s5812_s26 }
 0x647   : > { %v8049_v4 = vpop.permute.xlu1 %2972  ;;  %v8051_v21 = vpop.permute.xlu0 %3120 }
 0x648   : > { %v8053_v54 = vpop.permute.xlu2 %3124  ;;  %v3001_v29 = vsel %vm2992_vm1, %v8027_v26, %v8049_v4 }
 0x649   : > { %v3153_v19 = vsel %vm3144_vm4, %v8051_v21, %v8053_v54 }
 0x64a   : > { %v3173_v49 = vmul.f32 %v3161_v50, %v3153_v19 }
 0x64d   : > { %3222 = vrot.lane.b32.xlu1 %v7971_v33, %s5814_s22  ;;  %2911 = vrot.lane.b32.xlu0 %v7983_v37, %s5812_s26 }
 0x64e   : > { %2986 = vrot.lane.b32.xlu2 %v7983_v37, %s5810_s13 }
 0x64f   : > { %v8061_v28 = vpop.permute.xlu1 %2897  ;;  %v8063_v3 = vpop.permute.xlu0 %3048 }
 0x650   : > { %v8065_v36 = vpop.permute.xlu2 %2974 }
 0x655   : > { %3054 = vrot.lane.b32.xlu1 %v7969_v34, %s5813_s21  ;;  %3226 = vrot.lane.b32.xlu0 %v7983_v37, %s5814_s22 }
 0x656   : > { %3128 = vrot.lane.b32.xlu2 %v7955_v53, %s5811_s20 }
 0x657   : > { %v8074_v13 = vpop.permute.xlu1 %3212  ;;  %v8076_v25 = vpop.permute.xlu0 %2970 }
 0x658   : > { %v8082_v35 = vsel %vm2992_vm1, %v8076_v25, %v8065_v36  ;;  %v8084_v30 = vpop.permute.xlu2 %2899 }
 0x65d   : > { %3058 = vrot.lane.b32.xlu1 %v7971_v33, %s5813_s21  ;;  %3130 = vrot.lane.b32.xlu0 %v7969_v34, %s5811_s20  ;;  %v8213_v34 = vld [vmem:[%s9030_s9 + $0x24] sm:$0x3f] }
 0x65e   : > { %3134 = vrot.lane.b32.xlu2 %v7971_v33, %s5811_s20  ;;  %v9064_v58 = vperm.slane %v8213_v34, 1 }
 0x65f   : > { %v3045_v43 = vpop.permute.xlu1 %3044  ;;  %v8093_v5 = vpop.permute.xlu0 %2895 }
 0x660   : > { %v8099_v31 = vsel %vm2917_vm2, %v8093_v5, %v8084_v30  ;;  %v8101_v41 = vpop.permute.xlu2 %3214  ;;  %v8132_v14 = vsel %vm3068_vm3, %v3045_v43, %v8063_v3 }
 0x661   : > { %v3097_v9 = vmul.f32 %v9060_v42, %v8132_v14 }
 0x665   : > { %3060 = vrot.lane.b32.xlu1 %v7959_v39, %s5813_s21  ;;  %3230 = vrot.lane.b32.xlu0 %v7986_v47, %s5814_s22  ;;  %v9069_v47 = vperm.slane %v8168_v24, 0 }
 0x666   : > { %3228 = vrot.lane.b32.xlu2 %v7957_v6, %s5814_s22  ;;  %v3338_v6 = vmul.f32 %v3326_v57, %v3001_v29 }
 0x667   : > { %v8109_v2 = vpop.permute.xlu1 %3122  ;;  %v8111_v12 = vpop.permute.xlu0 %3210 }
 0x668   : > { %v8113_v38 = vpop.permute.xlu2 %3046 }
 0x66d   : > { %3138 = vrot.lane.b32.xlu1 %v7983_v37, %s5811_s20  ;;  %3136 = vrot.lane.b32.xlu0 %v7959_v39, %s5811_s20 }
 0x66e   : > { %3062 = vrot.lane.b32.xlu2 %v7983_v37, %s5813_s21  ;;  %v9068_v37 = vperm.slane %v8213_v34, 0 }
 0x66f   : > { %v8134_v52 = vpop.permute.xlu1 %3050  ;;  %v8136_v46 = vpop.permute.xlu0 %3126 }
 0x670   : > { %v8138_v51 = vpop.permute.xlu2 %3064 }
 0x671   : > { %v8153_v63 = vsel %vm3068_vm3, %v8138_v51, %v3045_v43 }
 0x672   : > { %v3096_v15 = vmul.f32 %v9059_v45, %v8153_v63 }
 0x674   : > { %v3108_v55 = vpack.c.bf16 %v3097_v9, %v3096_v15 }
 0x675   : > { %3466 = vperm.xlu0 %5722, %v3458_v17  }
 0x676   : > { %3114 = vst [vmem:[#allocation2 + $0x60] sm:$0xff] %v3108_v55  ;;  %v3021_v55 = vmul.f32 %v3009_v0, %v3001_v29 }
 0x677   : > { %v8184_v22 = vpop.permute.xlu1 %3140  ;;  %v2977_v53 = vpop.permute.xlu0 %2976 }
 0x678   : > { %v3155_v39 = vsel %vm3144_vm4, %v8184_v22, %v8051_v21  ;;  %v2999_v62 = vsel %vm2992_vm1, %v8049_v4, %v2977_v53  ;;  %v8197_v10 = vpop.permute.xlu2 %2980  ;;  %v2926_v4 = vsel %vm2917_vm2, %v8035_v27, %v8061_v28 }
 0x679   : > { %v3172_v8 = vmul.f32 %v3160_v48, %v3155_v39  ;;  %v3022_v61 = vmul.f32 %v9058_v44, %v2999_v62  ;;  %v3339_v1 = vmul.f32 %v3327_v40, %v2999_v62  ;;  %v8208_v56 = vsel %vm2992_vm1, %v2977_v53, %v8197_v10 }
 0x67a   : > { %v3023_v33 = vmul.f32 %v9057_v59, %v8208_v56  ;;  %v3299_v19 = vmul.f32 %v9068_v37, %v2926_v4 }
 0x67b   : > { %v3184_v20 = vpack.c.bf16 %v3173_v49, %v3172_v8  ;;  %v3350_v11 = vpack.c.bf16 %v3339_v1, %v3338_v6  ;;  %v9063_v8 = vperm.slane %v8213_v34, 4 }
 0x67c   : > { %v3033_v18 = vpack.c.bf16 %v3023_v33, %v3022_v61  ;;  %v9065_v61 = vperm.slane %v8213_v34, 5 }
 0x67d   : > { %3190 = vst [vmem:[#allocation2 + $0x90] sm:$0xff] %v3184_v20  ;;  %v3241_v20 = vsel %vm3232_vm5, %v8042_v60, %v8074_v13 }
 0x67e   : > { %3356 = vst [vmem:[#allocation2 + $0x150] sm:$0xff] %v3350_v11 }
 0x67f   : > { %3039 = vst [vmem:[#allocation2 + $0x38] sm:$0xff] %v3033_v18  ;;  %v2989_v21 = vpop.permute.xlu1 %2988  ;;  %v8226_v43 = vpop.permute.xlu0 %2901 }
 0x680   : > { %v3003_v9 = vsel %vm2992_vm1, %v2989_v21, %v8027_v26  ;;  %v2924_v15 = vsel %vm2917_vm2, %v8061_v28, %v8226_v43  ;;  %v2910_v17 = vpop.permute.xlu2 %2909  ;;  %v8246_v26 = vld [vmem:[%s9030_s9] sm:$0x3f] }
 0x681   : > { %v3020_v53 = vmul.f32 %v9069_v47, %v3003_v9  ;;  %v3300_v6 = vmul.f32 %v9064_v58, %v2924_v15  ;;  %v8251_v28 = vld [vmem:[%s9030_s9 + $0x1e] sm:$0x3f]  ;;  %v9062_v39 = vperm.slane %v8246_v26, 1  ;;  %v9061_v62 = vperm.slane %v8246_v26, 0 }
 0x682   : > { %v9067_v1 = vperm.slane %v8251_v28, 0  ;;  %v9066_v33 = vperm.slane %v8251_v28, 1  ;;  %v9070_v42 = vperm.slane %v8246_v26, 5  ;;  %v3012_v58 = vperm.slane %v8168_v24, 4 }
 0x683   : > { %v3032_v29 = vpack.c.bf16 %v3021_v55, %v3020_v53  ;;  %v3311_v49 = vpack.c.bf16 %v3300_v6, %v3299_v19 }
 0x685   : > { %3038 = vst [vmem:[#allocation2 + $0x30] sm:$0xff] %v3032_v29  ;;  %v2945_v29 = vmul.f32 %v9062_v39, %v2926_v4  ;;  %v9071_v4 = vperm.slane %v8246_v26, 2 }
 0x686   : > { %3317 = vst [vmem:[#allocation2 + $0x120] sm:$0xff] %v3311_v49 }
 0x687   : > { %v2914_v11 = vpop.permute.xlu1 %2913  ;;  %v8264_v18 = vpop.permute.xlu0 %3216 }
 0x688   : > { %v2918_v55 = vsel %vm2917_vm2, %v2910_v17, %v2914_v11  ;;  %v2928_v19 = vsel %vm2917_vm2, %v2914_v11, %v8035_v27  ;;  %v3239_v53 = vsel %vm3232_vm5, %v8074_v13, %v8264_v18  ;;  %v8275_v6 = vpop.permute.xlu2 %3224  ;;  %v3260_v27 = vmul.f32 %v9067_v1, %v3241_v20 }
 0x689   : > { %v2944_v49 = vmul.f32 %v9061_v62, %v2928_v19  ;;  %v3303_v59 = vmul.f32 %v9063_v8, %v2918_v55  ;;  %v3304_v44 = vmul.f32 %v9065_v61, %v2928_v19  ;;  %v9072_v11 = vperm.slane %v8143_v32, 2 }
 0x68a   : > { %v3331_v13 = vperm.slane %v8143_v32, 5  ;;  %v3261_v45 = vmul.f32 %v9066_v33, %v3239_v53  ;;  %v3154_v20 = vsel %vm3144_vm4, %v8109_v2, %v8136_v46  ;;  %v3013_v19 = vperm.slane %v8168_v24, 5 }
 0x68b   : > { %v2956_v62 = vpack.c.bf16 %v2945_v29, %v2944_v49  ;;  %v3313_v39 = vpack.c.bf16 %v3304_v44, %v3303_v59  ;;  %v3329_v61 = vperm.slane %v8143_v32, 3  ;;  %v3330_v53 = vperm.slane %v8143_v32, 4 }
 0x68c   : > { %v3272_v8 = vpack.c.bf16 %v3261_v45, %v3260_v27  ;;  %v9073_v33 = vperm.slane %v8246_v26, 3  ;;  %v9074_v44 = vperm.slane %v8246_v26, 4  ;;  %v9075_v45 = vperm.slane %v8213_v34, 2 }
 0x68d   : > { %2962 = vst [vmem:[#allocation2] sm:$0xff] %v2956_v62  ;;  %v3290_v59 = vperm.slane %v8213_v34, 3  ;;  %v3340_v29 = vmul.f32 %v9072_v11, %v8208_v56  ;;  %v3343_v62 = vmul.f32 %v3331_v13, %v3003_v9  ;;  %v2946_v49 = vmul.f32 %v9071_v4, %v2924_v15 }
 0x68e   : > { %3319 = vst [vmem:[#allocation2 + $0x130] sm:$0xff] %v3313_v39  ;;  %v2949_v39 = vmul.f32 %v9070_v42, %v2918_v55 }
 0x68f   : > { %3278 = vst [vmem:[#allocation2 + $0xf0] sm:$0xff] %v3272_v8  ;;  %v2985_v27 = vpop.permute.xlu1 %2984  ;;  %v2906_v1 = vpop.permute.xlu0 %2905 }
 0x690   : > { %v2993_v37 = vsel %vm2992_vm1, %v2985_v27, %v2989_v21  ;;  %v2995_v47 = vsel %vm2992_vm1, %v8197_v10, %v2985_v27  ;;  %v2920_v56 = vsel %vm2917_vm2, %v2906_v1, %v2910_v17  ;;  %v2922_v9 = vsel %vm2917_vm2, %v8226_v43, %v2906_v1  ;;  %v8324_v15 = vpop.permute.xlu2 %3142 }
 0x691   : > { %v3024_v8 = vmul.f32 %v3012_v58, %v2995_v47  ;;  %v3025_v55 = vmul.f32 %v3013_v19, %v2993_v37  ;;  %v3341_v21 = vmul.f32 %v3329_v61, %v2995_v47  ;;  %v3342_v10 = vmul.f32 %v3330_v53, %v2993_v37 }
 0x692   : > { %v2947_v17 = vmul.f32 %v9073_v33, %v2922_v9  ;;  %v2948_v43 = vmul.f32 %v9074_v44, %v2920_v56  ;;  %v3301_v1 = vmul.f32 %v9075_v45, %v2922_v9  ;;  %v3302_v27 = vmul.f32 %v3290_v59, %v2920_v56 }
 0x693   : > { %v3034_v42 = vpack.c.bf16 %v3025_v55, %v3024_v8  ;;  %v3351_v4 = vpack.c.bf16 %v3341_v21, %v3340_v29  ;;  %v3352_v11 = vpack.c.bf16 %v3343_v62, %v3342_v10  ;;  %v3156_v37 = vsel %vm3144_vm4, %v8324_v15, %v8109_v2 }
 0x694   : > { %v2957_v47 = vpack.c.bf16 %v2947_v17, %v2946_v49  ;;  %v3178_v33 = vmul.f32 %v3160_v48, %v3156_v37  ;;  %v3179_v44 = vmul.f32 %v3161_v50, %v3154_v20  ;;  %v2958_v9 = vpack.c.bf16 %v2949_v39, %v2948_v43 }
 0x695   : > { %3040 = vst [vmem:[#allocation2 + $0x40] sm:$0xff] %v3034_v42  ;;  %v3250_v45 = vperm.slane %v8251_v28, 2  ;;  %v3251_v56 = vperm.slane %v8251_v28, 3  ;;  %v3312_v29 = vpack.c.bf16 %v3302_v27, %v3301_v1  ;;  %v9106_v39 = vperm.slane %v8168_v24, 0 }
 0x696   : > { %3357 = vst [vmem:[#allocation2 + $0x158] sm:$0xff] %v3351_v4  ;;  %v3187_v62 = vpack.c.bf16 %v3179_v44, %v3178_v33  ;;  %v3344_v33 = vmul.f32 %v3326_v57, %v8082_v35  ;;  %v9107_v37 = vperm.slane %v8213_v34, 0 }
 0x697   : > { %3358 = vst [vmem:[#allocation2 + $0x160] sm:$0xff] %v3352_v11  ;;  %v8352_v8 = vpop.permute.xlu1 %2978  ;;  %v3221_v2 = vpop.permute.xlu0 %3220 }
 0x698   : > { %2963 = vst [vmem:[#allocation2 + $0x8] sm:$0xff] %v2957_v47  ;;  %v8358_v48 = vsel %vm2992_vm1, %v8065_v36, %v8352_v8  ;;  %v3235_v42 = vsel %vm3232_vm5, %v3221_v2, %v8275_v6  ;;  %v3237_v50 = vsel %vm3232_vm5, %v8264_v18, %v3221_v2  ;;  %v2991_v11 = vpop.permute.xlu2 %2990  ;;  %v8379_v18 = vld [vmem:[%s9030_s9 + $0x30] sm:$0x3f]  ;;  %v3305_v47 = vmul.f32 %v9107_v37, %v8099_v31 }
 0x699   : > { %2964 = vst [vmem:[#allocation2 + $0x10] sm:$0xff] %v2958_v9  ;;  %v3345_v4 = vmul.f32 %v3327_v40, %v8358_v48  ;;  %v3262_v36 = vmul.f32 %v3250_v45, %v3237_v50  ;;  %v3263_v20 = vmul.f32 %v3251_v56, %v3235_v42  ;;  %v3004_v57 = vsel %vm2992_vm1, %v2991_v11, %v8076_v25 }
 0x69a   : > { %3318 = vst [vmem:[#allocation2 + $0x128] sm:$0xff] %v3312_v29  ;;  %v3027_v40 = vmul.f32 %v3009_v0, %v8082_v35  ;;  %v3026_v55 = vmul.f32 %v9106_v39, %v3004_v57  ;;  %v3365_v21 = vperm.slane %v8379_v18, 0  ;;  %v3366_v17 = vperm.slane %v8379_v18, 1 }
 0x69b   : > { %3193 = vst [vmem:[#allocation2 + $0xa8] sm:$0xff] %v3187_v62  ;;  %v3353_v44 = vpack.c.bf16 %v3345_v4, %v3344_v33  ;;  %v3273_v49 = vpack.c.bf16 %v3263_v20, %v3262_v36  ;;  %v9110_v50 = vperm.slane %v8246_v26, 0  ;;  %v5228_v4 = vld [vmem:[#allocation2 + $0x150] sm:$0xf]  ;;  %v5631_v20 = vld [vmem:[#allocation2 + $0x154] sm:$0xf] }
 0x69c   : > { %v3035_v10 = vpack.c.bf16 %v3027_v40, %v3026_v55  ;;  %v3377_v27 = vmul.f32 %v3365_v21, %v8132_v14  ;;  %v9109_v14 = vperm.slane %v8246_v26, 1 }
 0x69d   : > { %3359 = vst [vmem:[#allocation2 + $0x168] sm:$0xff] %v3353_v44 }
 0x69e   : > { %3279 = vst [vmem:[#allocation2 + $0xf8] sm:$0xff] %v3273_v49  ;;  %v2951_v62 = vmul.f32 %v9109_v14, %v8099_v31  ;;  %v8441_v31 = vsel %vm3068_vm3, %v8113_v38, %v8134_v52 }
 0x69f   : > { %3041 = vst [vmem:[#allocation2 + $0x48] sm:$0xff] %v3035_v10  ;;  %v8391_v43 = vpop.permute.xlu1 %2903  ;;  %v8393_v25 = vpop.permute.xlu0 %3052 }
 0x6a0   : > { %v8399_v35 = vsel %vm2917_vm2, %v8084_v30, %v8391_v43  ;;  %v8405_v0 = vsel %vm3068_vm3, %v8063_v3, %v8393_v25  ;;  %v8407_v1 = vpop.permute.xlu2 %2915  ;;  %v9108_v30 = vperm.slane %v8213_v34, 1 }
 0x6a1   : > { %v3378_v29 = vmul.f32 %v3366_v17, %v8405_v0  ;;  %v8425_v3 = vsel %vm2917_vm2, %v8407_v1, %v8093_v5  ;;  %v3242_v5 = vsel %vm3232_vm5, %v8111_v12, %v8101_v41 }
 0x6a2   : > { %v3306_v9 = vmul.f32 %v9108_v30, %v8399_v35  ;;  %v2950_v33 = vmul.f32 %v9110_v50, %v8425_v3 }
 0x6a3   : > { %v3389_v42 = vpack.c.bf16 %v3378_v29, %v3377_v27  ;;  %v9111_v27 = vperm.slane %v8251_v28, 0  ;;  %v9112_v29 = vperm.slane %v8118_v7, 1 }
 0x6a4   : > { %v3314_v2 = vpack.c.bf16 %v3306_v9, %v3305_v47  ;;  %v5634_v36 = vld [vmem:[#allocation2 + $0x164] sm:$0xf0]  ;;  %v5230_v40 = vld [vmem:[#allocation2 + $0x168] sm:$0xf0]  ;;  %v2959_v44 = vpack.c.bf16 %v2951_v62, %v2950_v33  ;;  %v9113_v62 = vperm.slane %v8251_v28, 1  ;;  %v3349_v33 = vmul.f32 %v3331_v13, %v3004_v57 }
 0x6a5   : > { %v5229_v49 = vor.u32 %v5634_v36, %v5228_v4  ;;  %v5233_v39 = vor.u32 %v5631_v20, %v5230_v40  ;;  %3395 = vst [vmem:[#allocation2 + $0x180] sm:$0xff] %v3389_v42  ;;  %v3266_v37 = vmul.f32 %v9111_v27, %v3242_v5  ;;  %v3103_v14 = vmul.f32 %v9112_v29, %v8441_v31  ;;  %v5204_v20 = vld [vmem:[#allocation2 + $0x120] sm:$0xf] }
 0x6a6   : > { %3320 = vst [vmem:[#allocation2 + $0x138] sm:$0xff] %v3314_v2  ;;  %v9114_v42 = vperm.slane %v8118_v7, 0  ;;  %v3162_v13 = vperm.slane %v8148_v23, 2  ;;  %v9115_v57 = vperm.slane %v8168_v24, 2 }
 0x6a7   : > { %2965 = vst [vmem:[#allocation2 + $0x18] sm:$0xff] %v2959_v44  ;;  %v8443_v55 = vpop.permute.xlu1 %3218  ;;  %v8445_v10 = vpop.permute.xlu0 %3066  ;;  %3751 = vmatpush.bf16.msra.mxu2 %v5229_v49  ;;  %3779 = vmatpush.bf16.msra.mxu0 %v5233_v39  ;;  %v5625_v44 = vld [vmem:[#allocation2 + $0x124] sm:$0xf] }
 0x6a8   : > { %v3240_v47 = vsel %vm3232_vm5, %v8101_v41, %v8443_v55  ;;  %v8457_v30 = vsel %vm3068_vm3, %v8445_v10, %v8113_v38  ;;  %v2987_v9 = vpop.permute.xlu2 %2986 }
 0x6a9   : > { %v3267_v2 = vmul.f32 %v9113_v62, %v3240_v47  ;;  %v3102_v50 = vmul.f32 %v9114_v42, %v8457_v30  ;;  %v2994_v41 = vsel %vm2992_vm1, %v2987_v9, %v2991_v11  ;;  %v9116_v42 = vperm.slane %v8168_v24, 3 }
 0x6aa   : > { %v3348_v38 = vmul.f32 %v3330_v53, %v2994_v41  ;;  %v3163_v53 = vperm.slane %v8148_v23, 3  ;;  %v3031_v29 = vmul.f32 %v3013_v19, %v2994_v41 }
 0x6ab   : > { %v3275_v4 = vpack.c.bf16 %v3267_v2, %v3266_v37  ;;  %v3111_v36 = vpack.c.bf16 %v3103_v14, %v3102_v50  ;;  %v3028_v37 = vmul.f32 %v9115_v57, %v8358_v48 }
 0x6ac   : > { %v3355_v40 = vpack.c.bf16 %v3349_v33, %v3348_v38  ;;  %v9117_v38 = vperm.slane %v8143_v32, 2 }
 0x6ad   : > { %v5628_v5 = vld [vmem:[#allocation2 + $0x134] sm:$0xf0]  ;;  %v5206_v49 = vld [vmem:[#allocation2 + $0x138] sm:$0xf0]  ;;  %3281 = vst [vmem:[#allocation2 + $0x108] sm:$0xff] %v3275_v4 }
 0x6ae   : > { %v5205_v39 = vor.u32 %v5628_v5, %v5204_v20  ;;  %v5209_v27 = vor.u32 %v5625_v44, %v5206_v49  ;;  %3117 = vst [vmem:[#allocation2 + $0x78] sm:$0xff] %v3111_v36  ;;  %v5616_v20 = vld [vmem:[#allocation2 + $0xd4] sm:$0xf0]  ;;  %v3086_v44 = vperm.slane %v8118_v7, 2  ;;  %v3087_v49 = vperm.slane %v8118_v7, 3 }
 0x6af   : > { %3361 = vst [vmem:[#allocation2 + $0x178] sm:$0xff] %v3355_v40  ;;  %v8473_v47 = vpop.permute.xlu1 %3132  ;;  %v2983_v11 = vpop.permute.xlu0 %2982  ;;  %v5619_v40 = vld [vmem:[#allocation2 + $0xf4] sm:$0xf] }
 0x6b0   : > { %3752 = vmatpush.bf16.msra.mxu2 %v5205_v39  ;;  %3780 = vmatpush.bf16.msra.mxu0 %v5209_v27  ;;  %v2996_v14 = vsel %vm2992_vm1, %v2983_v11, %v2987_v9  ;;  %v2998_v62 = vsel %vm2992_vm1, %v8352_v8, %v2983_v11  ;;  %v3129_v2 = vpop.permute.xlu2 %3128  ;;  %v5158_v27 = vld [vmem:[#allocation2 + $0xd8] sm:$0xf0] }
 0x6b1   : > { %v3029_v50 = vmul.f32 %v9116_v42, %v2998_v62  ;;  %v3030_v33 = vmul.f32 %v3012_v58, %v2996_v14  ;;  %v3346_v48 = vmul.f32 %v9117_v38, %v2998_v62  ;;  %v3347_v19 = vmul.f32 %v3329_v61, %v2996_v14  ;;  %v5180_v58 = vld [vmem:[#allocation2 + $0xf0] sm:$0xf]  ;;  %v5613_v14 = vld [vmem:[#allocation2 + $0xc4] sm:$0xf] }
 0x6b2   : > { %v3149_v9 = vsel %vm3144_vm4, %v3129_v2, %v8473_v47  ;;  %v3151_v8 = vsel %vm3144_vm4, %v8053_v54, %v3129_v2  ;;  %v9118_v38 = vperm.slane %v8246_v26, 2 }
 0x6b3   : > { %v3036_v41 = vpack.c.bf16 %v3029_v50, %v3028_v37  ;;  %v3037_v4 = vpack.c.bf16 %v3031_v29, %v3030_v33  ;;  %v3354_v36 = vpack.c.bf16 %v3347_v19, %v3346_v48  ;;  %v3174_v24 = vmul.f32 %v3162_v13, %v3151_v8  ;;  %v5156_v29 = vld [vmem:[#allocation2 + $0xc0] sm:$0xf]  ;;  %v5610_v8 = vld [vmem:[#allocation2 + $0xa4] sm:$0xf0] }
 0x6b4   : > { %v3175_v32 = vmul.f32 %v3163_v53, %v3149_v9  ;;  %v5622_v61 = vld [vmem:[#allocation2 + $0x104] sm:$0xf0]  ;;  %v5182_v5 = vld [vmem:[#allocation2 + $0x108] sm:$0xf0]  ;;  %v5157_v50 = vor.u32 %v5616_v20, %v5156_v29  ;;  %v5161_v33 = vor.u32 %v5613_v14, %v5158_v27  ;;  %v2952_v48 = vmul.f32 %v9118_v38, %v8399_v35 }
 0x6b5   : > { %3042 = vst [vmem:[#allocation2 + $0x50] sm:$0xff] %v3036_v41  ;;  %v5181_v54 = vor.u32 %v5622_v61, %v5180_v58  ;;  %v5185_v39 = vor.u32 %v5619_v40, %v5182_v5  ;;  %v3098_v19 = vmul.f32 %v3086_v44, %v8405_v0  ;;  %v5134_v41 = vld [vmem:[#allocation2 + $0xa8] sm:$0xf0]  ;;  %v5607_v58 = vld [vmem:[#allocation2 + $0x94] sm:$0xf]  ;;  %v3252_v40 = vperm.slane %v8251_v28, 4 }
 0x6b6   : > { %3043 = vst [vmem:[#allocation2 + $0x58] sm:$0xff] %v3037_v4  ;;  %v3185_v11 = vpack.c.bf16 %v3175_v32, %v3174_v24  ;;  %v5132_v24 = vld [vmem:[#allocation2 + $0x90] sm:$0xf]  ;;  %v5137_v20 = vor.u32 %v5607_v58, %v5134_v41  ;;  %v5604_v32 = vld [vmem:[#allocation2 + $0x74] sm:$0xf0]  ;;  %v3253_v5 = vperm.slane %v8251_v28, 5 }
 0x6b7   : > { %3360 = vst [vmem:[#allocation2 + $0x170] sm:$0xff] %v3354_v36  ;;  %v2908_v57 = vpop.permute.xlu1 %2907  ;;  %v8507_v37 = vpop.permute.xlu0 %3056  ;;  %3753 = vmatpush.bf16.msra.mxu2 %v5181_v54  ;;  %3781 = vmatpush.bf16.msra.mxu0 %v5185_v39  ;;  %v5133_v35 = vor.u32 %v5610_v8, %v5132_v24  ;;  %v5108_v54 = vld [vmem:[#allocation2 + $0x60] sm:$0xf]  ;;  %v5110_v39 = vld [vmem:[#allocation2 + $0x78] sm:$0xf0]  ;;  %v9120_v27 = vperm.slane %v8213_v34, 5 }
 0x6b8   : > { %3191 = vst [vmem:[#allocation2 + $0x98] sm:$0xff] %v3185_v11  ;;  %v2923_v62 = vsel %vm2917_vm2, %v8391_v43, %v2908_v57  ;;  %v8516_v2 = vsel %vm3068_vm3, %v8393_v25, %v8507_v37  ;;  %v8518_v42 = vpop.permute.xlu2 %3134  ;;  %v9119_v43 = vperm.slane %v8246_v26, 3  ;;  %v9121_v38 = vperm.slane %v8213_v34, 2  ;;  %v5601_v8 = vld [vmem:[#allocation2 + $0x64] sm:$0xf] }
 0x6b9   : > { %v3099_v25 = vmul.f32 %v3087_v49, %v8516_v2  ;;  %v3310_v11 = vmul.f32 %v9120_v27, %v8425_v3  ;;  %v3369_v27 = vperm.slane %v8379_v18, 4  ;;  %v3164_v28 = vperm.slane %v8148_v23, 4 }
 0x6ba   : > { %v2953_v9 = vmul.f32 %v9119_v43, %v2923_v62 }
 0x6bb   : > { %v3109_v36 = vpack.c.bf16 %v3099_v25, %v3098_v19  ;;  %3754 = vmatpush.bf16.msra.mxu2 %v5157_v50  ;;  %3782 = vmatpush.bf16.msra.mxu0 %v5161_v33  ;;  %v5109_v33 = vor.u32 %v5604_v32, %v5108_v54  ;;  %v9122_v19 = vperm.slane %v8246_v26, 4 }
 0x6bc   : > { %v2960_v4 = vpack.c.bf16 %v2953_v9, %v2952_v48  ;;  %v3307_v48 = vmul.f32 %v9121_v38, %v2923_v62  ;;  %v9123_v9 = vperm.slane %v8246_v26, 5  ;;  %v5052_v38 = vld [vmem:[%s9028_s7] sm:$0xf] }
 0x6bd   : > { %3115 = vst [vmem:[#allocation2 + $0x68] sm:$0xff] %v3109_v36  ;;  %v5598_v36 = vld [vmem:[#allocation2 + $0x44] sm:$0xf0] }
 0x6be   : > { %2966 = vst [vmem:[#allocation2 + $0x20] sm:$0xff] %v2960_v4  ;;  %v5113_v4 = vor.u32 %v5601_v8, %v5110_v39  ;;  %v5589_v8 = vld [vmem:[#allocation2 + $0x4] sm:$0xf] }
 0x6bf   : > { %v3223_v0 = vpop.permute.xlu1 %3222  ;;  %v2912_v61 = vpop.permute.xlu0 %2911  ;;  %3755 = vmatpush.bf16.msra.mxu2 %v5133_v35  ;;  %3783 = vmatpush.bf16.msra.mxu0 %v5137_v20  ;;  %v5084_v20 = vld [vmem:[#allocation2 + $0x30] sm:$0xf] }
 0x6c0   : > { %v2919_v29 = vsel %vm2917_vm2, %v2912_v61, %v8407_v1  ;;  %v2921_v14 = vsel %vm2917_vm2, %v2908_v57, %v2912_v61  ;;  %v3229_v50 = vpop.permute.xlu2 %3228  ;;  %v9124_v1 = vperm.slane %v8213_v34, 4  ;;  %v5086_v34 = vld [vmem:[#allocation2 + $0x48] sm:$0xf0]  ;;  %v5085_v32 = vor.u32 %v5598_v36, %v5084_v20  ;;  %v5595_v61 = vld [vmem:[#allocation2 + $0x34] sm:$0xf] }
 0x6c1   : > { %v2954_v43 = vmul.f32 %v9122_v19, %v2921_v14  ;;  %v2955_v25 = vmul.f32 %v9123_v9, %v2919_v29  ;;  %v3308_v3 = vmul.f32 %v3290_v59, %v2921_v14  ;;  %v3233_v57 = vsel %vm3232_vm5, %v8275_v6, %v3229_v50  ;;  %v5062_v14 = vld [vmem:[#allocation2 + $0x18] sm:$0xf0] }
 0x6c2   : > { %v3309_v41 = vmul.f32 %v9124_v1, %v2919_v29  ;;  %v3243_v62 = vsel %vm3232_vm5, %v3229_v50, %v8042_v60  ;;  %v3264_v58 = vmul.f32 %v3252_v40, %v3233_v57  ;;  %v5592_v60 = vld [vmem:[#allocation2 + $0x14] sm:$0xf0]  ;;  %v3238_v54 = vsel %vm3232_vm5, %v8443_v55, %v3223_v0  ;;  %v5060_v29 = vld [vmem:[#allocation2] sm:$0xf]  ;;  %v5588_v55 = vld [vmem:[%s9028_s7 + $0x4] sm:$0xf0] }
 0x6c3   : > { %v2961_v24 = vpack.c.bf16 %v2955_v25, %v2954_v43  ;;  %v3315_v26 = vpack.c.bf16 %v3308_v3, %v3307_v48  ;;  %v3265_v59 = vmul.f32 %v3253_v5, %v3243_v62  ;;  %3756 = vmatpush.bf16.msra.mxu2 %v5109_v33  ;;  %3784 = vmatpush.bf16.msra.mxu0 %v5113_v4  ;;  %v3370_v48 = vperm.slane %v8379_v18, 5 }
 0x6c4   : > { %v3316_v35 = vpack.c.bf16 %v3310_v11, %v3309_v41  ;;  %v5089_v39 = vor.u32 %v5595_v61, %v5086_v34  ;;  %v3383_v11 = vmul.f32 %v3365_v21, %v8441_v31  ;;  %v5061_v43 = vor.u32 %v5592_v60, %v5060_v29  ;;  %v5637_v29 = vld [vmem:[#allocation2 + $0x184] sm:$0xf] }
 0x6c5   : > { %2967 = vst [vmem:[#allocation2 + $0x28] sm:$0xff] %v2961_v24  ;;  %v3274_v6 = vpack.c.bf16 %v3265_v59, %v3264_v58  ;;  %v3268_v9 = vmul.f32 %v3250_v45, %v3238_v54  ;;  %v3388_v1 = vmul.f32 %v3370_v48, %v8457_v30  ;;  %v5065_v41 = vor.u32 %v5589_v8, %v5062_v14 }
 0x6c6   : > { %3321 = vst [vmem:[#allocation2 + $0x140] sm:$0xff] %v3315_v26  ;;  %v8595_v57 = vor.u32 %v5588_v55, %v5052_v38  ;;  %v3367_v30 = vperm.slane %v8379_v18, 2  ;;  %v5635_v38 = vld [vmem:[#allocation2 + $0x16c] sm:$0xf0] }
 0x6c7   : > { %3322 = vst [vmem:[#allocation2 + $0x148] sm:$0xff] %v3316_v35  ;;  %v3055_v50 = vpop.permute.xlu1 %3054  ;;  %v8568_v33 = vpop.permute.xlu0 %3226  ;;  %3757 = vmatpush.bf16.msra.mxu2 %v5085_v32  ;;  %3785 = vmatpush.bf16.msra.mxu0 %v5089_v39  ;;  %v5252_v39 = vld [vmem:[#allocation2 + $0x180] sm:$0xf] }
 0x6c8   : > { %3280 = vst [vmem:[#allocation2 + $0x100] sm:$0xff] %v3274_v6  ;;  %v3076_v21 = vsel %vm3068_vm3, %v8134_v52, %v3055_v50  ;;  %v3236_v31 = vsel %vm3232_vm5, %v3223_v0, %v8568_v33  ;;  %v3063_v19 = vpop.permute.xlu2 %3062 }
 0x6c9   : > { %v3384_v25 = vmul.f32 %v3366_v17, %v3076_v21  ;;  %v3269_v3 = vmul.f32 %v3251_v56, %v3236_v31  ;;  %v3070_v52 = vsel %vm3068_vm3, %v3063_v19, %v8445_v10  ;;  %v3089_v17 = vperm.slane %v8118_v7, 5 }
 0x6ca   : > { %v3387_v0 = vmul.f32 %v3369_v27, %v3070_v52  ;;  %v3088_v56 = vperm.slane %v8118_v7, 4  ;;  %v3368_v10 = vperm.slane %v8379_v18, 3  ;;  %v3104_v36 = vmul.f32 %v3086_v44, %v3076_v21  ;;  %v5587_v7 = vld [vmem:[%s9028_s7 + $0x4] sm:$0xf]  ;;  %v5238_v21 = vld [vmem:[#allocation2 + $0x170] sm:$0xf0] }
 0x6cb   : > { %v3392_v45 = vpack.c.bf16 %v3384_v25, %v3383_v11  ;;  %v3276_v62 = vpack.c.bf16 %v3269_v3, %v3268_v9  ;;  %3758 = vmatpush.bf16.msra.mxu2 %v5061_v43  ;;  %3786 = vmatpush.bf16.msra.mxu0 %v5065_v41  ;;  %v3107_v24 = vmul.f32 %v3089_v17, %v3070_v52  ;;  %v5236_v43 = vld [vmem:[#allocation2 + $0x158] sm:$0xf]  ;;  %v5632_v9 = vld [vmem:[#allocation2 + $0x15c] sm:$0xf] }
 0x6cc   : > { %v3394_v4 = vpack.c.bf16 %v3388_v1, %v3387_v0  ;;  %v3379_v3 = vmul.f32 %v3367_v30, %v8516_v2  ;;  %v5237_v1 = vor.u32 %v5635_v38, %v5236_v43  ;;  %v5241_v0 = vor.u32 %v5632_v9, %v5238_v21  ;;  %v5614_v38 = vld [vmem:[#allocation2 + $0xcc] sm:$0xf] }
 0x6cd   : > { %3398 = vst [vmem:[#allocation2 + $0x198] sm:$0xff] %v3392_v45  ;;  %v5629_v45 = vld [vmem:[#allocation2 + $0x13c] sm:$0xf0] }
 0x6ce   : > { %3282 = vst [vmem:[#allocation2 + $0x110] sm:$0xff] %v3276_v62  ;;  %3759 = vmatmul.bf16.vlgmr.msra.gmra.mxu2 %v8595_v57  ;;  %3787 = vmatmul.bf16.vlgmr.msra.gmra.mxu0 %v8595_v57 }
 0x6cf   : > { %3400 = vst [vmem:[#allocation2 + $0x1a8] sm:$0xff] %v3394_v4  ;;  %v3059_v26 = vpop.permute.xlu1 %3058  ;;  %v3131_v58 = vpop.permute.xlu0 %3130 }
 0x6d0   : > { %v3072_v59 = vsel %vm3068_vm3, %v3059_v26, %v3063_v19  ;;  %v3074_v34 = vsel %vm3068_vm3, %v3055_v50, %v3059_v26  ;;  %v3150_v35 = vsel %vm3144_vm4, %v3131_v58, %v8518_v42  ;;  %v3152_v44 = vsel %vm3144_vm4, %v8136_v46, %v3131_v58  ;;  %v5054_v46 = vld [vmem:[%s9028_s7 + $0x8] sm:$0xf0] }
 0x6d1   : > { %v3105_v20 = vmul.f32 %v3087_v49, %v3074_v34  ;;  %v3106_v6 = vmul.f32 %v3088_v56, %v3072_v59  ;;  %v3385_v32 = vmul.f32 %v3367_v30, %v3074_v34  ;;  %v3386_v61 = vmul.f32 %v3368_v10, %v3072_v59  ;;  %v5188_v59 = vld [vmem:[#allocation2 + $0xf8] sm:$0xf]  ;;  %v5620_v34 = vld [vmem:[#allocation2 + $0xfc] sm:$0xf] }
 0x6d2   : > { %v3180_v60 = vmul.f32 %v3162_v13, %v3152_v44  ;;  %v3181_v54 = vmul.f32 %v3163_v53, %v3150_v35  ;;  %v3382_v19 = vmul.f32 %v3370_v48, %v8153_v63  ;;  %v8628_v25 = vor.u32 %v5587_v7, %v5054_v46 }
 0x6d3   : > { %v3112_v14 = vpack.c.bf16 %v3105_v20, %v3104_v36  ;;  %v3113_v11 = vpack.c.bf16 %v3107_v24, %v3106_v6  ;;  %v3393_v50 = vpack.c.bf16 %v3386_v61, %v3385_v32 }
 0x6d4   : > { %v3188_v49 = vpack.c.bf16 %v3181_v54, %v3180_v60  ;;  %v5640_v55 = vld [vmem:[#allocation2 + $0x194] sm:$0xf0]  ;;  %v5254_v13 = vld [vmem:[#allocation2 + $0x198] sm:$0xf0]  ;;  %v5617_v54 = vld [vmem:[#allocation2 + $0xdc] sm:$0xf0] }
 0x6d5   : > { %3118 = vst [vmem:[#allocation2 + $0x80] sm:$0xff] %v3112_v14  ;;  %v5253_v53 = vor.u32 %v5640_v55, %v5252_v39  ;;  %v5257_v31 = vor.u32 %v5637_v29, %v5254_v13  ;;  %v5623_v58 = vld [vmem:[#allocation2 + $0x10c] sm:$0xf0]  ;;  %v5636_v55 = vld [vmem:[#allocation2 + $0x174] sm:$0xf0] }
 0x6d6   : > { %3119 = vst [vmem:[#allocation2 + $0x88] sm:$0xff] %v3113_v11  ;;  %v5189_v20 = vor.u32 %v5623_v58, %v5188_v59  ;;  %v5092_v58 = vld [vmem:[#allocation2 + $0x38] sm:$0xf] }
 0x6d7   : > { %3399 = vst [vmem:[#allocation2 + $0x1a0] sm:$0xff] %v3393_v50  ;;  %v3061_v52 = vpop.permute.xlu1 %3060  ;;  %v3231_v8 = vpop.permute.xlu0 %3230  ;;  %3772 = vmatpush.bf16.msra.mxu3 %v5253_v53  ;;  %3800 = vmatpush.bf16.msra.mxu1 %v5257_v31  ;;  %v5166_v50 = vld [vmem:[#allocation2 + $0xe0] sm:$0xf0] }
 0x6d8   : > { %3194 = vst [vmem:[#allocation2 + $0xb0] sm:$0xff] %v3188_v49  ;;  %v3069_v41 = vsel %vm3068_vm3, %v3061_v52, %v8138_v51  ;;  %v3071_v63 = vsel %vm3068_vm3, %v8507_v37, %v3061_v52  ;;  %v3234_v2 = vsel %vm3232_vm5, %v8568_v33, %v3231_v8  ;;  %v3244_v48 = vsel %vm3232_vm5, %v3231_v8, %v8111_v12  ;;  %v5214_v51 = vld [vmem:[#allocation2 + $0x140] sm:$0xf0]  ;;  %v5212_v12 = vld [vmem:[#allocation2 + $0x128] sm:$0xf] }
 0x6d9   : > { %v3100_v62 = vmul.f32 %v3088_v56, %v3071_v63  ;;  %v3101_v4 = vmul.f32 %v3089_v17, %v3069_v41  ;;  %v3380_v30 = vmul.f32 %v3368_v10, %v3071_v63  ;;  %v3381_v36 = vmul.f32 %v3369_v27, %v3069_v41  ;;  %v5626_v27 = vld [vmem:[#allocation2 + $0x12c] sm:$0xf]  ;;  %v5140_v52 = vld [vmem:[#allocation2 + $0x98] sm:$0xf]  ;;  %v5244_v8 = vld [vmem:[#allocation2 + $0x160] sm:$0xf] }
 0x6da   : > { %v3270_v37 = vmul.f32 %v3252_v40, %v3234_v2  ;;  %v3271_v24 = vmul.f32 %v3253_v5, %v3244_v48  ;;  %5274 = vmatmul.msk.bf16.vlgmr.msra.gmra.mxu3 %vm1368_vm8, %v8628_v25  ;;  %5275 = vmatmul.msk.bf16.vlgmr.msra.gmra.mxu1 %vm1368_vm8, %v8628_v25  ;;  %v5213_v18 = vor.u32 %v5629_v45, %v5212_v12  ;;  %v5190_v40 = vld [vmem:[#allocation2 + $0x110] sm:$0xf0]  ;;  %v3165_v5 = vperm.slane %v8148_v23, 5  ;;  %v5633_v63 = vld [vmem:[#allocation2 + $0x164] sm:$0xf] }
 0x6db   : > { %3807 = vmatpush.bf16.msrb.mxu3 %v5237_v1  ;;  %3835 = vmatpush.bf16.msrb.mxu1 %v5241_v0  ;;  %v3110_v33 = vpack.c.bf16 %v3101_v4, %v3100_v62  ;;  %v3390_v56 = vpack.c.bf16 %v3380_v30, %v3379_v3  ;;  %v3391_v17 = vpack.c.bf16 %v3382_v19, %v3381_v36  ;;  %v5608_v0 = vld [vmem:[#allocation2 + $0x9c] sm:$0xf]  ;;  %v5630_v62 = vld [vmem:[#allocation2 + $0x144] sm:$0xf0]  ;;  %v5222_v30 = vld [vmem:[#allocation2 + $0x148] sm:$0xf0] }
 0x6dc   : > { %v3277_v10 = vpack.c.bf16 %v3271_v24, %v3270_v37  ;;  %v5217_v26 = vor.u32 %v5626_v27, %v5214_v51  ;;  %v5193_v6 = vor.u32 %v5620_v34, %v5190_v40  ;;  %v5169_v13 = vor.u32 %v5614_v38, %v5166_v50  ;;  %v5605_v45 = vld [vmem:[#allocation2 + $0x7c] sm:$0xf0]  ;;  %v5118_v4 = vld [vmem:[#allocation2 + $0x80] sm:$0xf0]  ;;  %v5116_v36 = vld [vmem:[#allocation2 + $0x68] sm:$0xf] }
 0x6dd   : > { %3116 = vst [vmem:[#allocation2 + $0x70] sm:$0xff] %v3110_v33  ;;  %v5245_v41 = vor.u32 %v5636_v55, %v5244_v8  ;;  %v5220_v51 = vld [vmem:[#allocation2 + $0x130] sm:$0xf]  ;;  %v5117_v37 = vor.u32 %v5605_v45, %v5116_v36  ;;  %v5602_v24 = vld [vmem:[#allocation2 + $0x6c] sm:$0xf] }
 0x6de   : > { %3396 = vst [vmem:[#allocation2 + $0x188] sm:$0xff] %v3390_v56  ;;  %v5641_v49 = vld [vmem:[#allocation2 + $0x19c] sm:$0xf0]  ;;  %v5262_v21 = vld [vmem:[#allocation2 + $0x1a0] sm:$0xf0]  ;;  %v5221_v12 = vor.u32 %v5630_v62, %v5220_v51  ;;  %v5121_v56 = vor.u32 %v5602_v24, %v5118_v4 }
 0x6df   : > { %3808 = vmatpush.bf16.msrb.mxu3 %v5213_v18  ;;  %3836 = vmatpush.bf16.msrb.mxu1 %v5217_v26  ;;  %3397 = vst [vmem:[#allocation2 + $0x190] sm:$0xff] %v3391_v17  ;;  %v3139_v35 = vpop.permute.xlu1 %3138  ;;  %v3137_v44 = vpop.permute.xlu0 %3136  ;;  %v5611_v53 = vld [vmem:[#allocation2 + $0xac] sm:$0xf0]  ;;  %v5142_v31 = vld [vmem:[#allocation2 + $0xb0] sm:$0xf0] }
 0x6e0   : > { %3283 = vst [vmem:[#allocation2 + $0x118] sm:$0xff] %v3277_v10  ;;  %v3146_v32 = vsel %vm3144_vm4, %v3139_v35, %v8324_v15  ;;  %v3148_v61 = vsel %vm3144_vm4, %v8518_v42, %v3139_v35  ;;  %v3145_v23 = vsel %vm3144_vm4, %v3137_v44, %v8184_v22  ;;  %v3147_v60 = vsel %vm3144_vm4, %v8473_v47, %v3137_v44  ;;  %v5164_v15 = vld [vmem:[#allocation2 + $0xc8] sm:$0xf]  ;;  %v3457_v42 = vld [vmem:[%s9029_s8] sm:$0xff]  ;;  %v5246_v47 = vld [vmem:[#allocation2 + $0x178] sm:$0xf0] }
 0x6e1   : > { %v3182_v39 = vmul.f32 %v3164_v28, %v3148_v61  ;;  %v3183_v29 = vmul.f32 %v3165_v5, %v3146_v32  ;;  %v3176_v14 = vmul.f32 %v3164_v28, %v3147_v60  ;;  %v3177_v11 = vmul.f32 %v3165_v5, %v3145_v23  ;;  %3461 = vperm.xlu2 %5724, %v3457_v42   ;;  %v5627_v33 = vld [vmem:[#allocation2 + $0x134] sm:$0xf]  ;;  %v5599_v18 = vld [vmem:[#allocation2 + $0x4c] sm:$0xf0]  ;;  %v5196_v40 = vld [vmem:[#allocation2 + $0x100] sm:$0xf] }
 0x6e2   : > { %v5165_v46 = vor.u32 %v5617_v54, %v5164_v15  ;;  %v5141_v1 = vor.u32 %v5611_v53, %v5140_v52  ;;  %v5145_v2 = vor.u32 %v5608_v0, %v5142_v31  ;;  %v5249_v48 = vor.u32 %v5633_v63, %v5246_v47  ;;  %v5094_v10 = vld [vmem:[#allocation2 + $0x50] sm:$0xf0]  ;;  %v5596_v5 = vld [vmem:[#allocation2 + $0x3c] sm:$0xf]  ;;  %v5621_v34 = vld [vmem:[#allocation2 + $0x104] sm:$0xf] }
 0x6e3   : > { %3809 = vmatpush.bf16.msrb.mxu3 %v5189_v20  ;;  %3837 = vmatpush.bf16.msrb.mxu1 %v5193_v6  ;;  %v3189_v7 = vpack.c.bf16 %v3183_v29, %v3182_v39  ;;  %v3186_v22 = vpack.c.bf16 %v3177_v11, %v3176_v14  ;;  %v5225_v17 = vor.u32 %v5627_v33, %v5222_v30  ;;  %v5593_v20 = vld [vmem:[#allocation2 + $0x1c] sm:$0xf0]  ;;  %v5618_v6 = vld [vmem:[#allocation2 + $0xe4] sm:$0xf0]  ;;  %v5070_v32 = vld [vmem:[#allocation2 + $0x20] sm:$0xf0] }
 0x6e4   : > { %v5093_v28 = vor.u32 %v5599_v18, %v5092_v58  ;;  %v5097_v35 = vor.u32 %v5596_v5, %v5094_v10  ;;  %v5172_v61 = vld [vmem:[#allocation2 + $0xd0] sm:$0xf]  ;;  %v5174_v23 = vld [vmem:[#allocation2 + $0xe8] sm:$0xf0]  ;;  %v5068_v60 = vld [vmem:[#allocation2 + $0x8] sm:$0xf] }
 0x6e5   : > { %3195 = vst [vmem:[#allocation2 + $0xb8] sm:$0xff] %v3189_v7  ;;  %v5260_v19 = vld [vmem:[#allocation2 + $0x188] sm:$0xf]  ;;  %v5638_v43 = vld [vmem:[#allocation2 + $0x18c] sm:$0xf]  ;;  %v5069_v29 = vor.u32 %v5593_v20, %v5068_v60  ;;  %v5173_v11 = vor.u32 %v5618_v6, %v5172_v61 }
 0x6e6   : > { %3192 = vst [vmem:[#allocation2 + $0xa0] sm:$0xff] %v3186_v22  ;;  %v5261_v9 = vor.u32 %v5641_v49, %v5260_v19  ;;  %v5265_v3 = vor.u32 %v5638_v43, %v5262_v21  ;;  %v5268_v54 = vld [vmem:[#allocation2 + $0x190] sm:$0xf]  ;;  %v5639_v39 = vld [vmem:[#allocation2 + $0x194] sm:$0xf] }
 0x6e7   : > { %3810 = vmatpush.bf16.msrb.mxu3 %v5165_v46  ;;  %3838 = vmatpush.bf16.msrb.mxu1 %v5169_v13  ;;  %v5624_v27 = vld [vmem:[#allocation2 + $0x114] sm:$0xf0]  ;;  %v5198_v26 = vld [vmem:[#allocation2 + $0x118] sm:$0xf0]  ;;  %v5590_v14 = vld [vmem:[#allocation2 + $0xc] sm:$0xf] }
 0x6e8   : > { %3828 = vmatpush.bf16.msrb.mxu2 %v5261_v9  ;;  %3856 = vmatpush.bf16.msrb.mxu0 %v5265_v3  ;;  %v5197_v59 = vor.u32 %v5624_v27, %v5196_v40  ;;  %v5201_v44 = vor.u32 %v5621_v34, %v5198_v26  ;;  %v5615_v50 = vld [vmem:[#allocation2 + $0xd4] sm:$0xf]  ;;  %v5642_v15 = vld [vmem:[#allocation2 + $0x1a4] sm:$0xf0]  ;;  %v5073_v38 = vor.u32 %v5590_v14, %v5070_v32  ;;  %v5270_v7 = vld [vmem:[#allocation2 + $0x1a8] sm:$0xf0]  ;;  %v3467_v27 = vpop.permute.xlu0 %3466 }
 0x6e9   : > { %v5177_v42 = vor.u32 %v5615_v50, %v5174_v23  ;;  %v5269_v49 = vor.u32 %v5642_v15, %v5268_v54  ;;  %v5273_v55 = vor.u32 %v5639_v39, %v5270_v7  ;;  %v5124_v31 = vld [vmem:[#allocation2 + $0x70] sm:$0xf]  ;;  %v5603_v19 = vld [vmem:[#allocation2 + $0x74] sm:$0xf]  ;;  %v5606_v43 = vld [vmem:[#allocation2 + $0x84] sm:$0xf0] }
 0x6ea   : > { %v5125_v9 = vor.u32 %v5606_v43, %v5124_v31  ;;  %v5126_v3 = vld [vmem:[#allocation2 + $0x88] sm:$0xf0]  ;;  %v5600_v8 = vld [vmem:[#allocation2 + $0x54] sm:$0xf0]  ;;  %v5100_v0 = vld [vmem:[#allocation2 + $0x40] sm:$0xf] }
 0x6eb   : > { %3811 = vmatpush.bf16.msrb.mxu3 %v5141_v1  ;;  %3839 = vmatpush.bf16.msrb.mxu1 %v5145_v2  ;;  %v5129_v52 = vor.u32 %v5603_v19, %v5126_v3  ;;  %v5102_v1 = vld [vmem:[#allocation2 + $0x58] sm:$0xf0]  ;;  %v5597_v63 = vld [vmem:[#allocation2 + $0x44] sm:$0xf]  ;;  %v5078_v45 = vld [vmem:[#allocation2 + $0x28] sm:$0xf0] }
 0x6ec   : > { %3863 = vmatpush.bf16.msra.mxu2 %v5245_v41  ;;  %3891 = vmatpush.bf16.msra.mxu0 %v5249_v48  ;;  %v5612_v46 = vld [vmem:[#allocation2 + $0xb4] sm:$0xf0]  ;;  %v5150_v13 = vld [vmem:[#allocation2 + $0xb8] sm:$0xf0]  ;;  %v5101_v41 = vor.u32 %v5600_v8, %v5100_v0  ;;  %v5105_v2 = vor.u32 %v5597_v63, %v5102_v1  ;;  %v5594_v48 = vld [vmem:[#allocation2 + $0x24] sm:$0xf0] }
 0x6ed   : > { %5276 = vmatmul.msk.bf16.vlgmr.msrb.gmra.mxu2 %vm1368_vm8, %v8628_v25  ;;  %5277 = vmatmul.msk.bf16.vlgmr.msrb.gmra.mxu0 %vm1368_vm8, %v8628_v25  ;;  %v5148_v22 = vld [vmem:[#allocation2 + $0xa0] sm:$0xf]  ;;  %v5609_v47 = vld [vmem:[#allocation2 + $0xa4] sm:$0xf]  ;;  %v5076_v62 = vld [vmem:[#allocation2 + $0x10] sm:$0xf] }
 0x6ee   : > { %v5149_v21 = vor.u32 %v5612_v46, %v5148_v22  ;;  %v5153_v53 = vor.u32 %v5609_v47, %v5150_v13  ;;  %v5077_v4 = vor.u32 %v5594_v48, %v5076_v62  ;;  %v5591_v30 = vld [vmem:[#allocation2 + $0x14] sm:$0xf] }
 0x6ef   : > { %3812 = vmatpush.bf16.msrb.mxu3 %v5117_v37  ;;  %3840 = vmatpush.bf16.msrb.mxu1 %v5121_v56  ;;  %v5081_v36 = vor.u32 %v5591_v30, %v5078_v45 }
 0x6f0   : > { %3864 = vmatpush.bf16.msra.mxu2 %v5221_v12  ;;  %3892 = vmatpush.bf16.msra.mxu0 %v5225_v17 }
 0x6f3   : > { %3813 = vmatpush.bf16.msrb.mxu3 %v5093_v28  ;;  %3841 = vmatpush.bf16.msrb.mxu1 %v5097_v35 }
 0x6f4   : > { %3865 = vmatpush.bf16.msra.mxu2 %v5197_v59  ;;  %3893 = vmatpush.bf16.msra.mxu0 %v5201_v44 }
 0x6f7   : > { %3814 = vmatpush.bf16.msrb.mxu3 %v5069_v29  ;;  %3842 = vmatpush.bf16.msrb.mxu1 %v5073_v38 }
 0x6f8   : > { %3866 = vmatpush.bf16.msra.mxu2 %v5173_v11  ;;  %3894 = vmatpush.bf16.msra.mxu0 %v5177_v42 }
 0x6fa   : > { %3815 = vmatmul.bf16.vlgmr.msrb.gmra.mxu3 %v8595_v57  ;;  %3843 = vmatmul.bf16.vlgmr.msrb.gmra.mxu1 %v8595_v57 }
 0x6fb   : > { %3884 = vmatpush.bf16.msra.mxu3 %v5269_v49  ;;  %3912 = vmatpush.bf16.msra.mxu1 %v5273_v55 }
 0x6fc   : > { %3867 = vmatpush.bf16.msra.mxu2 %v5149_v21  ;;  %3895 = vmatpush.bf16.msra.mxu0 %v5153_v53 }
 0x700   : > { %3868 = vmatpush.bf16.msra.mxu2 %v5125_v9  ;;  %3896 = vmatpush.bf16.msra.mxu0 %v5129_v52 }
 0x704   : > { %3869 = vmatpush.bf16.msra.mxu2 %v5101_v41  ;;  %3897 = vmatpush.bf16.msra.mxu0 %v5105_v2 }
 0x708   : > { %3870 = vmatpush.bf16.msra.mxu2 %v5077_v4  ;;  %3898 = vmatpush.bf16.msra.mxu0 %v5081_v36 }
 0x70a   : > { %5278 = vmatmul.msk.bf16.vlgmr.msra.gmra.mxu3 %vm1368_vm8, %v8628_v25  ;;  %5279 = vmatmul.msk.bf16.vlgmr.msra.gmra.mxu1 %vm1368_vm8, %v8628_v25 }
 0x70b   : > { %3871 = vmatmul.bf16.vlgmr.msra.gmra.mxu2 %v8595_v57  ;;  %3899 = vmatmul.bf16.vlgmr.msra.gmra.mxu0 %v8595_v57 }
 0x73b   : > { %v3462_v37 = vpop.permute.xlu2 %3461 }
 0x74b   : > { %v3788_v51 = vpop.f32.mrf.mxu0 }
 0x74c   : > { %v3789_v33 = vadd.f32 %v3788_v51, %v3462_v37 }
 0x751   : > { %v3760_v24 = vpop.f32.mrf.mxu2 }
 0x752   : > { %v3761_v10 = vadd.f32 %v3760_v24, %v3462_v37 }
 0x753   : > { %v3790_v56 = vpop.f32.mrf.mxu0 }
 0x754   : > { %v3791_v26 = vadd.f32 %v3790_v56, %v3467_v27 }
 0x757   : > { %v3802_v12 = vpop.f32.mrf.mxu1 }
 0x758   : > { %v8682_v18 = vadd.f32 %v3802_v12, %v3789_v33 }
 0x759   : > { %v3762_v40 = vpop.f32.mrf.mxu2 }
 0x75a   : > { %v3920_v57 = vmax.f32 %v8682_v18, 0.0  ;;  %v3763_v59 = vadd.f32 %v3762_v40, %v3467_v27 }
 0x75d   : > { %v3774_v17 = vpop.f32.mrf.mxu3 }
 0x75e   : > { %v8687_v5 = vadd.f32 %v3774_v17, %v3761_v10 }
 0x75f   : > { %v3804_v58 = vpop.f32.mrf.mxu1 }
 0x760   : > { %v8684_v28 = vadd.f32 %v3804_v58, %v3791_v26  ;;  %v3919_v20 = vmax.f32 %v8687_v5, 0.0 }
 0x762   : > { %v3926_v25 = vmax.f32 %v8684_v28, 0.0 }
 0x764   : > { %v5725_v34 = vpack.i.bf16 %v3926_v25, %v3920_v57 }
 0x765   : > { %v3776_v35 = vpop.f32.mrf.mxu3 }
 0x766   : > { %v8694_v44 = vadd.f32 %v3776_v35, %v3763_v59  ;;  %5726 = vrot.lane.b32.xlu2 %v5725_v34, %s5814_s22 }
 0x768   : > { %v3925_v6 = vmax.f32 %v8694_v44, 0.0  ;;  %v5650_v44 = vld [vmem:[%s9031_s10 + $0x38] sm:$0xff] }
 0x769   : > { %4417 = vmatpush.bf16.msrb.mxu3 %v5650_v44  ;;  %v5672_v44 = vld [vmem:[%s9031_s10 + $0xe8] sm:$0xff] }
 0x76a   : > { %v5730_v32 = vpack.i.bf16 %v3925_v6, %v3919_v20  ;;  %v3858_v61 = vpop.f32.mrf.mxu0 }
 0x76c   : > { %5731 = vrot.lane.b32.xlu1 %v5730_v32, %s5814_s22  ;;  %v5658_v32 = vld [vmem:[%s9031_s10 + $0x78] sm:$0xff] }
 0x76d   : > { %4431 = vmatpush.bf16.msrb.mxu2 %v5658_v32  ;;  %v5680_v32 = vld [vmem:[%s9031_s10 + $0x128] sm:$0xff] }
 0x770   : > { %v3830_v60 = vpop.f32.mrf.mxu2 }
 0x772   : > { %v3860_v29 = vpop.f32.mrf.mxu0 }
 0x777   : > { %v3844_v23 = vpop.f32.mrf.mxu1 }
 0x778   : > { %v3845_v54 = vadd.f32 %v3844_v23, %v3462_v37  ;;  %v3832_v7 = vpop.f32.mrf.mxu2  ;;  %v5647_v23 = vld [vmem:[%s9031_s10 + $0x20] sm:$0xff] }
 0x77a   : > { %v8700_v11 = vadd.f32 %v3858_v61, %v3845_v54  ;;  %v5648_v61 = vld [vmem:[%s9031_s10 + $0x28] sm:$0xff] }
 0x77c   : > { %v3922_v42 = vmax.f32 %v8700_v11, 0.0 }
 0x77d   : > { %v3816_v39 = vpop.f32.mrf.mxu3 }
 0x77e   : > { %v3817_v15 = vadd.f32 %v3816_v39, %v3462_v37 }
 0x77f   : > { %v3846_v14 = vpop.f32.mrf.mxu1 }
 0x780   : > { %v3847_v50 = vadd.f32 %v3846_v14, %v3467_v27  ;;  %v8706_v49 = vadd.f32 %v3830_v60, %v3817_v15 }
 0x782   : > { %v8702_v38 = vadd.f32 %v3860_v29, %v3847_v50  ;;  %v3921_v31 = vmax.f32 %v8706_v49, 0.0 }
 0x784   : > { %v3928_v22 = vmax.f32 %v8702_v38, 0.0 }
 0x785   : > { %v3818_v46 = vpop.f32.mrf.mxu3 }
 0x786   : > { %v3819_v55 = vadd.f32 %v3818_v46, %v3467_v27  ;;  %v5740_v47 = vpack.i.bf16 %v3928_v22, %v3922_v42 }
 0x787   : > { %v3914_v53 = vpop.f32.mrf.mxu1 }
 0x788   : > { %v8712_v13 = vadd.f32 %v3832_v7, %v3819_v55  ;;  %v3900_v21 = vpop.f32.mrf.mxu0  ;;  %5741 = vrot.lane.b32.xlu1 %v5740_v47, %s5814_s22  ;;  %v5646_v7 = vld [vmem:[%s9031_s10 + $0x18] sm:$0xff] }
 0x789   : > { %v3901_v9 = vadd.f32 %v3900_v21, %v3462_v37 }
 0x78a   : > { %v3927_v19 = vmax.f32 %v8712_v13, 0.0 }
 0x78b   : > { %v8722_v1 = vadd.f32 %v3914_v53, %v3901_v9 }
 0x78c   : > { %v5735_v43 = vpack.i.bf16 %v3927_v19, %v3921_v31 }
 0x78d   : > { %v3886_v52 = vpop.f32.mrf.mxu3  ;;  %v3924_v48 = vmax.f32 %v8722_v1, 0.0  ;;  %v5656_v1 = vld [vmem:[%s9031_s10 + $0x68] sm:$0xff] }
 0x78e   : > { %v3872_v3 = vpop.f32.mrf.mxu2  ;;  %5736 = vrot.lane.b32.xlu0 %v5735_v43, %s5814_s22 }
 0x78f   : > { %v3873_v41 = vadd.f32 %v3872_v3, %v3462_v37  ;;  %v3916_v63 = vpop.f32.mrf.mxu1 }
 0x790   : > { %v3902_v8 = vpop.f32.mrf.mxu0 }
 0x791   : > { %v3903_v0 = vadd.f32 %v3902_v8, %v3467_v27  ;;  %v8728_v30 = vadd.f32 %v3886_v52, %v3873_v41 }
 0x793   : > { %v8724_v2 = vadd.f32 %v3916_v63, %v3903_v0  ;;  %v3923_v37 = vmax.f32 %v8728_v30, 0.0 }
 0x795   : > { %v3930_v45 = vmax.f32 %v8724_v2, 0.0  ;;  %v3888_v4 = vpop.f32.mrf.mxu3  ;;  %v5645_v2 = vld [vmem:[%s9031_s10 + $0x10] sm:$0xff] }
 0x796   : > { %v3874_v62 = vpop.f32.mrf.mxu2 }
 0x797   : > { %v3875_v36 = vadd.f32 %v3874_v62, %v3467_v27  ;;  %v5750_v51 = vpack.i.bf16 %v3930_v45, %v3924_v48 }
 0x799   : > { %v8734_v24 = vadd.f32 %v3888_v4, %v3875_v36  ;;  %5751 = vrot.lane.b32.xlu0 %v5750_v51, %s5814_s22 }
 0x79b   : > { %v3929_v12 = vmax.f32 %v8734_v24, 0.0  ;;  %v5654_v24 = vld [vmem:[%s9031_s10 + $0x58] sm:$0xff] }
 0x79d   : > { %v5745_v33 = vpack.i.bf16 %v3929_v12, %v3923_v37 }
 0x79f   : > { %5746 = vrot.lane.b32.xlu2 %v5745_v33, %s5814_s22  ;;  %v5666_v33 = vld [vmem:[%s9031_s10 + $0xb8] sm:$0xff] }
 0x7a0   : > { %4445 = vmatpush.bf16.msrb.mxu1 %v5666_v33 }
 0x7c0   : > { %v5727_v56 = vpop.permute.xlu2 %5726 }
 0x7c1   : > { %v5729_v27 = vunpack.i.h.bf16 %v5727_v56  ;;  %v5728_v10 = vunpack.i.l.bf16 %v5727_v56  ;;  %v5674_v56 = vld [vmem:[%s9031_s10 + $0xf8] sm:$0xff] }
 0x7c2   : > { %4459 = vmatpush.bf16.msrb.mxu0 %v5674_v56 }
 0x7de   : > { %v5732_v17 = vpop.permute.xlu1 %5731 }
 0x7df   : > { %v5734_v26 = vunpack.i.h.bf16 %v5732_v17  ;;  %v5733_v58 = vunpack.i.l.bf16 %v5732_v17  ;;  %v5682_v17 = vld [vmem:[%s9031_s10 + $0x138] sm:$0xff] }
 0x7e1   : > { %v3964_v40 = vsel %vm3232_vm5, %v5734_v26, %v5729_v27  ;;  %v3963_v5 = vsel %vm3232_vm5, %v5733_v58, %v5728_v10 }
 0x7e2   : > { %v8748_v59 = vmax.f32 %v3925_v6, %v3964_v40  ;;  %v8750_v34 = vmax.f32 %v3919_v20, %v3963_v5  ;;  %v5649_v6 = vld [vmem:[%s9031_s10 + $0x30] sm:$0xff]  ;;  %v5651_v40 = vld [vmem:[%s9031_s10 + $0x40] sm:$0xff]  ;;  %v5664_v5 = vld [vmem:[%s9031_s10 + $0xa8] sm:$0xff] }
 0x7e3   : > { %v5657_v20 = vld [vmem:[%s9031_s10 + $0x70] sm:$0xff]  ;;  %4418 = vmatpush.bf16.msrb.mxu3 %v5649_v6  ;;  %v5663_v6 = vld [vmem:[%s9031_s10 + $0xa0] sm:$0xff] }
 0x7e4   : > { %v5755_v35 = vpack.i.bf16 %v8748_v59, %v8750_v34  ;;  %4432 = vmatpush.bf16.msrb.mxu2 %v5657_v20  ;;  %v5689_v20 = vld [vmem:[%s9031_s10 + $0x170] sm:$0xff] }
 0x7e6   : > { %5756 = vrot.lane.b32.xlu1 %v5755_v35, %s5810_s13  ;;  %v5690_v35 = vld [vmem:[%s9031_s10 + $0x178] sm:$0xff] }
 0x7e7   : > { %4419 = vmatpush.bf16.msrb.mxu3 %v5648_v61  ;;  %v5671_v61 = vld [vmem:[%s9031_s10 + $0xe0] sm:$0xff] }
 0x7e8   : > { %4433 = vmatpush.bf16.msrb.mxu2 %v5656_v1 }
 0x7eb   : > { %4420 = vmatpush.bf16.msrb.mxu3 %v5647_v23  ;;  %v5679_v23 = vld [vmem:[%s9031_s10 + $0x120] sm:$0xff] }
 0x7ef   : > { %4421 = vmatpush.bf16.msrb.mxu3 %v5646_v7 }
 0x7f3   : > { %4422 = vmatpush.bf16.msrb.mxu3 %v5645_v2 }
 0x7f9   : > { %v5747_v54 = vpop.permute.xlu2 %5746 }
 0x7fa   : > { %v5742_v60 = vpop.permute.xlu1 %5741  ;;  %v5749_v46 = vunpack.i.h.bf16 %v5747_v54  ;;  %v5748_v55 = vunpack.i.l.bf16 %v5747_v54  ;;  %v5688_v54 = vld [vmem:[%s9031_s10 + $0x168] sm:$0xff] }
 0x7fb   : > { %v5744_v29 = vunpack.i.h.bf16 %v5742_v60  ;;  %v5743_v14 = vunpack.i.l.bf16 %v5742_v60  ;;  %v5662_v60 = vld [vmem:[%s9031_s10 + $0x98] sm:$0xff] }
 0x7fd   : > { %v3958_v0 = vsel %vm3232_vm5, %v5744_v29, %v5749_v46  ;;  %v3957_v18 = vsel %vm3232_vm5, %v5743_v14, %v5748_v55 }
 0x7fe   : > { %v8812_v28 = vmax.f32 %v3928_v22, %v3958_v0 }
 0x800   : > { %v5737_v39 = vpop.permute.xlu0 %5736 }
 0x801   : > { %v5739_v50 = vunpack.i.h.bf16 %v5737_v39  ;;  %v5738_v15 = vunpack.i.l.bf16 %v5737_v39  ;;  %v5670_v39 = vld [vmem:[%s9031_s10 + $0xd8] sm:$0xff] }
 0x803   : > { %v3959_v47 = vsel %vm3232_vm5, %v5738_v15, %v5743_v14  ;;  %v3960_v21 = vsel %vm3232_vm5, %v5739_v50, %v5744_v29  ;;  %v3961_v53 = vsel %vm3232_vm5, %v5728_v10, %v5738_v15  ;;  %v3962_v43 = vsel %vm3232_vm5, %v5729_v27, %v5739_v50  ;;  %v5652_v27 = vld [vmem:[%s9031_s10 + $0x48] sm:$0xff]  ;;  %v5665_v10 = vld [vmem:[%s9031_s10 + $0xb0] sm:$0xff]  ;;  %v5678_v29 = vld [vmem:[%s9031_s10 + $0x118] sm:$0xff] }
 0x804   : > { %v8786_v9 = vmax.f32 %v3920_v57, %v3961_v53  ;;  %v8790_v3 = vmax.f32 %v3921_v31, %v3959_v47  ;;  %v8794_v52 = vmax.f32 %v3926_v25, %v3962_v43  ;;  %v8798_v8 = vmax.f32 %v3927_v19, %v3960_v21  ;;  %4446 = vmatpush.bf16.msrb.mxu1 %v5665_v10  ;;  %v5661_v50 = vld [vmem:[%s9031_s10 + $0x90] sm:$0xff]  ;;  %v5687_v15 = vld [vmem:[%s9031_s10 + $0x160] sm:$0xff] }
 0x805   : > { %v8816_v25 = vmax.f32 %v3922_v42, %v3957_v18  ;;  %v5669_v53 = vld [vmem:[%s9031_s10 + $0xd0] sm:$0xff] }
 0x806   : > { %v5760_v57 = vpack.i.bf16 %v8794_v52, %v8786_v9  ;;  %v5765_v49 = vpack.i.bf16 %v8798_v8, %v8790_v3  ;;  %v5677_v43 = vld [vmem:[%s9031_s10 + $0x110] sm:$0xff] }
 0x807   : > { %v5780_v41 = vpack.i.bf16 %v8812_v28, %v8816_v25 }
 0x808   : > { %5761 = vrot.lane.b32.xlu2 %v5760_v57, %s5810_s13  ;;  %5766 = vrot.lane.b32.xlu0 %v5765_v49, %s5810_s13 }
 0x809   : > { %4447 = vmatpush.bf16.msrb.mxu1 %v5664_v5 }
 0x80b   : > { %v5752_v13 = vpop.permute.xlu0 %5751 }
 0x80c   : > { %v5754_v31 = vunpack.i.h.bf16 %v5752_v13  ;;  %v5753_v19 = vunpack.i.l.bf16 %v5752_v13  ;;  %v5660_v13 = vld [vmem:[%s9031_s10 + $0x88] sm:$0xff] }
 0x80d   : > { %4448 = vmatpush.bf16.msrb.mxu1 %v5663_v6 }
 0x80e   : > { %v3955_v63 = vsel %vm3232_vm5, %v5748_v55, %v5753_v19  ;;  %v3956_v62 = vsel %vm3232_vm5, %v5749_v46, %v5754_v31  ;;  %v3965_v38 = vsel %vm3232_vm5, %v5753_v19, %v5733_v58  ;;  %v3966_v11 = vsel %vm3232_vm5, %v5754_v31, %v5734_v26  ;;  %v5673_v26 = vld [vmem:[%s9031_s10 + $0xf0] sm:$0xff]  ;;  %v5686_v31 = vld [vmem:[%s9031_s10 + $0x158] sm:$0xff] }
 0x80f   : > { %v8830_v42 = vmax.f32 %v3923_v37, %v3955_v63  ;;  %v8834_v22 = vmax.f32 %v3924_v48, %v3965_v38  ;;  %v8838_v4 = vmax.f32 %v3929_v12, %v3956_v62  ;;  %v8842_v36 = vmax.f32 %v3930_v45, %v3966_v11  ;;  %v5655_v48 = vld [vmem:[%s9031_s10 + $0x60] sm:$0xff]  ;;  %v5644_v45 = vld [vmem:[%s9031_s10 + $0x8] sm:$0xff]  ;;  %v5653_v12 = vld [vmem:[%s9031_s10 + $0x50] sm:$0xff]  ;;  %4460 = vmatpush.bf16.msrb.mxu0 %v5673_v26 }
 0x810   : > { %5781 = vrot.lane.b32.xlu0 %v5780_v41, %s5810_s13  ;;  %4434 = vmatpush.bf16.msrb.mxu2 %v5655_v48  ;;  %v5643_v37 = vld [vmem:[%s9031_s10] sm:$0xff]  ;;  %v5681_v58 = vld [vmem:[%s9031_s10 + $0x130] sm:$0xff]  ;;  %v5668_v41 = vld [vmem:[%s9031_s10 + $0xc8] sm:$0xff] }
 0x811   : > { %v5775_v51 = vpack.i.bf16 %v8842_v36, %v8834_v22  ;;  %v5770_v30 = vpack.i.bf16 %v8838_v4, %v8830_v42  ;;  %4423 = vmatpush.bf16.msrb.mxu3 %v5644_v45  ;;  %4449 = vmatpush.bf16.msrb.mxu1 %v5662_v60  ;;  %v5685_v63 = vld [vmem:[%s9031_s10 + $0x150] sm:$0xff]  ;;  %v5667_v62 = vld [vmem:[%s9031_s10 + $0xc0] sm:$0xff]  ;;  %v5684_v11 = vld [vmem:[%s9031_s10 + $0x148] sm:$0xff] }
 0x812   : > { %v5675_v38 = vld [vmem:[%s9031_s10 + $0x100] sm:$0xff] }
 0x813   : > { %5776 = vrot.lane.b32.xlu2 %v5775_v51, %s5810_s13  ;;  %5771 = vrot.lane.b32.xlu1 %v5770_v30, %s5810_s13  ;;  %v5683_v51 = vld [vmem:[%s9031_s10 + $0x140] sm:$0xff] }
 0x814   : > { %4435 = vmatpush.bf16.msrb.mxu2 %v5654_v24  ;;  %4461 = vmatpush.bf16.msrb.mxu0 %v5672_v44 }
 0x815   : > { %4424 = vmatpush.bf16.msrb.mxu3 %v5643_v37  ;;  %4450 = vmatpush.bf16.msrb.mxu1 %v5661_v50 }
 0x818   : > { %4436 = vmatpush.bf16.msrb.mxu2 %v5653_v12  ;;  %4462 = vmatpush.bf16.msrb.mxu0 %v5671_v61 }
 0x819   : > { %4473 = vmatpush.bf16.msra.mxu3 %v5682_v17  ;;  %4451 = vmatpush.bf16.msrb.mxu1 %v5660_v13 }
 0x81c   : > { %4437 = vmatpush.bf16.msrb.mxu2 %v5652_v27  ;;  %4463 = vmatpush.bf16.msrb.mxu0 %v5670_v39 }
 0x81d   : > { %4474 = vmatpush.bf16.msra.mxu3 %v5681_v58 }
 0x820   : > { %4438 = vmatpush.bf16.msrb.mxu2 %v5651_v40  ;;  %4464 = vmatpush.bf16.msrb.mxu0 %v5669_v53 }
 0x821   : > { %4475 = vmatpush.bf16.msra.mxu3 %v5680_v32 }
 0x824   : > { %4487 = vmatpush.bf16.msra.mxu2 %v5690_v35  ;;  %4465 = vmatpush.bf16.msrb.mxu0 %v5668_v41 }
 0x825   : > { %4476 = vmatpush.bf16.msra.mxu3 %v5679_v23 }
 0x828   : > { %4488 = vmatpush.bf16.msra.mxu2 %v5689_v20  ;;  %4466 = vmatpush.bf16.msrb.mxu0 %v5667_v62 }
 0x829   : > { %4477 = vmatpush.bf16.msra.mxu3 %v5678_v29 }
 0x82c   : > { %4489 = vmatpush.bf16.msra.mxu2 %v5688_v54 }
 0x82d   : > { %4478 = vmatpush.bf16.msra.mxu3 %v5677_v43 }
 0x830   : > { %4490 = vmatpush.bf16.msra.mxu2 %v5687_v15 }
 0x834   : > { %4491 = vmatpush.bf16.msra.mxu2 %v5686_v31 }
 0x838   : > { %4492 = vmatpush.bf16.msra.mxu2 %v5685_v63 }
 0x83c   : > { %4493 = vmatpush.bf16.msra.mxu2 %v5684_v11 }
 0x840   : > { %4494 = vmatpush.bf16.msra.mxu2 %v5683_v51 }
 0x858   : > { %v8932_v14 = vpop.permute.xlu1 %5756 }
 0x859   : > { %v5759_v46 = vunpack.i.h.bf16 %v8932_v14  ;;  %v5758_v55 = vunpack.i.l.bf16 %v8932_v14 }
 0x862   : > { %v5762_v7 = vpop.permute.xlu2 %5761 }
 0x863   : > { %v5764_v47 = vunpack.i.h.bf16 %v5762_v7  ;;  %v5763_v21 = vunpack.i.l.bf16 %v5762_v7 }
 0x865   : > { %v4011_v0 = vsel %vm2992_vm1, %v5758_v55, %v5763_v21  ;;  %v4012_v18 = vsel %vm2992_vm1, %v5759_v46, %v5764_v47 }
 0x866   : > { %v4015_v57 = vmax.f32 %v8750_v34, %v4011_v0  ;;  %v4021_v49 = vmax.f32 %v8748_v59, %v4012_v18  ;;  %v5676_v59 = vld [vmem:[%s9031_s10 + $0x108] sm:$0xff]  ;;  %v5659_v34 = vld [vmem:[%s9031_s10 + $0x80] sm:$0xff] }
 0x867   : > { %4479 = vmatpush.bf16.msra.mxu3 %v5676_v59  ;;  %4452 = vmatpush.bf16.msrb.mxu1 %v5659_v34 }
 0x868   : > { %v4027_v19 = vpack.c.bf16 %v4021_v49, %v4015_v57 }
 0x86a   : > { %4425 = vmatmul.bf16.vlgmr.msrb.gmra.mxu3 %v4027_v19 }
 0x86b   : > { %4480 = vmatpush.bf16.msra.mxu3 %v5675_v38 }
 0x86d   : > { %v5777_v12 = vpop.permute.xlu2 %5776 }
 0x86e   : > { %v5779_v17 = vunpack.i.h.bf16 %v5777_v12  ;;  %v5778_v27 = vunpack.i.l.bf16 %v5777_v12 }
 0x870   : > { %v4013_v32 = vsel %vm2992_vm1, %v5778_v27, %v5758_v55  ;;  %v4014_v6 = vsel %vm2992_vm1, %v5779_v17, %v5759_v46 }
 0x871   : > { %v4020_v15 = vmax.f32 %v8834_v22, %v4013_v32  ;;  %v4026_v7 = vmax.f32 %v8842_v36, %v4014_v6 }
 0x873   : > { %v4032_v16 = vpack.c.bf16 %v4026_v7, %v4020_v15 }
 0x87a   : > { %v5767_v30 = vpop.permute.xlu0 %5766 }
 0x87b   : > { %v5769_v1 = vunpack.i.h.bf16 %v5767_v30  ;;  %v5768_v2 = vunpack.i.l.bf16 %v5767_v30 }
 0x87d   : > { %v4010_v48 = vsel %vm2992_vm1, %v5764_v47, %v5769_v1  ;;  %v4009_v45 = vsel %vm2992_vm1, %v5763_v21, %v5768_v2 }
 0x87e   : > { %v4022_v24 = vmax.f32 %v8794_v52, %v4010_v48  ;;  %v4016_v37 = vmax.f32 %v8786_v9, %v4009_v45 }
 0x880   : > { %v4028_v33 = vpack.c.bf16 %v4022_v24, %v4016_v37 }
 0x882   : > { %4439 = vmatmul.bf16.vlgmr.msrb.gmra.mxu2 %v4028_v33  ;;  %v5782_v56 = vpop.permute.xlu0 %5781 }
 0x883   : > { %v5784_v10 = vunpack.i.h.bf16 %v5782_v56  ;;  %v5783_v26 = vunpack.i.l.bf16 %v5782_v56 }
 0x885   : > { %v4008_v58 = vsel %vm2992_vm1, %v5769_v1, %v5784_v10  ;;  %v4007_v40 = vsel %vm2992_vm1, %v5768_v2, %v5783_v26  ;;  %v5772_v5 = vpop.permute.xlu1 %5771 }
 0x886   : > { %v4023_v35 = vmax.f32 %v8798_v8, %v4008_v58  ;;  %v4017_v52 = vmax.f32 %v8790_v3, %v4007_v40  ;;  %v5774_v9 = vunpack.i.h.bf16 %v5772_v5  ;;  %v5773_v44 = vunpack.i.l.bf16 %v5772_v5 }
 0x888   : > { %v4004_v20 = vsel %vm2992_vm1, %v5774_v9, %v5779_v17  ;;  %v4006_v61 = vsel %vm2992_vm1, %v5784_v10, %v5774_v9  ;;  %v4003_v23 = vsel %vm2992_vm1, %v5773_v44, %v5778_v27  ;;  %v4005_v3 = vsel %vm2992_vm1, %v5783_v26, %v5773_v44 }
 0x889   : > { %v4024_v8 = vmax.f32 %v8812_v28, %v4006_v61  ;;  %v4025_v60 = vmax.f32 %v8838_v4, %v4004_v20  ;;  %v4018_v54 = vmax.f32 %v8816_v25, %v4005_v3  ;;  %v4019_v39 = vmax.f32 %v8830_v42, %v4003_v23 }
 0x88a   : > { %v4029_v29 = vpack.c.bf16 %v4023_v35, %v4017_v52 }
 0x88b   : > { %v4030_v14 = vpack.c.bf16 %v4024_v8, %v4018_v54  ;;  %v4031_v50 = vpack.c.bf16 %v4025_v60, %v4019_v39 }
 0x88c   : > { %4453 = vmatmul.bf16.vlgmr.msrb.gmra.mxu1 %v4029_v29 }
 0x88d   : > { %4467 = vmatmul.bf16.vlgmr.msrb.gmra.mxu0 %v4030_v14  ;;  %4481 = vmatmul.bf16.vlgmr.msra.gmra.mxu3 %v4031_v50 }
 0x892   : > { %4495 = vmatmul.bf16.vlgmr.msra.gmra.mxu2 %v4032_v16 }
 0x8ed   : > { %v4426_v28 = vpop.f32.mrf.mxu3 }
 0x8f5   : > { %v4428_v4 = vpop.f32.mrf.mxu3 }
 0x905   : > { %v4440_v46 = vpop.f32.mrf.mxu2 }
 0x906   : > { %v4441_v25 = vadd.f32 %v4440_v46, %v4426_v28 }
 0x909   : > { %v4454_v55 = vpop.f32.mrf.mxu1 }
 0x90a   : > { %v4468_v47 = vpop.f32.mrf.mxu0  ;;  %v4455_v21 = vadd.f32 %v4454_v55, %v4441_v25 }
 0x90c   : > { %v4469_v43 = vadd.f32 %v4468_v47, %v4455_v21 }
 0x90d   : > { %v4442_v42 = vpop.f32.mrf.mxu2 }
 0x90e   : > { %v4443_v0 = vadd.f32 %v4442_v42, %v4428_v4 }
 0x910   : > { %v4482_v53 = vpop.f32.mrf.mxu3 }
 0x911   : > { %v4456_v22 = vpop.f32.mrf.mxu1  ;;  %v4483_v18 = vadd.f32 %v4482_v53, %v4469_v43 }
 0x912   : > { %v4457_v57 = vadd.f32 %v4456_v22, %v4443_v0  ;;  %v4470_v13 = vpop.f32.mrf.mxu0 }
 0x914   : > { %v4471_v41 = vadd.f32 %v4470_v13, %v4457_v57 }
 0x915   : > { %v4496_v36 = vpop.f32.mrf.mxu2 }
 0x916   : > { %v4497_v49 = vadd.f32 %v4496_v36, %v4483_v18 }
 0x918   : > { %v4501_v31 = vmul.f32 0.25, %v4497_v49  ;;  %v4484_v19 = vpop.f32.mrf.mxu3 }
 0x919   : > { %v4485_v59 = vadd.f32 %v4484_v19, %v4471_v41 }
 0x91a   : > { %4504 = vst.msk [vmem:[%s386_s19] sm:$0xff] %vm4503_vm6, %v4501_v31 }
 0x91d   : > { %v4498_v34 = vpop.f32.mrf.mxu2 }
 0x91e   : > { %v4499_v63 = vadd.f32 %v4498_v34, %v4485_v59 }
 0x920   : > { %v4502_v62 = vmul.f32 0.25, %v4499_v63 }
 0x922   : > { %4505 = vst.msk [vmem:[%s386_s19 + $0x8] sm:$0xff] %vm4503_vm6, %v4502_v62 }
 0x923 PF: > { %s21_s17 = sadd.s32 1, %s5791_s17  }
 0x924   : > { %p18_p4 = scmp.ge.s32.totalorder %s21_s17, 4  }
 0x926   :  { %20 = sbr.rel (!%p18_p4) target bundleno = 1 (0x1), region = 115 }

</bundles_post_ra>
